<compile_context>
chip_gen: v7x
topology: tpu7x:2x2x1
jax: 0.10.0
libtpu: 0.0.40
codegen_flags: <defaults>
</compile_context>

<pallas_src>
import functools

import jax
import jax.numpy as jnp
from jax import lax
from jax.experimental import pallas as pl
from jax.experimental.pallas import tpu as pltpu


# ----------------------------- fused forward kernel ------------------------------ #
def fused_slice_attn_kernel(x_ref, wk_w_ref, wk_b_ref, qkv_w_ref, qkv_b_ref,
                            wtq_ref, out_w_ref, out_b_ref, o_ref,
                            *, num_heads, head_dim, scale):
    x = x_ref[0]                                                   # [N, C]

    # wt_k_proj and qkv_proj on the whole sequence (lane-dense, one MXU push each)
    wtk_all = (jnp.dot(x, wk_w_ref[...], preferred_element_type=jnp.float32)
               + wk_b_ref[...])                                    # [N, C]
    qkv_all = (jnp.dot(x, qkv_w_ref[...], preferred_element_type=jnp.float32)
               + qkv_b_ref[...])                                   # [N, 3C]

    head_outs = []
    for h in range(num_heads):                                     # static unroll, H small
        wtk_h = wtk_all[:, h * head_dim:(h + 1) * head_dim]        # [N, Dh]
        wtq_h = wtq_ref[h]                                         # [M, Dh] (pre-divided by temperature)

        # slice scores: 'm d, n d -> m n'   (temperature already folded into wtq)
        scores = lax.dot_general(wtq_h, wtk_h, (((1,), (1,)), ((), ())),
                                 preferred_element_type=jnp.float32)   # [M, N]
        # softmax over the slice axis M (dim=-2 in the torch code)
        scores = scores - jnp.max(scores, axis=0, keepdims=True)
        e = jnp.exp(scores)
        weights = e * pl.reciprocal(jnp.sum(e, axis=0, keepdims=True), approx=True)  # [M, N]
        norm = jnp.sum(weights, axis=1, keepdims=True)                               # [M, 1]
        inv = pl.reciprocal(norm + 1e-5, approx=True)

        # slice aggregation of the un-split qkv slab: 'm n, n d -> m d'  (one dot)
        qkv_h = qkv_all[:, h * 3 * head_dim:(h + 1) * 3 * head_dim]                  # [N, 3Dh]
        qkv_tok = jnp.dot(weights, qkv_h, preferred_element_type=jnp.float32) * inv  # [M, 3Dh]
        q = qkv_tok[:, 0:head_dim] * scale                                           # scale folded here
        k = qkv_tok[:, head_dim:2 * head_dim]
        v = qkv_tok[:, 2 * head_dim:3 * head_dim]

        # token attention over slices: 'q d, k d -> q k'
        dots = lax.dot_general(q, k, (((1,), (1,)), ((), ())),
                               preferred_element_type=jnp.float32)                   # [M, M]
        dots = dots - jnp.max(dots, axis=-1, keepdims=True)
        a = jnp.exp(dots)
        attn = a * pl.reciprocal(jnp.sum(a, axis=-1, keepdims=True), approx=True)

        out_m = jnp.dot(attn, v, preferred_element_type=jnp.float32)                 # [M, Dh]
        # back-projection onto the sequence: 'm d, m n -> n d'  (contract on M)
        out_n = lax.dot_general(weights, out_m, (((0,), (0,)), ((), ())),
                                preferred_element_type=jnp.float32)                  # [N, Dh]
        head_outs.append(out_n)

    # 'b h n d -> b n (h d)' entirely in VMEM, then to_out (dropout p=0 omitted)
    out_all = jnp.concatenate(head_outs, axis=1)                                     # [N, C]
    out = (jnp.dot(out_all, out_w_ref[...], preferred_element_type=jnp.float32)
           + out_b_ref[...])                                                         # [N, C]
    o_ref[0] = out.astype(o_ref.dtype)


def slice_attention_forward(x, params, num_heads):
    B, N, C = x.shape
    H = num_heads
    Dh = C // H
    M = params["wtq"].shape[1]
    scale = Dh ** (-0.5)

    # Fold temperature into wtq on the host:  softmax(scores/t) == softmax((wtq/t) @ wtk^T)
    wtq_scaled = params["wtq"] / params["temperature"].reshape(H, 1, 1)

    kern = functools.partial(fused_slice_attn_kernel,
                             num_heads=H, head_dim=Dh, scale=scale)
    return pl.pallas_call(
        kern,
        out_shape=jax.ShapeDtypeStruct((B, N, C), jnp.float32),
        grid=(B,),
        in_specs=[
            pl.BlockSpec((1, N, C), lambda b: (b, 0, 0)),      # x (one batch per step)
            pl.BlockSpec((C, C), lambda b: (0, 0)),            # wt_k_proj weight (transposed)
            pl.BlockSpec((1, C), lambda b: (0, 0)),            # wt_k_proj bias
            pl.BlockSpec((C, 3 * C), lambda b: (0, 0)),        # qkv_proj weight (transposed)
            pl.BlockSpec((1, 3 * C), lambda b: (0, 0)),        # qkv_proj bias
            pl.BlockSpec((H, M, Dh), lambda b: (0, 0, 0)),     # wtq / temperature
            pl.BlockSpec((C, C), lambda b: (0, 0)),            # to_out weight (transposed)
            pl.BlockSpec((1, C), lambda b: (0, 0)),            # to_out bias
        ],
        out_specs=pl.BlockSpec((1, N, C), lambda b: (b, 0, 0)),
        compiler_params=pltpu.CompilerParams(
            dimension_semantics=("parallel",)),                # v7x: one batch per TC
    )(x,
      params["wk_w"].T, params["wk_b"].reshape(1, C),
      params["qkv_w"].T, params["qkv_b"].reshape(1, 3 * C),
      wtq_scaled,
      params["out_w"].T, params["out_b"].reshape(1, C))


# --------------------------------- pure-JAX ref ----------------------------------- #
def reference_forward(x, params, num_heads):
    B, N, C = x.shape
    H = num_heads
    Dh = C // H
    scale = Dh ** (-0.5)

    wtk = x @ params["wk_w"].T + params["wk_b"]
    wtk = wtk.reshape(B, N, H, Dh).transpose(0, 2, 1, 3)
    scores = jnp.einsum("hmd,bhnd->bhmn", params["wtq"], wtk)
    sw = jax.nn.softmax(scores / params["temperature"], axis=-2)
    sn = sw.sum(-1)
    qkv = x @ params["qkv_w"].T + params["qkv_b"]
    qkv = qkv.reshape(B, N, H, 3 * Dh).transpose(0, 2, 1, 3)
    qkv_tok = jnp.einsum("bhmn,bhnd->bhmd", sw, qkv) / (sn[..., None] + 1e-5)
    q, k, v = jnp.split(qkv_tok, 3, axis=-1)
    dots = jnp.einsum("bhqd,bhkd->bhqk", q, k) * scale
    attn = jax.nn.softmax(dots, axis=-1)
    out_tok = jnp.einsum("bhqk,bhkd->bhqd", attn, v)
    out = jnp.einsum("bhmd,bhmn->bhnd", out_tok, sw)
    out = out.transpose(0, 2, 1, 3).reshape(B, N, C)
    return out @ params["out_w"].T + params["out_b"]


# ------------------------------------- main ---------------------------------------- #
if __name__ == "__main__":
    # Small shapes consistent with the module: hidden=32, heads=8 (head_dim=4),
    # num_slices=32, batch=2, seq=8.
    B, N, C = 2, 8, 32
    H, M = 8, 32
    Dh = C // H

    key = jax.random.PRNGKey(0)
    ks = jax.random.split(key, 8)

    # Deterministic synthetic parameters (shapes as in __init__).
    # wtq: nn.init.orthogonal_ approximated with a scaled Gaussian (deterministic;
    # orthogonality does not change kernel semantics).
    params = {
        "wk_w": 0.1 * jax.random.normal(ks[0], (C, C), jnp.float32),       # Linear(C, C).weight
        "wk_b": 0.1 * jax.random.normal(ks[1], (C,), jnp.float32),
        "wtq": (1.0 / jnp.sqrt(Dh)) * jax.random.normal(ks[2], (H, M, Dh), jnp.float32),
        "temperature": 0.5 * jnp.ones((1, H, 1, 1), jnp.float32),
        "qkv_w": 0.1 * jax.random.normal(ks[3], (3 * C, C), jnp.float32),  # Linear(C, 3C).weight
        "qkv_b": 0.1 * jax.random.normal(ks[4], (3 * C,), jnp.float32),
        "out_w": 0.1 * jax.random.normal(ks[5], (C, C), jnp.float32),      # to_out Linear weight
        "out_b": 0.1 * jax.random.normal(ks[6], (C,), jnp.float32),
    }

    x = jax.random.normal(ks[7], (B, N, C), jnp.float32)

    out = jax.block_until_ready(slice_attention_forward(x, params, num_heads=H))
    ref = jax.block_until_ready(reference_forward(x, params, num_heads=H))

    assert out.shape == (B, N, C)
    # pl.reciprocal(approx=True) (EUP) relaxes the match from ~1e-6 to ~1e-4..1e-3.
    err = jnp.max(jnp.abs(out - ref))
    assert jnp.allclose(out, ref, rtol=2e-3, atol=2e-3), f"max abs err = {err}"

    print("KERNEL_OK")
</pallas_src>

<mosaic_0001>
module attributes {stable_mosaic.version = 11 : i64} {
  func.func @fused_slice_attn_kernel(%arg0: i32, %arg1: memref<1x8x32xf32, #tpu.memory_space<vmem>>, %arg2: memref<32x32xf32, #tpu.memory_space<vmem>>, %arg3: memref<1x32xf32, #tpu.memory_space<vmem>>, %arg4: memref<32x96xf32, #tpu.memory_space<vmem>>, %arg5: memref<1x96xf32, #tpu.memory_space<vmem>>, %arg6: memref<8x32x4xf32, #tpu.memory_space<vmem>>, %arg7: memref<32x32xf32, #tpu.memory_space<vmem>>, %arg8: memref<1x32xf32, #tpu.memory_space<vmem>>, %arg9: memref<1x8x32xf32, #tpu.memory_space<vmem>>) attributes {dimension_semantics = [#tpu.dimension_semantics<parallel>], iteration_bounds = array<i64: 2>, scalar_prefetch = 0 : i64, scratch_operands = 0 : i64, tpu.core_type = #tpu.core_type<tc>, window_params = [{transform_indices = @transform_0, window_bounds = array<i64: 1, 8, 32>}, {pipeline_mode = #tpu.pipeline_mode<synchronous>, transform_indices = @transform_1, window_bounds = array<i64: 32, 32>}, {pipeline_mode = #tpu.pipeline_mode<synchronous>, transform_indices = @transform_2, window_bounds = array<i64: 1, 32>}, {pipeline_mode = #tpu.pipeline_mode<synchronous>, transform_indices = @transform_3, window_bounds = array<i64: 32, 96>}, {pipeline_mode = #tpu.pipeline_mode<synchronous>, transform_indices = @transform_4, window_bounds = array<i64: 1, 96>}, {pipeline_mode = #tpu.pipeline_mode<synchronous>, transform_indices = @transform_5, window_bounds = array<i64: 8, 32, 4>}, {pipeline_mode = #tpu.pipeline_mode<synchronous>, transform_indices = @transform_6, window_bounds = array<i64: 32, 32>}, {pipeline_mode = #tpu.pipeline_mode<synchronous>, transform_indices = @transform_7, window_bounds = array<i64: 1, 32>}, {transform_indices = @transform_8, window_bounds = array<i64: 1, 8, 32>}]} {
    %c0 = arith.constant 0 : index
    %c0_0 = arith.constant 0 : index
    %c0_1 = arith.constant 0 : index
    %0 = vector.load %arg1[%c0, %c0_0, %c0_1] : memref<1x8x32xf32, #tpu.memory_space<vmem>>, vector<1x8x32xf32>
    %1 = vector.shape_cast %0 : vector<1x8x32xf32> to vector<8x32xf32>
    %c0_2 = arith.constant 0 : index
    %c0_3 = arith.constant 0 : index
    %2 = vector.load %arg2[%c0_2, %c0_3] : memref<32x32xf32, #tpu.memory_space<vmem>>, vector<32x32xf32>
    %cst = arith.constant dense<0.000000e+00> : vector<8x32xf32>
    %3 = tpu.matmul %1, %2, %cst {dimension_numbers = #tpu.dot_dimension_numbers<[1], [0], [0], [1], [0, 0, 1, 1], [], []>} : vector<8x32xf32>, vector<32x32xf32>, vector<8x32xf32> -> vector<8x32xf32>
    %c0_4 = arith.constant 0 : index
    %c0_5 = arith.constant 0 : index
    %4 = vector.load %arg3[%c0_4, %c0_5] : memref<1x32xf32, #tpu.memory_space<vmem>>, vector<1x32xf32>
    %5 = vector.broadcast %4 : vector<1x32xf32> to vector<8x32xf32>
    %6 = arith.addf %3, %5 : vector<8x32xf32>
    %c0_6 = arith.constant 0 : index
    %c0_7 = arith.constant 0 : index
    %7 = vector.load %arg4[%c0_6, %c0_7] : memref<32x96xf32, #tpu.memory_space<vmem>>, vector<32x96xf32>
    %cst_8 = arith.constant dense<0.000000e+00> : vector<8x96xf32>
    %8 = tpu.matmul %1, %7, %cst_8 {dimension_numbers = #tpu.dot_dimension_numbers<[1], [0], [0], [1], [0, 0, 1, 1], [], []>} : vector<8x32xf32>, vector<32x96xf32>, vector<8x96xf32> -> vector<8x96xf32>
    %c0_9 = arith.constant 0 : index
    %c0_10 = arith.constant 0 : index
    %9 = vector.load %arg5[%c0_9, %c0_10] : memref<1x96xf32, #tpu.memory_space<vmem>>, vector<1x96xf32>
    %10 = vector.broadcast %9 : vector<1x96xf32> to vector<8x96xf32>
    %11 = arith.addf %8, %10 : vector<8x96xf32>
    %12 = vector.extract_strided_slice %6 {offsets = [0, 0], sizes = [8, 4], strides = [1, 1]} : vector<8x32xf32> to vector<8x4xf32>
    %c0_11 = arith.constant 0 : index
    %c0_12 = arith.constant 0 : index
    %c0_13 = arith.constant 0 : index
    %13 = vector.load %arg6[%c0_11, %c0_12, %c0_13] : memref<8x32x4xf32, #tpu.memory_space<vmem>>, vector<1x32x4xf32>
    %14 = vector.shape_cast %13 : vector<1x32x4xf32> to vector<32x4xf32>
    %cst_14 = arith.constant dense<0.000000e+00> : vector<32x8xf32>
    %15 = tpu.matmul %14, %12, %cst_14 {dimension_numbers = #tpu.dot_dimension_numbers<[1], [1], [0], [0], [0, 0, 1, 0], [], []>} : vector<32x4xf32>, vector<8x4xf32>, vector<32x8xf32> -> vector<32x8xf32>
    %cst_15 = arith.constant dense<0xFF800000> : vector<8xf32>
    %16 = vector.multi_reduction <maximumf>, %15, %cst_15 [0] : vector<32x8xf32> to vector<8xf32>
    %17 = vector.shape_cast %16 : vector<8xf32> to vector<1x8xf32>
    %18 = vector.broadcast %17 : vector<1x8xf32> to vector<32x8xf32>
    %19 = arith.subf %15, %18 : vector<32x8xf32>
    %20 = math.exp %19 : vector<32x8xf32>
    %cst_16 = arith.constant dense<0.000000e+00> : vector<8xf32>
    %21 = vector.multi_reduction <add>, %20, %cst_16 [0] : vector<32x8xf32> to vector<8xf32>
    %22 = vector.shape_cast %21 : vector<8xf32> to vector<1x8xf32>
    %23 = tpu.reciprocal %22 {approx = true} : vector<1x8xf32> -> vector<1x8xf32>
    %24 = vector.broadcast %23 : vector<1x8xf32> to vector<32x8xf32>
    %25 = arith.mulf %20, %24 : vector<32x8xf32>
    %cst_17 = arith.constant dense<0.000000e+00> : vector<32xf32>
    %26 = vector.multi_reduction <add>, %25, %cst_17 [1] : vector<32x8xf32> to vector<32xf32>
    %27 = vector.shape_cast %26 : vector<32xf32> to vector<32x1xf32>
    %cst_18 = arith.constant 9.99999974E-6 : f32
    %28 = vector.broadcast %cst_18 : f32 to vector<32x1xf32>
    %29 = arith.addf %27, %28 : vector<32x1xf32>
    %30 = tpu.reciprocal %29 {approx = true} : vector<32x1xf32> -> vector<32x1xf32>
    %31 = vector.extract_strided_slice %11 {offsets = [0, 0], sizes = [8, 12], strides = [1, 1]} : vector<8x96xf32> to vector<8x12xf32>
    %cst_19 = arith.constant dense<0.000000e+00> : vector<32x12xf32>
    %32 = tpu.matmul %25, %31, %cst_19 {dimension_numbers = #tpu.dot_dimension_numbers<[1], [0], [0], [1], [0, 0, 1, 1], [], []>} : vector<32x8xf32>, vector<8x12xf32>, vector<32x12xf32> -> vector<32x12xf32>
    %33 = vector.broadcast %30 : vector<32x1xf32> to vector<32x12xf32>
    %34 = arith.mulf %32, %33 : vector<32x12xf32>
    %35 = vector.extract_strided_slice %34 {offsets = [0, 0], sizes = [32, 4], strides = [1, 1]} : vector<32x12xf32> to vector<32x4xf32>
    %cst_20 = arith.constant 5.000000e-01 : f32
    %36 = vector.broadcast %cst_20 : f32 to vector<32x4xf32>
    %37 = arith.mulf %35, %36 : vector<32x4xf32>
    %38 = vector.extract_strided_slice %34 {offsets = [0, 4], sizes = [32, 4], strides = [1, 1]} : vector<32x12xf32> to vector<32x4xf32>
    %39 = vector.extract_strided_slice %34 {offsets = [0, 8], sizes = [32, 4], strides = [1, 1]} : vector<32x12xf32> to vector<32x4xf32>
    %cst_21 = arith.constant dense<0.000000e+00> : vector<32x32xf32>
    %40 = tpu.matmul %37, %38, %cst_21 {dimension_numbers = #tpu.dot_dimension_numbers<[1], [1], [0], [0], [0, 0, 1, 0], [], []>} : vector<32x4xf32>, vector<32x4xf32>, vector<32x32xf32> -> vector<32x32xf32>
    %cst_22 = arith.constant dense<0xFF800000> : vector<32xf32>
    %41 = vector.multi_reduction <maximumf>, %40, %cst_22 [1] : vector<32x32xf32> to vector<32xf32>
    %42 = vector.shape_cast %41 : vector<32xf32> to vector<32x1xf32>
    %43 = vector.broadcast %42 : vector<32x1xf32> to vector<32x32xf32>
    %44 = arith.subf %40, %43 : vector<32x32xf32>
    %45 = math.exp %44 : vector<32x32xf32>
    %cst_23 = arith.constant dense<0.000000e+00> : vector<32xf32>
    %46 = vector.multi_reduction <add>, %45, %cst_23 [1] : vector<32x32xf32> to vector<32xf32>
    %47 = vector.shape_cast %46 : vector<32xf32> to vector<32x1xf32>
    %48 = tpu.reciprocal %47 {approx = true} : vector<32x1xf32> -> vector<32x1xf32>
    %49 = vector.broadcast %48 : vector<32x1xf32> to vector<32x32xf32>
    %50 = arith.mulf %45, %49 : vector<32x32xf32>
    %cst_24 = arith.constant dense<0.000000e+00> : vector<32x4xf32>
    %51 = tpu.matmul %50, %39, %cst_24 {dimension_numbers = #tpu.dot_dimension_numbers<[1], [0], [0], [1], [0, 0, 1, 1], [], []>} : vector<32x32xf32>, vector<32x4xf32>, vector<32x4xf32> -> vector<32x4xf32>
    %cst_25 = arith.constant dense<0.000000e+00> : vector<8x4xf32>
    %52 = tpu.matmul %25, %51, %cst_25 {dimension_numbers = #tpu.dot_dimension_numbers<[0], [0], [1], [1], [0, 1, 1, 1], [], []>} : vector<32x8xf32>, vector<32x4xf32>, vector<8x4xf32> -> vector<8x4xf32>
    %53 = vector.extract_strided_slice %6 {offsets = [0, 4], sizes = [8, 4], strides = [1, 1]} : vector<8x32xf32> to vector<8x4xf32>
    %c1 = arith.constant 1 : index
    %c0_26 = arith.constant 0 : index
    %c0_27 = arith.constant 0 : index
    %54 = vector.load %arg6[%c1, %c0_26, %c0_27] : memref<8x32x4xf32, #tpu.memory_space<vmem>>, vector<1x32x4xf32>
    %55 = vector.shape_cast %54 : vector<1x32x4xf32> to vector<32x4xf32>
    %cst_28 = arith.constant dense<0.000000e+00> : vector<32x8xf32>
    %56 = tpu.matmul %55, %53, %cst_28 {dimension_numbers = #tpu.dot_dimension_numbers<[1], [1], [0], [0], [0, 0, 1, 0], [], []>} : vector<32x4xf32>, vector<8x4xf32>, vector<32x8xf32> -> vector<32x8xf32>
    %cst_29 = arith.constant dense<0xFF800000> : vector<8xf32>
    %57 = vector.multi_reduction <maximumf>, %56, %cst_29 [0] : vector<32x8xf32> to vector<8xf32>
    %58 = vector.shape_cast %57 : vector<8xf32> to vector<1x8xf32>
    %59 = vector.broadcast %58 : vector<1x8xf32> to vector<32x8xf32>
    %60 = arith.subf %56, %59 : vector<32x8xf32>
    %61 = math.exp %60 : vector<32x8xf32>
    %cst_30 = arith.constant dense<0.000000e+00> : vector<8xf32>
    %62 = vector.multi_reduction <add>, %61, %cst_30 [0] : vector<32x8xf32> to vector<8xf32>
    %63 = vector.shape_cast %62 : vector<8xf32> to vector<1x8xf32>
    %64 = tpu.reciprocal %63 {approx = true} : vector<1x8xf32> -> vector<1x8xf32>
    %65 = vector.broadcast %64 : vector<1x8xf32> to vector<32x8xf32>
    %66 = arith.mulf %61, %65 : vector<32x8xf32>
    %cst_31 = arith.constant dense<0.000000e+00> : vector<32xf32>
    %67 = vector.multi_reduction <add>, %66, %cst_31 [1] : vector<32x8xf32> to vector<32xf32>
    %68 = vector.shape_cast %67 : vector<32xf32> to vector<32x1xf32>
    %cst_32 = arith.constant 9.99999974E-6 : f32
    %69 = vector.broadcast %cst_32 : f32 to vector<32x1xf32>
    %70 = arith.addf %68, %69 : vector<32x1xf32>
    %71 = tpu.reciprocal %70 {approx = true} : vector<32x1xf32> -> vector<32x1xf32>
    %72 = vector.extract_strided_slice %11 {offsets = [0, 12], sizes = [8, 12], strides = [1, 1]} : vector<8x96xf32> to vector<8x12xf32>
    %cst_33 = arith.constant dense<0.000000e+00> : vector<32x12xf32>
    %73 = tpu.matmul %66, %72, %cst_33 {dimension_numbers = #tpu.dot_dimension_numbers<[1], [0], [0], [1], [0, 0, 1, 1], [], []>} : vector<32x8xf32>, vector<8x12xf32>, vector<32x12xf32> -> vector<32x12xf32>
    %74 = vector.broadcast %71 : vector<32x1xf32> to vector<32x12xf32>
    %75 = arith.mulf %73, %74 : vector<32x12xf32>
    %76 = vector.extract_strided_slice %75 {offsets = [0, 0], sizes = [32, 4], strides = [1, 1]} : vector<32x12xf32> to vector<32x4xf32>
    %cst_34 = arith.constant 5.000000e-01 : f32
    %77 = vector.broadcast %cst_34 : f32 to vector<32x4xf32>
    %78 = arith.mulf %76, %77 : vector<32x4xf32>
    %79 = vector.extract_strided_slice %75 {offsets = [0, 4], sizes = [32, 4], strides = [1, 1]} : vector<32x12xf32> to vector<32x4xf32>
    %80 = vector.extract_strided_slice %75 {offsets = [0, 8], sizes = [32, 4], strides = [1, 1]} : vector<32x12xf32> to vector<32x4xf32>
    %cst_35 = arith.constant dense<0.000000e+00> : vector<32x32xf32>
    %81 = tpu.matmul %78, %79, %cst_35 {dimension_numbers = #tpu.dot_dimension_numbers<[1], [1], [0], [0], [0, 0, 1, 0], [], []>} : vector<32x4xf32>, vector<32x4xf32>, vector<32x32xf32> -> vector<32x32xf32>
    %cst_36 = arith.constant dense<0xFF800000> : vector<32xf32>
    %82 = vector.multi_reduction <maximumf>, %81, %cst_36 [1] : vector<32x32xf32> to vector<32xf32>
    %83 = vector.shape_cast %82 : vector<32xf32> to vector<32x1xf32>
    %84 = vector.broadcast %83 : vector<32x1xf32> to vector<32x32xf32>
    %85 = arith.subf %81, %84 : vector<32x32xf32>
    %86 = math.exp %85 : vector<32x32xf32>
    %cst_37 = arith.constant dense<0.000000e+00> : vector<32xf32>
    %87 = vector.multi_reduction <add>, %86, %cst_37 [1] : vector<32x32xf32> to vector<32xf32>
    %88 = vector.shape_cast %87 : vector<32xf32> to vector<32x1xf32>
    %89 = tpu.reciprocal %88 {approx = true} : vector<32x1xf32> -> vector<32x1xf32>
    %90 = vector.broadcast %89 : vector<32x1xf32> to vector<32x32xf32>
    %91 = arith.mulf %86, %90 : vector<32x32xf32>
    %cst_38 = arith.constant dense<0.000000e+00> : vector<32x4xf32>
    %92 = tpu.matmul %91, %80, %cst_38 {dimension_numbers = #tpu.dot_dimension_numbers<[1], [0], [0], [1], [0, 0, 1, 1], [], []>} : vector<32x32xf32>, vector<32x4xf32>, vector<32x4xf32> -> vector<32x4xf32>
    %cst_39 = arith.constant dense<0.000000e+00> : vector<8x4xf32>
    %93 = tpu.matmul %66, %92, %cst_39 {dimension_numbers = #tpu.dot_dimension_numbers<[0], [0], [1], [1], [0, 1, 1, 1], [], []>} : vector<32x8xf32>, vector<32x4xf32>, vector<8x4xf32> -> vector<8x4xf32>
    %94 = vector.extract_strided_slice %6 {offsets = [0, 8], sizes = [8, 4], strides = [1, 1]} : vector<8x32xf32> to vector<8x4xf32>
    %c2 = arith.constant 2 : index
    %c0_40 = arith.constant 0 : index
    %c0_41 = arith.constant 0 : index
    %95 = vector.load %arg6[%c2, %c0_40, %c0_41] : memref<8x32x4xf32, #tpu.memory_space<vmem>>, vector<1x32x4xf32>
    %96 = vector.shape_cast %95 : vector<1x32x4xf32> to vector<32x4xf32>
    %cst_42 = arith.constant dense<0.000000e+00> : vector<32x8xf32>
    %97 = tpu.matmul %96, %94, %cst_42 {dimension_numbers = #tpu.dot_dimension_numbers<[1], [1], [0], [0], [0, 0, 1, 0], [], []>} : vector<32x4xf32>, vector<8x4xf32>, vector<32x8xf32> -> vector<32x8xf32>
    %cst_43 = arith.constant dense<0xFF800000> : vector<8xf32>
    %98 = vector.multi_reduction <maximumf>, %97, %cst_43 [0] : vector<32x8xf32> to vector<8xf32>
    %99 = vector.shape_cast %98 : vector<8xf32> to vector<1x8xf32>
    %100 = vector.broadcast %99 : vector<1x8xf32> to vector<32x8xf32>
    %101 = arith.subf %97, %100 : vector<32x8xf32>
    %102 = math.exp %101 : vector<32x8xf32>
    %cst_44 = arith.constant dense<0.000000e+00> : vector<8xf32>
    %103 = vector.multi_reduction <add>, %102, %cst_44 [0] : vector<32x8xf32> to vector<8xf32>
    %104 = vector.shape_cast %103 : vector<8xf32> to vector<1x8xf32>
    %105 = tpu.reciprocal %104 {approx = true} : vector<1x8xf32> -> vector<1x8xf32>
    %106 = vector.broadcast %105 : vector<1x8xf32> to vector<32x8xf32>
    %107 = arith.mulf %102, %106 : vector<32x8xf32>
    %cst_45 = arith.constant dense<0.000000e+00> : vector<32xf32>
    %108 = vector.multi_reduction <add>, %107, %cst_45 [1] : vector<32x8xf32> to vector<32xf32>
    %109 = vector.shape_cast %108 : vector<32xf32> to vector<32x1xf32>
    %cst_46 = arith.constant 9.99999974E-6 : f32
    %110 = vector.broadcast %cst_46 : f32 to vector<32x1xf32>
    %111 = arith.addf %109, %110 : vector<32x1xf32>
    %112 = tpu.reciprocal %111 {approx = true} : vector<32x1xf32> -> vector<32x1xf32>
    %113 = vector.extract_strided_slice %11 {offsets = [0, 24], sizes = [8, 12], strides = [1, 1]} : vector<8x96xf32> to vector<8x12xf32>
    %cst_47 = arith.constant dense<0.000000e+00> : vector<32x12xf32>
    %114 = tpu.matmul %107, %113, %cst_47 {dimension_numbers = #tpu.dot_dimension_numbers<[1], [0], [0], [1], [0, 0, 1, 1], [], []>} : vector<32x8xf32>, vector<8x12xf32>, vector<32x12xf32> -> vector<32x12xf32>
    %115 = vector.broadcast %112 : vector<32x1xf32> to vector<32x12xf32>
    %116 = arith.mulf %114, %115 : vector<32x12xf32>
    %117 = vector.extract_strided_slice %116 {offsets = [0, 0], sizes = [32, 4], strides = [1, 1]} : vector<32x12xf32> to vector<32x4xf32>
    %cst_48 = arith.constant 5.000000e-01 : f32
    %118 = vector.broadcast %cst_48 : f32 to vector<32x4xf32>
    %119 = arith.mulf %117, %118 : vector<32x4xf32>
    %120 = vector.extract_strided_slice %116 {offsets = [0, 4], sizes = [32, 4], strides = [1, 1]} : vector<32x12xf32> to vector<32x4xf32>
    %121 = vector.extract_strided_slice %116 {offsets = [0, 8], sizes = [32, 4], strides = [1, 1]} : vector<32x12xf32> to vector<32x4xf32>
    %cst_49 = arith.constant dense<0.000000e+00> : vector<32x32xf32>
    %122 = tpu.matmul %119, %120, %cst_49 {dimension_numbers = #tpu.dot_dimension_numbers<[1], [1], [0], [0], [0, 0, 1, 0], [], []>} : vector<32x4xf32>, vector<32x4xf32>, vector<32x32xf32> -> vector<32x32xf32>
    %cst_50 = arith.constant dense<0xFF800000> : vector<32xf32>
    %123 = vector.multi_reduction <maximumf>, %122, %cst_50 [1] : vector<32x32xf32> to vector<32xf32>
    %124 = vector.shape_cast %123 : vector<32xf32> to vector<32x1xf32>
    %125 = vector.broadcast %124 : vector<32x1xf32> to vector<32x32xf32>
    %126 = arith.subf %122, %125 : vector<32x32xf32>
    %127 = math.exp %126 : vector<32x32xf32>
    %cst_51 = arith.constant dense<0.000000e+00> : vector<32xf32>
    %128 = vector.multi_reduction <add>, %127, %cst_51 [1] : vector<32x32xf32> to vector<32xf32>
    %129 = vector.shape_cast %128 : vector<32xf32> to vector<32x1xf32>
    %130 = tpu.reciprocal %129 {approx = true} : vector<32x1xf32> -> vector<32x1xf32>
    %131 = vector.broadcast %130 : vector<32x1xf32> to vector<32x32xf32>
    %132 = arith.mulf %127, %131 : vector<32x32xf32>
    %cst_52 = arith.constant dense<0.000000e+00> : vector<32x4xf32>
    %133 = tpu.matmul %132, %121, %cst_52 {dimension_numbers = #tpu.dot_dimension_numbers<[1], [0], [0], [1], [0, 0, 1, 1], [], []>} : vector<32x32xf32>, vector<32x4xf32>, vector<32x4xf32> -> vector<32x4xf32>
    %cst_53 = arith.constant dense<0.000000e+00> : vector<8x4xf32>
    %134 = tpu.matmul %107, %133, %cst_53 {dimension_numbers = #tpu.dot_dimension_numbers<[0], [0], [1], [1], [0, 1, 1, 1], [], []>} : vector<32x8xf32>, vector<32x4xf32>, vector<8x4xf32> -> vector<8x4xf32>
    %135 = vector.extract_strided_slice %6 {offsets = [0, 12], sizes = [8, 4], strides = [1, 1]} : vector<8x32xf32> to vector<8x4xf32>
    %c3 = arith.constant 3 : index
    %c0_54 = arith.constant 0 : index
    %c0_55 = arith.constant 0 : index
    %136 = vector.load %arg6[%c3, %c0_54, %c0_55] : memref<8x32x4xf32, #tpu.memory_space<vmem>>, vector<1x32x4xf32>
    %137 = vector.shape_cast %136 : vector<1x32x4xf32> to vector<32x4xf32>
    %cst_56 = arith.constant dense<0.000000e+00> : vector<32x8xf32>
    %138 = tpu.matmul %137, %135, %cst_56 {dimension_numbers = #tpu.dot_dimension_numbers<[1], [1], [0], [0], [0, 0, 1, 0], [], []>} : vector<32x4xf32>, vector<8x4xf32>, vector<32x8xf32> -> vector<32x8xf32>
    %cst_57 = arith.constant dense<0xFF800000> : vector<8xf32>
    %139 = vector.multi_reduction <maximumf>, %138, %cst_57 [0] : vector<32x8xf32> to vector<8xf32>
    %140 = vector.shape_cast %139 : vector<8xf32> to vector<1x8xf32>
    %141 = vector.broadcast %140 : vector<1x8xf32> to vector<32x8xf32>
    %142 = arith.subf %138, %141 : vector<32x8xf32>
    %143 = math.exp %142 : vector<32x8xf32>
    %cst_58 = arith.constant dense<0.000000e+00> : vector<8xf32>
    %144 = vector.multi_reduction <add>, %143, %cst_58 [0] : vector<32x8xf32> to vector<8xf32>
    %145 = vector.shape_cast %144 : vector<8xf32> to vector<1x8xf32>
    %146 = tpu.reciprocal %145 {approx = true} : vector<1x8xf32> -> vector<1x8xf32>
    %147 = vector.broadcast %146 : vector<1x8xf32> to vector<32x8xf32>
    %148 = arith.mulf %143, %147 : vector<32x8xf32>
    %cst_59 = arith.constant dense<0.000000e+00> : vector<32xf32>
    %149 = vector.multi_reduction <add>, %148, %cst_59 [1] : vector<32x8xf32> to vector<32xf32>
    %150 = vector.shape_cast %149 : vector<32xf32> to vector<32x1xf32>
    %cst_60 = arith.constant 9.99999974E-6 : f32
    %151 = vector.broadcast %cst_60 : f32 to vector<32x1xf32>
    %152 = arith.addf %150, %151 : vector<32x1xf32>
    %153 = tpu.reciprocal %152 {approx = true} : vector<32x1xf32> -> vector<32x1xf32>
    %154 = vector.extract_strided_slice %11 {offsets = [0, 36], sizes = [8, 12], strides = [1, 1]} : vector<8x96xf32> to vector<8x12xf32>
    %cst_61 = arith.constant dense<0.000000e+00> : vector<32x12xf32>
    %155 = tpu.matmul %148, %154, %cst_61 {dimension_numbers = #tpu.dot_dimension_numbers<[1], [0], [0], [1], [0, 0, 1, 1], [], []>} : vector<32x8xf32>, vector<8x12xf32>, vector<32x12xf32> -> vector<32x12xf32>
    %156 = vector.broadcast %153 : vector<32x1xf32> to vector<32x12xf32>
    %157 = arith.mulf %155, %156 : vector<32x12xf32>
    %158 = vector.extract_strided_slice %157 {offsets = [0, 0], sizes = [32, 4], strides = [1, 1]} : vector<32x12xf32> to vector<32x4xf32>
    %cst_62 = arith.constant 5.000000e-01 : f32
    %159 = vector.broadcast %cst_62 : f32 to vector<32x4xf32>
    %160 = arith.mulf %158, %159 : vector<32x4xf32>
    %161 = vector.extract_strided_slice %157 {offsets = [0, 4], sizes = [32, 4], strides = [1, 1]} : vector<32x12xf32> to vector<32x4xf32>
    %162 = vector.extract_strided_slice %157 {offsets = [0, 8], sizes = [32, 4], strides = [1, 1]} : vector<32x12xf32> to vector<32x4xf32>
    %cst_63 = arith.constant dense<0.000000e+00> : vector<32x32xf32>
    %163 = tpu.matmul %160, %161, %cst_63 {dimension_numbers = #tpu.dot_dimension_numbers<[1], [1], [0], [0], [0, 0, 1, 0], [], []>} : vector<32x4xf32>, vector<32x4xf32>, vector<32x32xf32> -> vector<32x32xf32>
    %cst_64 = arith.constant dense<0xFF800000> : vector<32xf32>
    %164 = vector.multi_reduction <maximumf>, %163, %cst_64 [1] : vector<32x32xf32> to vector<32xf32>
    %165 = vector.shape_cast %164 : vector<32xf32> to vector<32x1xf32>
    %166 = vector.broadcast %165 : vector<32x1xf32> to vector<32x32xf32>
    %167 = arith.subf %163, %166 : vector<32x32xf32>
    %168 = math.exp %167 : vector<32x32xf32>
    %cst_65 = arith.constant dense<0.000000e+00> : vector<32xf32>
    %169 = vector.multi_reduction <add>, %168, %cst_65 [1] : vector<32x32xf32> to vector<32xf32>
    %170 = vector.shape_cast %169 : vector<32xf32> to vector<32x1xf32>
    %171 = tpu.reciprocal %170 {approx = true} : vector<32x1xf32> -> vector<32x1xf32>
    %172 = vector.broadcast %171 : vector<32x1xf32> to vector<32x32xf32>
    %173 = arith.mulf %168, %172 : vector<32x32xf32>
    %cst_66 = arith.constant dense<0.000000e+00> : vector<32x4xf32>
    %174 = tpu.matmul %173, %162, %cst_66 {dimension_numbers = #tpu.dot_dimension_numbers<[1], [0], [0], [1], [0, 0, 1, 1], [], []>} : vector<32x32xf32>, vector<32x4xf32>, vector<32x4xf32> -> vector<32x4xf32>
    %cst_67 = arith.constant dense<0.000000e+00> : vector<8x4xf32>
    %175 = tpu.matmul %148, %174, %cst_67 {dimension_numbers = #tpu.dot_dimension_numbers<[0], [0], [1], [1], [0, 1, 1, 1], [], []>} : vector<32x8xf32>, vector<32x4xf32>, vector<8x4xf32> -> vector<8x4xf32>
    %176 = vector.extract_strided_slice %6 {offsets = [0, 16], sizes = [8, 4], strides = [1, 1]} : vector<8x32xf32> to vector<8x4xf32>
    %c4 = arith.constant 4 : index
    %c0_68 = arith.constant 0 : index
    %c0_69 = arith.constant 0 : index
    %177 = vector.load %arg6[%c4, %c0_68, %c0_69] : memref<8x32x4xf32, #tpu.memory_space<vmem>>, vector<1x32x4xf32>
    %178 = vector.shape_cast %177 : vector<1x32x4xf32> to vector<32x4xf32>
    %cst_70 = arith.constant dense<0.000000e+00> : vector<32x8xf32>
    %179 = tpu.matmul %178, %176, %cst_70 {dimension_numbers = #tpu.dot_dimension_numbers<[1], [1], [0], [0], [0, 0, 1, 0], [], []>} : vector<32x4xf32>, vector<8x4xf32>, vector<32x8xf32> -> vector<32x8xf32>
    %cst_71 = arith.constant dense<0xFF800000> : vector<8xf32>
    %180 = vector.multi_reduction <maximumf>, %179, %cst_71 [0] : vector<32x8xf32> to vector<8xf32>
    %181 = vector.shape_cast %180 : vector<8xf32> to vector<1x8xf32>
    %182 = vector.broadcast %181 : vector<1x8xf32> to vector<32x8xf32>
    %183 = arith.subf %179, %182 : vector<32x8xf32>
    %184 = math.exp %183 : vector<32x8xf32>
    %cst_72 = arith.constant dense<0.000000e+00> : vector<8xf32>
    %185 = vector.multi_reduction <add>, %184, %cst_72 [0] : vector<32x8xf32> to vector<8xf32>
    %186 = vector.shape_cast %185 : vector<8xf32> to vector<1x8xf32>
    %187 = tpu.reciprocal %186 {approx = true} : vector<1x8xf32> -> vector<1x8xf32>
    %188 = vector.broadcast %187 : vector<1x8xf32> to vector<32x8xf32>
    %189 = arith.mulf %184, %188 : vector<32x8xf32>
    %cst_73 = arith.constant dense<0.000000e+00> : vector<32xf32>
    %190 = vector.multi_reduction <add>, %189, %cst_73 [1] : vector<32x8xf32> to vector<32xf32>
    %191 = vector.shape_cast %190 : vector<32xf32> to vector<32x1xf32>
    %cst_74 = arith.constant 9.99999974E-6 : f32
    %192 = vector.broadcast %cst_74 : f32 to vector<32x1xf32>
    %193 = arith.addf %191, %192 : vector<32x1xf32>
    %194 = tpu.reciprocal %193 {approx = true} : vector<32x1xf32> -> vector<32x1xf32>
    %195 = vector.extract_strided_slice %11 {offsets = [0, 48], sizes = [8, 12], strides = [1, 1]} : vector<8x96xf32> to vector<8x12xf32>
    %cst_75 = arith.constant dense<0.000000e+00> : vector<32x12xf32>
    %196 = tpu.matmul %189, %195, %cst_75 {dimension_numbers = #tpu.dot_dimension_numbers<[1], [0], [0], [1], [0, 0, 1, 1], [], []>} : vector<32x8xf32>, vector<8x12xf32>, vector<32x12xf32> -> vector<32x12xf32>
    %197 = vector.broadcast %194 : vector<32x1xf32> to vector<32x12xf32>
    %198 = arith.mulf %196, %197 : vector<32x12xf32>
    %199 = vector.extract_strided_slice %198 {offsets = [0, 0], sizes = [32, 4], strides = [1, 1]} : vector<32x12xf32> to vector<32x4xf32>
    %cst_76 = arith.constant 5.000000e-01 : f32
    %200 = vector.broadcast %cst_76 : f32 to vector<32x4xf32>
    %201 = arith.mulf %199, %200 : vector<32x4xf32>
    %202 = vector.extract_strided_slice %198 {offsets = [0, 4], sizes = [32, 4], strides = [1, 1]} : vector<32x12xf32> to vector<32x4xf32>
    %203 = vector.extract_strided_slice %198 {offsets = [0, 8], sizes = [32, 4], strides = [1, 1]} : vector<32x12xf32> to vector<32x4xf32>
    %cst_77 = arith.constant dense<0.000000e+00> : vector<32x32xf32>
    %204 = tpu.matmul %201, %202, %cst_77 {dimension_numbers = #tpu.dot_dimension_numbers<[1], [1], [0], [0], [0, 0, 1, 0], [], []>} : vector<32x4xf32>, vector<32x4xf32>, vector<32x32xf32> -> vector<32x32xf32>
    %cst_78 = arith.constant dense<0xFF800000> : vector<32xf32>
    %205 = vector.multi_reduction <maximumf>, %204, %cst_78 [1] : vector<32x32xf32> to vector<32xf32>
    %206 = vector.shape_cast %205 : vector<32xf32> to vector<32x1xf32>
    %207 = vector.broadcast %206 : vector<32x1xf32> to vector<32x32xf32>
    %208 = arith.subf %204, %207 : vector<32x32xf32>
    %209 = math.exp %208 : vector<32x32xf32>
    %cst_79 = arith.constant dense<0.000000e+00> : vector<32xf32>
    %210 = vector.multi_reduction <add>, %209, %cst_79 [1] : vector<32x32xf32> to vector<32xf32>
    %211 = vector.shape_cast %210 : vector<32xf32> to vector<32x1xf32>
    %212 = tpu.reciprocal %211 {approx = true} : vector<32x1xf32> -> vector<32x1xf32>
    %213 = vector.broadcast %212 : vector<32x1xf32> to vector<32x32xf32>
    %214 = arith.mulf %209, %213 : vector<32x32xf32>
    %cst_80 = arith.constant dense<0.000000e+00> : vector<32x4xf32>
    %215 = tpu.matmul %214, %203, %cst_80 {dimension_numbers = #tpu.dot_dimension_numbers<[1], [0], [0], [1], [0, 0, 1, 1], [], []>} : vector<32x32xf32>, vector<32x4xf32>, vector<32x4xf32> -> vector<32x4xf32>
    %cst_81 = arith.constant dense<0.000000e+00> : vector<8x4xf32>
    %216 = tpu.matmul %189, %215, %cst_81 {dimension_numbers = #tpu.dot_dimension_numbers<[0], [0], [1], [1], [0, 1, 1, 1], [], []>} : vector<32x8xf32>, vector<32x4xf32>, vector<8x4xf32> -> vector<8x4xf32>
    %217 = vector.extract_strided_slice %6 {offsets = [0, 20], sizes = [8, 4], strides = [1, 1]} : vector<8x32xf32> to vector<8x4xf32>
    %c5 = arith.constant 5 : index
    %c0_82 = arith.constant 0 : index
    %c0_83 = arith.constant 0 : index
    %218 = vector.load %arg6[%c5, %c0_82, %c0_83] : memref<8x32x4xf32, #tpu.memory_space<vmem>>, vector<1x32x4xf32>
    %219 = vector.shape_cast %218 : vector<1x32x4xf32> to vector<32x4xf32>
    %cst_84 = arith.constant dense<0.000000e+00> : vector<32x8xf32>
    %220 = tpu.matmul %219, %217, %cst_84 {dimension_numbers = #tpu.dot_dimension_numbers<[1], [1], [0], [0], [0, 0, 1, 0], [], []>} : vector<32x4xf32>, vector<8x4xf32>, vector<32x8xf32> -> vector<32x8xf32>
    %cst_85 = arith.constant dense<0xFF800000> : vector<8xf32>
    %221 = vector.multi_reduction <maximumf>, %220, %cst_85 [0] : vector<32x8xf32> to vector<8xf32>
    %222 = vector.shape_cast %221 : vector<8xf32> to vector<1x8xf32>
    %223 = vector.broadcast %222 : vector<1x8xf32> to vector<32x8xf32>
    %224 = arith.subf %220, %223 : vector<32x8xf32>
    %225 = math.exp %224 : vector<32x8xf32>
    %cst_86 = arith.constant dense<0.000000e+00> : vector<8xf32>
    %226 = vector.multi_reduction <add>, %225, %cst_86 [0] : vector<32x8xf32> to vector<8xf32>
    %227 = vector.shape_cast %226 : vector<8xf32> to vector<1x8xf32>
    %228 = tpu.reciprocal %227 {approx = true} : vector<1x8xf32> -> vector<1x8xf32>
    %229 = vector.broadcast %228 : vector<1x8xf32> to vector<32x8xf32>
    %230 = arith.mulf %225, %229 : vector<32x8xf32>
    %cst_87 = arith.constant dense<0.000000e+00> : vector<32xf32>
    %231 = vector.multi_reduction <add>, %230, %cst_87 [1] : vector<32x8xf32> to vector<32xf32>
    %232 = vector.shape_cast %231 : vector<32xf32> to vector<32x1xf32>
    %cst_88 = arith.constant 9.99999974E-6 : f32
    %233 = vector.broadcast %cst_88 : f32 to vector<32x1xf32>
    %234 = arith.addf %232, %233 : vector<32x1xf32>
    %235 = tpu.reciprocal %234 {approx = true} : vector<32x1xf32> -> vector<32x1xf32>
    %236 = vector.extract_strided_slice %11 {offsets = [0, 60], sizes = [8, 12], strides = [1, 1]} : vector<8x96xf32> to vector<8x12xf32>
    %cst_89 = arith.constant dense<0.000000e+00> : vector<32x12xf32>
    %237 = tpu.matmul %230, %236, %cst_89 {dimension_numbers = #tpu.dot_dimension_numbers<[1], [0], [0], [1], [0, 0, 1, 1], [], []>} : vector<32x8xf32>, vector<8x12xf32>, vector<32x12xf32> -> vector<32x12xf32>
    %238 = vector.broadcast %235 : vector<32x1xf32> to vector<32x12xf32>
    %239 = arith.mulf %237, %238 : vector<32x12xf32>
    %240 = vector.extract_strided_slice %239 {offsets = [0, 0], sizes = [32, 4], strides = [1, 1]} : vector<32x12xf32> to vector<32x4xf32>
    %cst_90 = arith.constant 5.000000e-01 : f32
    %241 = vector.broadcast %cst_90 : f32 to vector<32x4xf32>
    %242 = arith.mulf %240, %241 : vector<32x4xf32>
    %243 = vector.extract_strided_slice %239 {offsets = [0, 4], sizes = [32, 4], strides = [1, 1]} : vector<32x12xf32> to vector<32x4xf32>
    %244 = vector.extract_strided_slice %239 {offsets = [0, 8], sizes = [32, 4], strides = [1, 1]} : vector<32x12xf32> to vector<32x4xf32>
    %cst_91 = arith.constant dense<0.000000e+00> : vector<32x32xf32>
    %245 = tpu.matmul %242, %243, %cst_91 {dimension_numbers = #tpu.dot_dimension_numbers<[1], [1], [0], [0], [0, 0, 1, 0], [], []>} : vector<32x4xf32>, vector<32x4xf32>, vector<32x32xf32> -> vector<32x32xf32>
    %cst_92 = arith.constant dense<0xFF800000> : vector<32xf32>
    %246 = vector.multi_reduction <maximumf>, %245, %cst_92 [1] : vector<32x32xf32> to vector<32xf32>
    %247 = vector.shape_cast %246 : vector<32xf32> to vector<32x1xf32>
    %248 = vector.broadcast %247 : vector<32x1xf32> to vector<32x32xf32>
    %249 = arith.subf %245, %248 : vector<32x32xf32>
    %250 = math.exp %249 : vector<32x32xf32>
    %cst_93 = arith.constant dense<0.000000e+00> : vector<32xf32>
    %251 = vector.multi_reduction <add>, %250, %cst_93 [1] : vector<32x32xf32> to vector<32xf32>
    %252 = vector.shape_cast %251 : vector<32xf32> to vector<32x1xf32>
    %253 = tpu.reciprocal %252 {approx = true} : vector<32x1xf32> -> vector<32x1xf32>
    %254 = vector.broadcast %253 : vector<32x1xf32> to vector<32x32xf32>
    %255 = arith.mulf %250, %254 : vector<32x32xf32>
    %cst_94 = arith.constant dense<0.000000e+00> : vector<32x4xf32>
    %256 = tpu.matmul %255, %244, %cst_94 {dimension_numbers = #tpu.dot_dimension_numbers<[1], [0], [0], [1], [0, 0, 1, 1], [], []>} : vector<32x32xf32>, vector<32x4xf32>, vector<32x4xf32> -> vector<32x4xf32>
    %cst_95 = arith.constant dense<0.000000e+00> : vector<8x4xf32>
    %257 = tpu.matmul %230, %256, %cst_95 {dimension_numbers = #tpu.dot_dimension_numbers<[0], [0], [1], [1], [0, 1, 1, 1], [], []>} : vector<32x8xf32>, vector<32x4xf32>, vector<8x4xf32> -> vector<8x4xf32>
    %258 = vector.extract_strided_slice %6 {offsets = [0, 24], sizes = [8, 4], strides = [1, 1]} : vector<8x32xf32> to vector<8x4xf32>
    %c6 = arith.constant 6 : index
    %c0_96 = arith.constant 0 : index
    %c0_97 = arith.constant 0 : index
    %259 = vector.load %arg6[%c6, %c0_96, %c0_97] : memref<8x32x4xf32, #tpu.memory_space<vmem>>, vector<1x32x4xf32>
    %260 = vector.shape_cast %259 : vector<1x32x4xf32> to vector<32x4xf32>
    %cst_98 = arith.constant dense<0.000000e+00> : vector<32x8xf32>
    %261 = tpu.matmul %260, %258, %cst_98 {dimension_numbers = #tpu.dot_dimension_numbers<[1], [1], [0], [0], [0, 0, 1, 0], [], []>} : vector<32x4xf32>, vector<8x4xf32>, vector<32x8xf32> -> vector<32x8xf32>
    %cst_99 = arith.constant dense<0xFF800000> : vector<8xf32>
    %262 = vector.multi_reduction <maximumf>, %261, %cst_99 [0] : vector<32x8xf32> to vector<8xf32>
    %263 = vector.shape_cast %262 : vector<8xf32> to vector<1x8xf32>
    %264 = vector.broadcast %263 : vector<1x8xf32> to vector<32x8xf32>
    %265 = arith.subf %261, %264 : vector<32x8xf32>
    %266 = math.exp %265 : vector<32x8xf32>
    %cst_100 = arith.constant dense<0.000000e+00> : vector<8xf32>
    %267 = vector.multi_reduction <add>, %266, %cst_100 [0] : vector<32x8xf32> to vector<8xf32>
    %268 = vector.shape_cast %267 : vector<8xf32> to vector<1x8xf32>
    %269 = tpu.reciprocal %268 {approx = true} : vector<1x8xf32> -> vector<1x8xf32>
    %270 = vector.broadcast %269 : vector<1x8xf32> to vector<32x8xf32>
    %271 = arith.mulf %266, %270 : vector<32x8xf32>
    %cst_101 = arith.constant dense<0.000000e+00> : vector<32xf32>
    %272 = vector.multi_reduction <add>, %271, %cst_101 [1] : vector<32x8xf32> to vector<32xf32>
    %273 = vector.shape_cast %272 : vector<32xf32> to vector<32x1xf32>
    %cst_102 = arith.constant 9.99999974E-6 : f32
    %274 = vector.broadcast %cst_102 : f32 to vector<32x1xf32>
    %275 = arith.addf %273, %274 : vector<32x1xf32>
    %276 = tpu.reciprocal %275 {approx = true} : vector<32x1xf32> -> vector<32x1xf32>
    %277 = vector.extract_strided_slice %11 {offsets = [0, 72], sizes = [8, 12], strides = [1, 1]} : vector<8x96xf32> to vector<8x12xf32>
    %cst_103 = arith.constant dense<0.000000e+00> : vector<32x12xf32>
    %278 = tpu.matmul %271, %277, %cst_103 {dimension_numbers = #tpu.dot_dimension_numbers<[1], [0], [0], [1], [0, 0, 1, 1], [], []>} : vector<32x8xf32>, vector<8x12xf32>, vector<32x12xf32> -> vector<32x12xf32>
    %279 = vector.broadcast %276 : vector<32x1xf32> to vector<32x12xf32>
    %280 = arith.mulf %278, %279 : vector<32x12xf32>
    %281 = vector.extract_strided_slice %280 {offsets = [0, 0], sizes = [32, 4], strides = [1, 1]} : vector<32x12xf32> to vector<32x4xf32>
    %cst_104 = arith.constant 5.000000e-01 : f32
    %282 = vector.broadcast %cst_104 : f32 to vector<32x4xf32>
    %283 = arith.mulf %281, %282 : vector<32x4xf32>
    %284 = vector.extract_strided_slice %280 {offsets = [0, 4], sizes = [32, 4], strides = [1, 1]} : vector<32x12xf32> to vector<32x4xf32>
    %285 = vector.extract_strided_slice %280 {offsets = [0, 8], sizes = [32, 4], strides = [1, 1]} : vector<32x12xf32> to vector<32x4xf32>
    %cst_105 = arith.constant dense<0.000000e+00> : vector<32x32xf32>
    %286 = tpu.matmul %283, %284, %cst_105 {dimension_numbers = #tpu.dot_dimension_numbers<[1], [1], [0], [0], [0, 0, 1, 0], [], []>} : vector<32x4xf32>, vector<32x4xf32>, vector<32x32xf32> -> vector<32x32xf32>
    %cst_106 = arith.constant dense<0xFF800000> : vector<32xf32>
    %287 = vector.multi_reduction <maximumf>, %286, %cst_106 [1] : vector<32x32xf32> to vector<32xf32>
    %288 = vector.shape_cast %287 : vector<32xf32> to vector<32x1xf32>
    %289 = vector.broadcast %288 : vector<32x1xf32> to vector<32x32xf32>
    %290 = arith.subf %286, %289 : vector<32x32xf32>
    %291 = math.exp %290 : vector<32x32xf32>
    %cst_107 = arith.constant dense<0.000000e+00> : vector<32xf32>
    %292 = vector.multi_reduction <add>, %291, %cst_107 [1] : vector<32x32xf32> to vector<32xf32>
    %293 = vector.shape_cast %292 : vector<32xf32> to vector<32x1xf32>
    %294 = tpu.reciprocal %293 {approx = true} : vector<32x1xf32> -> vector<32x1xf32>
    %295 = vector.broadcast %294 : vector<32x1xf32> to vector<32x32xf32>
    %296 = arith.mulf %291, %295 : vector<32x32xf32>
    %cst_108 = arith.constant dense<0.000000e+00> : vector<32x4xf32>
    %297 = tpu.matmul %296, %285, %cst_108 {dimension_numbers = #tpu.dot_dimension_numbers<[1], [0], [0], [1], [0, 0, 1, 1], [], []>} : vector<32x32xf32>, vector<32x4xf32>, vector<32x4xf32> -> vector<32x4xf32>
    %cst_109 = arith.constant dense<0.000000e+00> : vector<8x4xf32>
    %298 = tpu.matmul %271, %297, %cst_109 {dimension_numbers = #tpu.dot_dimension_numbers<[0], [0], [1], [1], [0, 1, 1, 1], [], []>} : vector<32x8xf32>, vector<32x4xf32>, vector<8x4xf32> -> vector<8x4xf32>
    %299 = vector.extract_strided_slice %6 {offsets = [0, 28], sizes = [8, 4], strides = [1, 1]} : vector<8x32xf32> to vector<8x4xf32>
    %c7 = arith.constant 7 : index
    %c0_110 = arith.constant 0 : index
    %c0_111 = arith.constant 0 : index
    %300 = vector.load %arg6[%c7, %c0_110, %c0_111] : memref<8x32x4xf32, #tpu.memory_space<vmem>>, vector<1x32x4xf32>
    %301 = vector.shape_cast %300 : vector<1x32x4xf32> to vector<32x4xf32>
    %cst_112 = arith.constant dense<0.000000e+00> : vector<32x8xf32>
    %302 = tpu.matmul %301, %299, %cst_112 {dimension_numbers = #tpu.dot_dimension_numbers<[1], [1], [0], [0], [0, 0, 1, 0], [], []>} : vector<32x4xf32>, vector<8x4xf32>, vector<32x8xf32> -> vector<32x8xf32>
    %cst_113 = arith.constant dense<0xFF800000> : vector<8xf32>
    %303 = vector.multi_reduction <maximumf>, %302, %cst_113 [0] : vector<32x8xf32> to vector<8xf32>
    %304 = vector.shape_cast %303 : vector<8xf32> to vector<1x8xf32>
    %305 = vector.broadcast %304 : vector<1x8xf32> to vector<32x8xf32>
    %306 = arith.subf %302, %305 : vector<32x8xf32>
    %307 = math.exp %306 : vector<32x8xf32>
    %cst_114 = arith.constant dense<0.000000e+00> : vector<8xf32>
    %308 = vector.multi_reduction <add>, %307, %cst_114 [0] : vector<32x8xf32> to vector<8xf32>
    %309 = vector.shape_cast %308 : vector<8xf32> to vector<1x8xf32>
    %310 = tpu.reciprocal %309 {approx = true} : vector<1x8xf32> -> vector<1x8xf32>
    %311 = vector.broadcast %310 : vector<1x8xf32> to vector<32x8xf32>
    %312 = arith.mulf %307, %311 : vector<32x8xf32>
    %cst_115 = arith.constant dense<0.000000e+00> : vector<32xf32>
    %313 = vector.multi_reduction <add>, %312, %cst_115 [1] : vector<32x8xf32> to vector<32xf32>
    %314 = vector.shape_cast %313 : vector<32xf32> to vector<32x1xf32>
    %cst_116 = arith.constant 9.99999974E-6 : f32
    %315 = vector.broadcast %cst_116 : f32 to vector<32x1xf32>
    %316 = arith.addf %314, %315 : vector<32x1xf32>
    %317 = tpu.reciprocal %316 {approx = true} : vector<32x1xf32> -> vector<32x1xf32>
    %318 = vector.extract_strided_slice %11 {offsets = [0, 84], sizes = [8, 12], strides = [1, 1]} : vector<8x96xf32> to vector<8x12xf32>
    %cst_117 = arith.constant dense<0.000000e+00> : vector<32x12xf32>
    %319 = tpu.matmul %312, %318, %cst_117 {dimension_numbers = #tpu.dot_dimension_numbers<[1], [0], [0], [1], [0, 0, 1, 1], [], []>} : vector<32x8xf32>, vector<8x12xf32>, vector<32x12xf32> -> vector<32x12xf32>
    %320 = vector.broadcast %317 : vector<32x1xf32> to vector<32x12xf32>
    %321 = arith.mulf %319, %320 : vector<32x12xf32>
    %322 = vector.extract_strided_slice %321 {offsets = [0, 0], sizes = [32, 4], strides = [1, 1]} : vector<32x12xf32> to vector<32x4xf32>
    %cst_118 = arith.constant 5.000000e-01 : f32
    %323 = vector.broadcast %cst_118 : f32 to vector<32x4xf32>
    %324 = arith.mulf %322, %323 : vector<32x4xf32>
    %325 = vector.extract_strided_slice %321 {offsets = [0, 4], sizes = [32, 4], strides = [1, 1]} : vector<32x12xf32> to vector<32x4xf32>
    %326 = vector.extract_strided_slice %321 {offsets = [0, 8], sizes = [32, 4], strides = [1, 1]} : vector<32x12xf32> to vector<32x4xf32>
    %cst_119 = arith.constant dense<0.000000e+00> : vector<32x32xf32>
    %327 = tpu.matmul %324, %325, %cst_119 {dimension_numbers = #tpu.dot_dimension_numbers<[1], [1], [0], [0], [0, 0, 1, 0], [], []>} : vector<32x4xf32>, vector<32x4xf32>, vector<32x32xf32> -> vector<32x32xf32>
    %cst_120 = arith.constant dense<0xFF800000> : vector<32xf32>
    %328 = vector.multi_reduction <maximumf>, %327, %cst_120 [1] : vector<32x32xf32> to vector<32xf32>
    %329 = vector.shape_cast %328 : vector<32xf32> to vector<32x1xf32>
    %330 = vector.broadcast %329 : vector<32x1xf32> to vector<32x32xf32>
    %331 = arith.subf %327, %330 : vector<32x32xf32>
    %332 = math.exp %331 : vector<32x32xf32>
    %cst_121 = arith.constant dense<0.000000e+00> : vector<32xf32>
    %333 = vector.multi_reduction <add>, %332, %cst_121 [1] : vector<32x32xf32> to vector<32xf32>
    %334 = vector.shape_cast %333 : vector<32xf32> to vector<32x1xf32>
    %335 = tpu.reciprocal %334 {approx = true} : vector<32x1xf32> -> vector<32x1xf32>
    %336 = vector.broadcast %335 : vector<32x1xf32> to vector<32x32xf32>
    %337 = arith.mulf %332, %336 : vector<32x32xf32>
    %cst_122 = arith.constant dense<0.000000e+00> : vector<32x4xf32>
    %338 = tpu.matmul %337, %326, %cst_122 {dimension_numbers = #tpu.dot_dimension_numbers<[1], [0], [0], [1], [0, 0, 1, 1], [], []>} : vector<32x32xf32>, vector<32x4xf32>, vector<32x4xf32> -> vector<32x4xf32>
    %cst_123 = arith.constant dense<0.000000e+00> : vector<8x4xf32>
    %339 = tpu.matmul %312, %338, %cst_123 {dimension_numbers = #tpu.dot_dimension_numbers<[0], [0], [1], [1], [0, 1, 1, 1], [], []>} : vector<32x8xf32>, vector<32x4xf32>, vector<8x4xf32> -> vector<8x4xf32>
    %340 = tpu.concatenate %52, %93, %134, %175, %216, %257, %298, %339 in 1 : vector<8x4xf32>, vector<8x4xf32>, vector<8x4xf32>, vector<8x4xf32>, vector<8x4xf32>, vector<8x4xf32>, vector<8x4xf32>, vector<8x4xf32> -> vector<8x32xf32>
    %c0_124 = arith.constant 0 : index
    %c0_125 = arith.constant 0 : index
    %341 = vector.load %arg7[%c0_124, %c0_125] : memref<32x32xf32, #tpu.memory_space<vmem>>, vector<32x32xf32>
    %cst_126 = arith.constant dense<0.000000e+00> : vector<8x32xf32>
    %342 = tpu.matmul %340, %341, %cst_126 {dimension_numbers = #tpu.dot_dimension_numbers<[1], [0], [0], [1], [0, 0, 1, 1], [], []>} : vector<8x32xf32>, vector<32x32xf32>, vector<8x32xf32> -> vector<8x32xf32>
    %c0_127 = arith.constant 0 : index
    %c0_128 = arith.constant 0 : index
    %343 = vector.load %arg8[%c0_127, %c0_128] : memref<1x32xf32, #tpu.memory_space<vmem>>, vector<1x32xf32>
    %344 = vector.broadcast %343 : vector<1x32xf32> to vector<8x32xf32>
    %345 = arith.addf %342, %344 : vector<8x32xf32>
    %c0_129 = arith.constant 0 : index
    %c0_130 = arith.constant 0 : index
    %c0_131 = arith.constant 0 : index
    %346 = vector.load %arg9[%c0_129, %c0_130, %c0_131] : memref<1x8x32xf32, #tpu.memory_space<vmem>>, vector<1x8x32xf32>
    %347 = vector.shape_cast %346 : vector<1x8x32xf32> to vector<8x32xf32>
    %348 = vector.shape_cast %345 : vector<8x32xf32> to vector<1x8x32xf32>
    tpu.vector_store %arg9[%c0_129, %c0_130, %c0_131], %348 {strides = array<i32>} : memref<1x8x32xf32, #tpu.memory_space<vmem>>, vector<1x8x32xf32>,
    return
  }
  func.func @transform_0(%arg0: i32) -> (i32, i32, i32) {
    %c0_i32 = arith.constant 0 : i32
    %c0_i32_0 = arith.constant 0 : i32
    %c0_i32_1 = arith.constant 0 : i32
    return %arg0, %c0_i32, %c0_i32_0 : i32, i32, i32
  }
  func.func @transform_1(%arg0: i32) -> (i32, i32) {
    %c0_i32 = arith.constant 0 : i32
    %c0_i32_0 = arith.constant 0 : i32
    %c0_i32_1 = arith.constant 0 : i32
    return %c0_i32, %c0_i32_0 : i32, i32
  }
  func.func @transform_2(%arg0: i32) -> (i32, i32) {
    %c0_i32 = arith.constant 0 : i32
    %c0_i32_0 = arith.constant 0 : i32
    %c0_i32_1 = arith.constant 0 : i32
    return %c0_i32, %c0_i32_0 : i32, i32
  }
  func.func @transform_3(%arg0: i32) -> (i32, i32) {
    %c0_i32 = arith.constant 0 : i32
    %c0_i32_0 = arith.constant 0 : i32
    %c0_i32_1 = arith.constant 0 : i32
    return %c0_i32, %c0_i32_0 : i32, i32
  }
  func.func @transform_4(%arg0: i32) -> (i32, i32) {
    %c0_i32 = arith.constant 0 : i32
    %c0_i32_0 = arith.constant 0 : i32
    %c0_i32_1 = arith.constant 0 : i32
    return %c0_i32, %c0_i32_0 : i32, i32
  }
  func.func @transform_5(%arg0: i32) -> (i32, i32, i32) {
    %c0_i32 = arith.constant 0 : i32
    %c0_i32_0 = arith.constant 0 : i32
    %c0_i32_1 = arith.constant 0 : i32
    %c0_i32_2 = arith.constant 0 : i32
    return %c0_i32, %c0_i32_0, %c0_i32_1 : i32, i32, i32
  }
  func.func @transform_6(%arg0: i32) -> (i32, i32) {
    %c0_i32 = arith.constant 0 : i32
    %c0_i32_0 = arith.constant 0 : i32
    %c0_i32_1 = arith.constant 0 : i32
    return %c0_i32, %c0_i32_0 : i32, i32
  }
  func.func @transform_7(%arg0: i32) -> (i32, i32) {
    %c0_i32 = arith.constant 0 : i32
    %c0_i32_0 = arith.constant 0 : i32
    %c0_i32_1 = arith.constant 0 : i32
    return %c0_i32, %c0_i32_0 : i32, i32
  }
  func.func @transform_8(%arg0: i32) -> (i32, i32, i32) {
    %c0_i32 = arith.constant 0 : i32
    %c0_i32_0 = arith.constant 0 : i32
    %c0_i32_1 = arith.constant 0 : i32
    return %arg0, %c0_i32, %c0_i32_0 : i32, i32, i32
  }
}

</mosaic_0001>

<bundles_post_ra>
// kernel: tpu_custom_call.1
= control target key start
LH: loop header
LB: loop body
LE: loop exit
PB: predicated region body
PF: predicated region fallthrough
CT: control target
= control target key end

     0   :  { %13 = vsyncpa [#allocation3], 0  ;;  %s8633_s0 = inlined_call_operand.vmem [shape: f32[2,8,32], index: 0, kind: input, shape index: {}]   ;;  %s8634_s1 = inlined_call_operand.vmem [shape: f32[32,32], index: 1, kind: input, shape index: {}]   ;;  %s8635_s2 = inlined_call_operand.vmem [shape: f32[1,32], index: 2, kind: input, shape index: {}]   ;;  %s8636_s3 = inlined_call_operand.vmem [shape: f32[32,96], index: 3, kind: input, shape index: {}]   ;;  %s8637_s4 = inlined_call_operand.vmem [shape: f32[1,96], index: 4, kind: input, shape index: {}]   ;;  %s8638_s5 = inlined_call_operand.vmem [shape: f32[8,32,4], index: 5, kind: input, shape index: {}]   ;;  %s8639_s6 = inlined_call_operand.vmem [shape: f32[32,32], index: 6, kind: input, shape index: {}]   ;;  %s8640_s7 = inlined_call_operand.vmem [shape: f32[1,32], index: 7, kind: input, shape index: {}]   ;;  %s8641_s8 = inlined_call_operand.hbm [shape: f32[2,8,32], index: 8, kind: output, shape index: {}]  }
   0x1   :  { %15 = vsyncpa [#allocation3 + $0x1], 0  ;;  %s7687_s27 = smov 0   ;;  %s7689_s28 = smov 0  }
   0x2   :  { %s7691_s29 = smov 0   ;;  %s7693_s30 = smov 0  }
   0x3 LB: > { %s7708_s9 = sadd.s32 4294967295, %s7617_s30   ;;  %s5880_s10 = sadd.s32 4294967294, %s7617_s30   ;;  %s7617_s30 = sphi %s7693_s30, %s8649_s30   ;;  %s7613_s29 = sphi %s7691_s29, %s8648_s29   ;;  %s7609_s28 = sphi %s7689_s28, %s8647_s28   ;;  %s7605_s27 = sphi %s7687_s27, %s8646_s27  }
   0x4   : > { %s7712_s11 = sadd.s32 1, %s7617_s30   ;;  %s201_s12 = sadd.s32 1, %s7613_s29 }
   0x5   : > { %s198_s13 = ssub.s32 %s7617_s30, %s7712_s11  ;;  %p211_p0 = scmp.ne.s32.totalorder %s7613_s29, %s7609_s28 }
   0x6   : > { %p199_p1 = scmp.eq.s32.totalorder %s198_s13, 0  ;;  %p212_p2 = scmp.eq.s32.totalorder %s7708_s9, 1 }
   0x7   : > { %p217_p3 = scmp.ne.s32.totalorder %s7609_s28, %s7605_s27  ;;  %p218_p4 = scmp.eq.s32.totalorder %s5880_s10, 1 }
   0x8   : > { %s7723_s14 = scalar_select %p199_p1, %s7613_s29, %s201_s12  }
   0x9   : > { %p7725_p5 = por %p212_p2, %p211_p0  ;;  %p7729_p6 = por %p218_p4, %p217_p3 }
   0xa   : > { %p5883_p7 = scmp.ge.s32.totalorder %s7617_s30, 1  ;;  %p264_p8 = scmp.lt.s32.totalorder %s7617_s30, 3 }
   0xc   : > { %p265_p9 = pnand %p5883_p7, %p264_p8 }
   0xd   : > { %v302_v0 = vld [vmem:[%s8634_s1] sm:$0xff] (!%p265_p9)  ;;  %v303_v1 = vld [vmem:[%s8634_s1 + $0x8] sm:$0xff] (!%p265_p9)  ;;  %v304_v2 = vld [vmem:[%s8634_s1 + $0x10] sm:$0xff] (!%p265_p9)  ;;  %v7619_v3 = vmov (!%p265_p9), 0.0|0.0   ;;  %vm7620_vm0 = vmmov (!%p265_p9), 0   ;;  %v7621_v6 = vmov (!%p265_p9), 0.0  }
   0xe   : > { %268 = sbr.rel (%p265_p9) target bundleno = 12004 (0x2ee4), region = 52  ;;  %6836 = vmatprep.subr.bf16.mxu0 (!%p265_p9), %v7619_v3  ;;  %v6837_v4 = vpack.c.bf16 (!%p265_p9), %v303_v1, %v302_v0  ;;  %v305_v5 = vld [vmem:[%s8634_s1 + $0x18] sm:$0xff] (!%p265_p9)  ;;  %6371 = vmatprep.mubr.msk.f32.mxu0 (!%p265_p9), %vm7620_vm0, %v7621_v6  ;;  %p297_p10 = scmp.lt.s32.totalorder (!%p265_p9), %s7708_s9, 1  ;;  %vm313_vm1 = vcmask (!%p265_p9), 261120   ;;  %vm472_vm2 = vcmask (!%p265_p9), 31744   ;;  %v468_v9 = vld [vmem:[%s8638_s5] sm:$0xff] (!%p265_p9) }
   0xf   : > { %6842 = vmatprep.subr.bf16.mxu1 (!%p265_p9), %v7619_v3  ;;  %6382 = vmatprep.mubr.msk.f32.mxu1 (!%p265_p9), %vm7620_vm0, %v7621_v6  ;;  %v6840_v7 = vpack.c.bf16 (!%p265_p9), %v305_v5, %v304_v2  ;;  %v387_v10 = vld [vmem:[%s8636_s3] sm:$0xff] (!%p265_p9)  ;;  %v388_v11 = vld [vmem:[%s8636_s3 + $0x8] sm:$0xff] (!%p265_p9)  ;;  %v389_v12 = vld [vmem:[%s8636_s3 + $0x10] sm:$0xff] (!%p265_p9)  ;;  %vm573_vm3 = vcmask (!%p265_p9), 64512   ;;  %s7622_s24 = smov (!%p265_p9), 124   ;;  %s7625_s22 = smov (!%p265_p9), 104  }
  0x10   : > { %6838 = vmatpush3.bf16.msra.mxu0 (!%p265_p9), %v6837_v4  ;;  %v6843_v13 = vpack.c.bf16 (!%p265_p9), %v388_v11, %v387_v10  ;;  %v390_v14 = vld [vmem:[%s8636_s3 + $0x18] sm:$0xff] (!%p265_p9)  ;;  %v5886_v16 = vld [vmem:[%s8635_s2] ss:$0 sm:$0xff] (!%p265_p9)  ;;  %v469_v20 = vld [vmem:[%s8638_s5 + $0x8] sm:$0xff] (!%p265_p9)  ;;  %s7626_s21 = smov (!%p265_p9), 92   ;;  %s7627_s20 = smov (!%p265_p9), 112  }
  0x11   : > { %6839 = vmatprep.subr.bf16.mxu0 (!%p265_p9), %v7619_v3  ;;  %v6846_v15 = vpack.c.bf16 (!%p265_p9), %v390_v14, %v389_v12  ;;  %v470_v21 = vld [vmem:[%s8638_s5 + $0x10] sm:$0xff] (!%p265_p9)  ;;  %v471_v22 = vld [vmem:[%s8638_s5 + $0x18] sm:$0xff] (!%p265_p9)  ;;  %v5888_v23 = vld [vmem:[%s8637_s4] ss:$0 sm:$0xff] (!%p265_p9)  ;;  %s7632_s18 = smov (!%p265_p9), 100   ;;  %s7633_s19 = smov (!%p265_p9), 44  }
  0x12   : > { %6844 = vmatpush3.bf16.msra.mxu1 (!%p265_p9), %v6843_v13  ;;  %vm7846_vm4 = vmpackc.low (!%p265_p9), %vm472_vm2, %vm472_vm2  ;;  %s7635_s17 = smov (!%p265_p9), 8   ;;  %vm5712_vm5 = vcmask (!%p265_p9), 97280   ;;  %vm5714_vm6 = vcmask (!%p265_p9), 130048   ;;  %vm5716_vm7 = vcmask (!%p265_p9), 162816   ;;  %vm5718_vm8 = vcmask (!%p265_p9), 195584  }
  0x13   : > { %6845 = vmatprep.subr.bf16.mxu1 (!%p265_p9), %v7619_v3  ;;  %vm5720_vm9 = vcmask (!%p265_p9), 228352  }
  0x14   : > { %6841 = vmatpush3.bf16.msra.mxu0 (!%p265_p9), %v6840_v7 }
  0x15   : > { %s298_s25 = scalar_select %p297_p10, %s7708_s9, 1 }
  0x16   : > { %6847 = vmatpush3.bf16.msra.mxu1 %v6846_v15 }
  0x17   : > { %s5885_s26 = sshll.u32 %s298_s25, 3  ;;  %s7623_s25 = smov 120  }
  0x18   : > { %s300_s13 = scalar_lea.vmem %s8633_s0, %s5885_s26  ;;  %s7624_s26 = smov 116  }
  0x19   : > { %v301_v8 = vld [vmem:[%s300_s13] sm:$0xff] }
  0x1a   : > { %6372 = vmatmul.mubr.msk.f32.vlgmr.msra.gmra.mrb[0].mxu0 %vm313_vm1, %v301_v8  ;;  %6383 = vmatmul.mubr.msk.f32.vlgmr.msra.gmra.mrb[0].mxu1 %vm313_vm1, %v301_v8 }
  0x1b   : > { %6387 = vmatprep.mubr.msk.f32.mxu0 %vm472_vm2, %v468_v9 }
  0xed   : > { %v383_v17 = vpop.f32.mrb[0].mxu0  ;;  %v464_v24 = vpop.f32.mrb[0].mxu1 }
  0xee   : > { %v7781_v18 = vadd.f32 %v5886_v16, %v383_v17  ;;  %v6373_v19 = vpop.f32.mrb[1].mxu0  ;;  %v7802_v25 = vadd.f32 %v5888_v23, %v464_v24  ;;  %v6384_v26 = vpop.f32.mrb[1].mxu1 }
  0xf0   : > { %6385 = vmatprep.subr.msk.mxu0 %vm472_vm2, %v7781_v18  ;;  %6393 = vmatprep.subr.mxu1 %v7802_v25 }
  0xf1   : > { %6386 = vmatpush3.xpose.msk.msra.mxu0 %vm472_vm2, %v7781_v18  ;;  %6394 = vmatpush3.msra.mxu1 %v7802_v25 }
  0xf4   : > { %6388 = vmatmul.mubr.msk.f32.vlgmr.msra.gmra.mrb[2].mxu0 %vm472_vm2, %v469_v20 }
  0xf5   : > { %6390 = vmatprep.mubr.msk.f32.mxu0 %vm472_vm2, %v470_v21 }
  0xf8   : > { %6391 = vmatmul.mubr.msk.f32.gmra.mrb[4].mxu0 %vm472_vm2, %v471_v22 }
 0x1c7   : > { %v6389_v27 = vpop.f32.mrb[2].mxu0 }
 0x1c8   : > { %v575_v28 = vsel %vm573_vm3, %v6389_v27, -inf  ;;  %v554_v29 = vpop.f32.mrb[3].mxu0 }
 0x1c9   : > { %v574_v30 = vsel %vm573_vm3, %v554_v29, -inf }
 0x1ca   : > { %v578_v31 = vmax.f32 %v574_v30, %v575_v28 }
 0x1cb   : > { %v6392_v32 = vpop.f32.mrb[4].mxu0 }
 0x1cc   : > { %v577_v33 = vsel %vm573_vm3, %v6392_v32, -inf  ;;  %v564_v34 = vpop.f32.mrb[5].mxu0 }
 0x1cd   : > { %v576_v35 = vsel %vm573_vm3, %v564_v34, -inf }
 0x1ce   : > { %v579_v36 = vmax.f32 %v576_v35, %v577_v33 }
 0x1d0   : > { %v580_v37 = vmax.f32 %v578_v31, %v579_v36 }
 0x1d2   : > { %v581_v38 = vrot.slane %v580_v37, 4 }
 0x1d4   : > { %v582_v39 = vmax.f32 %v580_v37, %v581_v38 }
 0x1d6   : > { %v583_v40 = vrot.slane %v582_v39, 2 }
 0x1d8   : > { %v584_v41 = vmax.f32 %v582_v39, %v583_v40 }
 0x1da   : > { %v585_v42 = vrot.slane %v584_v41, 1 }
 0x1dc   : > { %v586_v43 = vmax.f32 %v584_v41, %v585_v42 }
 0x1de   : > { %v587_v44 = vsub.f32 %v554_v29, %v586_v43  ;;  %v588_v45 = vsub.f32 %v6389_v27, %v586_v43  ;;  %v589_v46 = vsub.f32 %v564_v34, %v586_v43  ;;  %v590_v47 = vsub.f32 %v6392_v32, %v586_v43 }
 0x1e0   : > { %v591_v48 = vmul.f32 1.442695, %v587_v44  ;;  %v593_v49 = vmul.f32 1.442695, %v588_v45  ;;  %v595_v50 = vmul.f32 1.442695, %v589_v46 }
 0x1e1   : > { %v597_v51 = vmul.f32 1.442695, %v590_v47 }
 0x1e2   : > { %7283 = vpow2.f32 %v591_v48 }
 0x1e3   : > { %7285 = vpow2.f32 %v593_v49 }
 0x1e4   : > { %7287 = vpow2.f32 %v595_v50 }
 0x1e5   : > { %7289 = vpow2.f32 %v597_v51 }
 0x1ec   : > { %v7284_v52 = vpop.eup %7283 }
 0x1ed   : > { %v7286_v53 = vpop.eup %7285  ;;  %v599_v54 = vsel %vm573_vm3, %v7284_v52, 0.0 }
 0x1ee   : > { %v7288_v55 = vpop.eup %7287  ;;  %v600_v56 = vsel %vm573_vm3, %v7286_v53, 0.0 }
 0x1ef   : > { %v7290_v57 = vpop.eup %7289  ;;  %v601_v58 = vadd.f32 %v600_v56, %v599_v54  ;;  %v602_v59 = vsel %vm573_vm3, %v7288_v55, 0.0 }
 0x1f0   : > { %v604_v61 = vsel %vm573_vm3, %v7290_v57, 0.0 }
 0x1f1   : > { %v603_v60 = vadd.f32 %v602_v59, %v601_v58 }
 0x1f3   : > { %v605_v62 = vadd.f32 %v604_v61, %v603_v60 }
 0x1f5   : > { %v606_v63 = vrot.slane %v605_v62, 4 }
 0x1f7   : > { %v607_v0 = vadd.f32 %v606_v63, %v605_v62 }
 0x1f9   : > { %v608_v1 = vrot.slane %v607_v0, 2 }
 0x1fb   : > { %v609_v2 = vadd.f32 %v608_v1, %v607_v0 }
 0x1fd   : > { %v610_v4 = vrot.slane %v609_v2, 1 }
 0x1ff   : > { %v611_v5 = vadd.f32 %v610_v4, %v609_v2 }
 0x201   : > { %7291 = vrcp.f32 %v611_v5 }
 0x20b   : > { %v7292_v7 = vpop.eup %7291 }
 0x20c   : > { %v7814_v8 = vmul.f32 %v7292_v7, %v7284_v52  ;;  %v7816_v9 = vmul.f32 %v7292_v7, %v7288_v55  ;;  %v7818_v10 = vmul.f32 %v7292_v7, %v7286_v53  ;;  %v7820_v11 = vmul.f32 %v7292_v7, %v7290_v57 }
 0x20e   : > { %6395 = vmatprep.mubr.msk.f32.mxu1 %vm573_vm3, %v7814_v8  ;;  %v623_v12 = vsel %vm573_vm3, %v7816_v9, 0.0  ;;  %v617_v13 = vsel %vm573_vm3, %v7814_v8, 0.0  ;;  %v626_v14 = vsel %vm573_vm3, %v7820_v11, 0.0  ;;  %v620_v15 = vsel %vm573_vm3, %v7818_v10, 0.0 }
 0x20f   : > { %624 = vadd.xlane.f32.xlu1 %v623_v12  ;;  %6396 = vmatmul.mubr.msk.f32.vlgmr.msra.gmra.mrb[2].mxu1 %vm573_vm3, %v7818_v10 }
 0x210   : > { %618 = vadd.xlane.f32.xlu0 %v617_v13  ;;  %6398 = vmatprep.mubr.msk.f32.mxu1 %vm573_vm3, %v7816_v9 }
 0x213   : > { %627 = vadd.xlane.f32.xlu1 %v626_v14  ;;  %6399 = vmatmul.mubr.msk.f32.gmra.mrb[4].mxu1 %vm573_vm3, %v7820_v11 }
 0x214   : > { %621 = vadd.xlane.f32.xlu0 %v620_v15 }
 0x29c   : > { %v625_v17 = vpop.xlane.xlu1 %624 }
 0x29d   : > { %v619_v16 = vpop.xlane.xlu0 %618  ;;  %v631_v24 = vadd.f32 1e-05, %v625_v17 }
 0x29e   : > { %v629_v21 = vadd.f32 1e-05, %v619_v16 }
 0x2a0   : > { %v628_v22 = vpop.xlane.xlu1 %627 }
 0x2a1   : > { %v622_v19 = vpop.xlane.xlu0 %621  ;;  %v632_v23 = vadd.f32 1e-05, %v628_v22 }
 0x2a2   : > { %v630_v20 = vadd.f32 1e-05, %v622_v19 }
 0x2a4   : > { %7293 = vrcp.f32 %v630_v20 }
 0x2a5   : > { %7295 = vrcp.f32 %v629_v21 }
 0x2a6   : > { %7297 = vrcp.f32 %v632_v23 }
 0x2a7   : > { %7299 = vrcp.f32 %v631_v24 }
 0x2ae   : > { %v7294_v26 = vpop.eup %7293 }
 0x2af   : > { %v7296_v28 = vpop.eup %7295 }
 0x2b0   : > { %v7298_v32 = vpop.eup %7297 }
 0x2b1   : > { %v7300_v36 = vpop.eup %7299 }
 0x2e2   : > { %v6397_v27 = vpop.f32.mrb[2].mxu1 }
 0x2e3   : > { %v735_v29 = vmul.f32 %v7294_v26, %v6397_v27  ;;  %v715_v30 = vpop.f32.mrb[3].mxu1 }
 0x2e4   : > { %v734_v31 = vmul.f32 %v7296_v28, %v715_v30 }
 0x2e5   : > { %v739_v50 = vmul.f32 0.5, %v735_v29 }
 0x2e6   : > { %v738_v33 = vmul.f32 0.5, %v734_v31  ;;  %v6400_v34 = vpop.f32.mrb[4].mxu1  ;;  %v7838_v35 = vpack.i.bf16 %v735_v29, %v734_v31 }
 0x2e7   : > { %v737_v37 = vmul.f32 %v7298_v32, %v6400_v34  ;;  %v725_v38 = vpop.f32.mrb[5].mxu1 }
 0x2e8   : > { %v736_v39 = vmul.f32 %v7300_v36, %v725_v38  ;;  %6409 = vmatprep.mubr.msk.f32.mxu0 %vm472_vm2, %v738_v33  ;;  %7124 = vrot.lane.b32.xlu0 %v7838_v35, %s7622_s24 }
 0x2e9   : > { %v741_v52 = vmul.f32 0.5, %v737_v37 }
 0x2ea   : > { %v7128_v40 = vpack.i.bf16 %v737_v37, %v736_v39  ;;  %v740_v51 = vmul.f32 0.5, %v736_v39 }
 0x2ec   : > { %7129 = vrot.lane.b32.xlu1 %v7128_v40, %s7622_s24 }
 0x35a   : > { %v7125_v41 = vpop.permute.xlu0 %7124 }
 0x35b   : > { %v7127_v42 = vunpack.i.h.bf16 %v7125_v41  ;;  %v7126_v43 = vunpack.i.l.bf16 %v7125_v41 }
 0x35d   : > { %v6848_v45 = vpack.c.bf16 %v7127_v42, %v7126_v43 }
 0x35e   : > { %v7130_v46 = vpop.permute.xlu1 %7129 }
 0x35f   : > { %v7132_v47 = vunpack.i.h.bf16 %v7130_v46  ;;  %v7131_v48 = vunpack.i.l.bf16 %v7130_v46  ;;  %6850 = vmatprep.subr.msk.bf16.mxu0 %vm7846_vm4, %v6848_v45 }
 0x360   : > { %6853 = vmatpush3.bf16.xpose.msk.msra.mxu0 %vm7846_vm4, %v6848_v45 }
 0x361   : > { %v6854_v49 = vpack.c.bf16 %v7132_v47, %v7131_v48 }
 0x363   : > { %6856 = vmatprep.subr.msk.bf16.mxu0 %vm7846_vm4, %v6854_v49 }
 0x368   : > { %6859 = vmatpush3.bf16.xpose.msk.msra.mxu0 %vm7846_vm4, %v6854_v49 }
 0x36f   : > { %6410 = vmatmul.mubr.msk.f32.vlgmr.msra.gmra.mrb[6].mxu0 %vm472_vm2, %v739_v50 }
 0x370   : > { %6412 = vmatprep.mubr.msk.f32.mxu0 %vm472_vm2, %v740_v51  ;;  %v5912_v51 = vld [vmem:[%s8638_s5 + $0x20] sm:$0xff] }
 0x373   : > { %6413 = vmatmul.mubr.msk.f32.gmra.mrb[8].mxu0 %vm472_vm2, %v741_v52  ;;  %v5913_v52 = vld [vmem:[%s8638_s5 + $0x28] sm:$0xff] }
 0x442   : > { %v6411_v53 = vpop.f32.mrb[6].mxu0 }
 0x443   : > { %v840_v54 = vpop.f32.mrb[7].mxu0  ;;  %v862_v55 = vsel %vm313_vm1, %v6411_v53, -inf }
 0x444   : > { %863 = vmax.xlane.f32.xlu0 %v862_v55  ;;  %v859_v56 = vsel %vm313_vm1, %v840_v54, -inf }
 0x445   : > { %860 = vmax.xlane.f32.xlu1 %v859_v56 }
 0x446   : > { %v6414_v57 = vpop.f32.mrb[8].mxu0 }
 0x447   : > { %v850_v58 = vpop.f32.mrb[9].mxu0  ;;  %v868_v59 = vsel %vm313_vm1, %v6414_v57, -inf }
 0x448   : > { %v865_v60 = vsel %vm313_vm1, %v850_v58, -inf }
 0x449   : > { %869 = vmax.xlane.f32.xlu1 %v868_v59  ;;  %866 = vmax.xlane.f32.xlu0 %v865_v60 }
 0x4d1   : > { %v864_v61 = vpop.xlane.xlu0 %863 }
 0x4d2   : > { %v872_v62 = vsub.f32 %v6411_v53, %v864_v61  ;;  %v861_v63 = vpop.xlane.xlu1 %860  ;;  %v5914_v53 = vld [vmem:[%s8638_s5 + $0x30] sm:$0xff] }
 0x4d3   : > { %v871_v0 = vsub.f32 %v840_v54, %v861_v63  ;;  %v5915_v54 = vld [vmem:[%s8638_s5 + $0x38] sm:$0xff] }
 0x4d4   : > { %v877_v1 = vmul.f32 1.442695, %v872_v62 }
 0x4d5   : > { %v875_v2 = vmul.f32 1.442695, %v871_v0 }
 0x4d6   : > { %7301 = vpow2.f32 %v877_v1  ;;  %v870_v4 = vpop.xlane.xlu1 %869  ;;  %v867_v5 = vpop.xlane.xlu0 %866 }
 0x4d7   : > { %7303 = vpow2.f32 %v875_v2  ;;  %v874_v7 = vsub.f32 %v6414_v57, %v870_v4  ;;  %v873_v12 = vsub.f32 %v850_v58, %v867_v5 }
 0x4d9   : > { %v881_v13 = vmul.f32 1.442695, %v874_v7  ;;  %v879_v14 = vmul.f32 1.442695, %v873_v12 }
 0x4db   : > { %7305 = vpow2.f32 %v881_v13 }
 0x4dc   : > { %7307 = vpow2.f32 %v879_v14 }
 0x4e0   : > { %v7302_v15 = vpop.eup %7301 }
 0x4e1   : > { %v7304_v16 = vpop.eup %7303  ;;  %v886_v17 = vsel %vm313_vm1, %v7302_v15, 0.0 }
 0x4e2   : > { %887 = vadd.xlane.f32.xlu1 %v886_v17  ;;  %v883_v19 = vsel %vm313_vm1, %v7304_v16, 0.0 }
 0x4e3   : > { %884 = vadd.xlane.f32.xlu0 %v883_v19 }
 0x4e5   : > { %v7306_v20 = vpop.eup %7305 }
 0x4e6   : > { %v7308_v21 = vpop.eup %7307  ;;  %v892_v22 = vsel %vm313_vm1, %v7306_v20, 0.0 }
 0x4e7   : > { %893 = vadd.xlane.f32.xlu1 %v892_v22  ;;  %v889_v23 = vsel %vm313_vm1, %v7308_v21, 0.0 }
 0x4e8   : > { %890 = vadd.xlane.f32.xlu0 %v889_v23 }
 0x4f8   : > { %7139 = vrot.lane.b32.xlu1 %v7128_v40, %s7623_s25 }
 0x4fc   : > { %1122 = vrot.lane.b32.xlu1 %v7781_v18, %s7622_s24 }
 0x4fe   : > { %7134 = vrot.lane.b32.xlu0 %v7838_v35, %s7623_s25 }
 0x502   : > { %1287 = vrot.lane.b32.xlu0 %v7802_v25, %s7624_s26 }
 0x525   : > { %1012 = vxpose.xlu1.b32.start [1/4] (short) (narrow) %v7814_v8, 8 }
 0x529   : > { %1013 = vxpose.xlu1.b32.cont [2/4] (short) (narrow) %v7818_v10, 8 }
 0x52d   : > { %1014 = vxpose.xlu1.b32.cont [3/4] (short) (narrow) %v7816_v9, 8 }
 0x531   : > { %1015 = vxpose.xlu1.b32.end [4/4] (short) (narrow) %v7820_v11, 8 }
 0x56f   : > { %v888_v24 = vpop.xlane.xlu1 %887 }
 0x570   : > { %v885_v26 = vpop.xlane.xlu0 %884 }
 0x571   : > { %7309 = vrcp.f32 %v885_v26 }
 0x572   : > { %7311 = vrcp.f32 %v888_v24 }
 0x574   : > { %v894_v27 = vpop.xlane.xlu1 %893 }
 0x575   : > { %v891_v28 = vpop.xlane.xlu0 %890 }
 0x576   : > { %7313 = vrcp.f32 %v891_v28 }
 0x577   : > { %7315 = vrcp.f32 %v894_v27 }
 0x578   : > { %v7140_v29 = vpop.permute.xlu1 %7139 }
 0x579   : > { %v7135_v30 = vpop.permute.xlu0 %7134  ;;  %v7142_v31 = vunpack.i.h.bf16 %v7140_v29  ;;  %v7141_v32 = vunpack.i.l.bf16 %v7140_v29 }
 0x57a   : > { %v7137_v33 = vunpack.i.h.bf16 %v7135_v30  ;;  %v7136_v34 = vunpack.i.l.bf16 %v7135_v30 }
 0x57b   : > { %v7310_v8 = vpop.eup %7309  ;;  %v6864_v11 = vpack.c.bf16 %v7142_v31, %v7141_v32 }
 0x57c   : > { %v6860_v10 = vpack.c.bf16 %v7137_v33, %v7136_v34  ;;  %v899_v35 = vmul.f32 %v7310_v8, %v7304_v16  ;;  %v7312_v36 = vpop.eup %7311  ;;  %v1123_v46 = vpop.permute.xlu1 %1122 }
 0x57d   : > { %v1288_v9 = vpop.permute.xlu0 %1287  ;;  %v900_v38 = vmul.f32 %v7312_v36, %v7302_v15 }
 0x57e   : > { %6861 = vmatprep.subr.bf16.mxu1 %v6860_v10  ;;  %6448 = vmatprep.subr.mxu0 %v1288_v9 }
 0x57f   : > { %6863 = vmatpush3.bf16.msra.mxu1 %v6860_v10  ;;  %6423 = vmatprep.mubr.msk.f32.mxu1 %vm313_vm1, %v899_v35 }
 0x580   : > { %6449 = vmatpush3.msra.mxu0 %v1288_v9  ;;  %6865 = vmatprep.subr.bf16.mxu1 %v6864_v11  ;;  %v7314_v37 = vpop.eup %7313 }
 0x581   : > { %v7316_v39 = vpop.eup %7315  ;;  %v901_v40 = vmul.f32 %v7314_v37, %v7308_v21 }
 0x582   : > { %v902_v41 = vmul.f32 %v7316_v39, %v7306_v20 }
 0x583   : > { %6867 = vmatpush3.bf16.msra.mxu1 %v6864_v11 }
 0x584   : > { %6868 = vmatprep.subr.bf16.mxu1 %v7619_v3 }
 0x586   : > { %6424 = vmatmul.mubr.msk.f32.vlgmr.msra.gmra.mrb[6].mxu1 %vm313_vm1, %v900_v38 }
 0x587   : > { %6426 = vmatprep.mubr.msk.f32.mxu1 %vm313_vm1, %v901_v40 }
 0x58a   : > { %6427 = vmatmul.mubr.msk.f32.gmra.mrb[8].mxu1 %vm313_vm1, %v902_v41 }
 0x58b   : > { %6437 = vmatprep.mubr.msk.f32.mxu1 %vm7620_vm0, %v7621_v6 }
 0x5a5   : > { %v1028_v50 = vpop.trf.xlu1 }
 0x659   : > { %v6425_v42 = vpop.f32.mrb[6].mxu1 }
 0x65a   : > { %v993_v43 = vpop.f32.mrb[7].mxu1 }
 0x65b   : > { %v6869_v45 = vpack.c.bf16 %v6425_v42, %v993_v43 }
 0x65d   : > { %v6428_v47 = vpop.f32.mrb[8].mxu1  ;;  %6870 = vmatpush3.bf16.msra.mxu1 %v6869_v45 }
 0x65e   : > { %v1003_v48 = vpop.f32.mrb[9].mxu1  ;;  %6871 = vmatprep.subr.bf16.mxu1 %v7619_v3 }
 0x65f   : > { %v6872_v49 = vpack.c.bf16 %v6428_v47, %v1003_v48 }
 0x661   : > { %6873 = vmatpush3.bf16.msra.mxu1 %v6872_v49 }
 0x662   : > { %6440 = vmatprep.subr.msk.mxu1 %vm472_vm2, %v1123_v46 }
 0x664   : > { %6438 = vmatmul.mubr.msk.f32.vlgmr.msra.gmra.mrb[10].mxu1 %vm313_vm1, %v1028_v50 }
 0x665   : > { %6442 = vmatprep.mubr.msk.f32.mxu1 %vm472_vm2, %v5912_v51 }
 0x66a   : > { %6441 = vmatpush3.xpose.msk.msra.mxu1 %vm472_vm2, %v1123_v46 }
 0x66d   : > { %6443 = vmatmul.mubr.msk.f32.vlgmr.msra.gmra.mrb[12].mxu1 %vm472_vm2, %v5913_v52 }
 0x66e   : > { %6445 = vmatprep.mubr.msk.f32.mxu1 %vm472_vm2, %v5914_v53 }
 0x671   : > { %6446 = vmatmul.mubr.msk.f32.gmra.mrb[14].mxu1 %vm472_vm2, %v5915_v54 }
 0x737   : > { %v7907_v55 = vpop.f32.mrb[10].mxu1 }
 0x738   : > { %v6439_v56 = vpop.f32.mrb[11].mxu1 }
 0x740   : > { %v6444_v57 = vpop.f32.mrb[12].mxu1 }
 0x741   : > { %v1224_v58 = vsel %vm573_vm3, %v6444_v57, -inf  ;;  %v1204_v59 = vpop.f32.mrb[13].mxu1 }
 0x742   : > { %v1223_v60 = vsel %vm573_vm3, %v1204_v59, -inf }
 0x743   : > { %v1227_v61 = vmax.f32 %v1223_v60, %v1224_v58 }
 0x744   : > { %v6447_v62 = vpop.f32.mrb[14].mxu1 }
 0x745   : > { %v1226_v63 = vsel %vm573_vm3, %v6447_v62, -inf  ;;  %v1214_v0 = vpop.f32.mrb[15].mxu1 }
 0x746   : > { %v1225_v1 = vsel %vm573_vm3, %v1214_v0, -inf }
 0x747   : > { %v1228_v2 = vmax.f32 %v1225_v1, %v1226_v63 }
 0x749   : > { %v1229_v4 = vmax.f32 %v1227_v61, %v1228_v2 }
 0x74b   : > { %v1230_v5 = vrot.slane %v1229_v4, 4 }
 0x74d   : > { %v1231_v7 = vmax.f32 %v1229_v4, %v1230_v5 }
 0x74f   : > { %v1232_v12 = vrot.slane %v1231_v7, 2 }
 0x751   : > { %v1233_v13 = vmax.f32 %v1231_v7, %v1232_v12 }
 0x753   : > { %v1234_v14 = vrot.slane %v1233_v13, 1 }
 0x755   : > { %v1235_v15 = vmax.f32 %v1233_v13, %v1234_v14 }
 0x757   : > { %v1236_v16 = vsub.f32 %v1204_v59, %v1235_v15  ;;  %v1237_v17 = vsub.f32 %v6444_v57, %v1235_v15  ;;  %v1238_v19 = vsub.f32 %v1214_v0, %v1235_v15  ;;  %v1239_v20 = vsub.f32 %v6447_v62, %v1235_v15 }
 0x759   : > { %v1240_v21 = vmul.f32 1.442695, %v1236_v16  ;;  %v1242_v22 = vmul.f32 1.442695, %v1237_v17  ;;  %v1244_v23 = vmul.f32 1.442695, %v1238_v19 }
 0x75a   : > { %v1246_v24 = vmul.f32 1.442695, %v1239_v20 }
 0x75b   : > { %7317 = vpow2.f32 %v1240_v21 }
 0x75c   : > { %7319 = vpow2.f32 %v1242_v22 }
 0x75d   : > { %7321 = vpow2.f32 %v1244_v23 }
 0x75e   : > { %7323 = vpow2.f32 %v1246_v24 }
 0x765   : > { %v7318_v26 = vpop.eup %7317 }
 0x766   : > { %v7320_v27 = vpop.eup %7319  ;;  %v1248_v28 = vsel %vm573_vm3, %v7318_v26, 0.0 }
 0x767   : > { %v7322_v29 = vpop.eup %7321  ;;  %v1249_v30 = vsel %vm573_vm3, %v7320_v27, 0.0 }
 0x768   : > { %v7324_v31 = vpop.eup %7323  ;;  %v1250_v32 = vadd.f32 %v1249_v30, %v1248_v28  ;;  %v1251_v33 = vsel %vm573_vm3, %v7322_v29, 0.0 }
 0x769   : > { %v1253_v8 = vsel %vm573_vm3, %v7324_v31, 0.0 }
 0x76a   : > { %v1252_v34 = vadd.f32 %v1251_v33, %v1250_v32 }
 0x76c   : > { %v1254_v10 = vadd.f32 %v1253_v8, %v1252_v34 }
 0x76e   : > { %v1255_v35 = vrot.slane %v1254_v10, 4 }
 0x770   : > { %v1256_v9 = vadd.f32 %v1255_v35, %v1254_v10 }
 0x772   : > { %v1257_v11 = vrot.slane %v1256_v9, 2 }
 0x774   : > { %v1258_v36 = vadd.f32 %v1257_v11, %v1256_v9 }
 0x776   : > { %v1259_v37 = vrot.slane %v1258_v36, 1 }
 0x778   : > { %v1260_v38 = vadd.f32 %v1259_v37, %v1258_v36 }
 0x77a   : > { %7325 = vrcp.f32 %v1260_v38 }
 0x784   : > { %v7326_v39 = vpop.eup %7325 }
 0x785   : > { %v7917_v40 = vmul.f32 %v7326_v39, %v7318_v26  ;;  %v7919_v41 = vmul.f32 %v7326_v39, %v7320_v27  ;;  %v7921_v42 = vmul.f32 %v7326_v39, %v7322_v29  ;;  %v7923_v43 = vmul.f32 %v7326_v39, %v7324_v31 }
 0x787   : > { %6450 = vmatprep.mubr.msk.f32.mxu0 %vm573_vm3, %v7917_v40  ;;  %v1266_v45 = vsel %vm573_vm3, %v7917_v40, 0.0  ;;  %v1269_v46 = vsel %vm573_vm3, %v7919_v41, 0.0  ;;  %v1272_v47 = vsel %vm573_vm3, %v7921_v42, 0.0  ;;  %v1275_v48 = vsel %vm573_vm3, %v7923_v43, 0.0 }
 0x788   : > { %6451 = vmatmul.mubr.msk.f32.vlgmr.msra.gmra.mrb[10].mxu0 %vm573_vm3, %v7919_v41  ;;  %1267 = vadd.xlane.f32.xlu0 %v1266_v45 }
 0x789   : > { %6453 = vmatprep.mubr.msk.f32.mxu0 %vm573_vm3, %v7921_v42 }
 0x78c   : > { %6454 = vmatmul.mubr.msk.f32.gmra.mrb[12].mxu0 %vm573_vm3, %v7923_v43  ;;  %1270 = vadd.xlane.f32.xlu0 %v1269_v46 }
 0x790   : > { %1273 = vadd.xlane.f32.xlu0 %v1272_v47 }
 0x794   : > { %1276 = vadd.xlane.f32.xlu0 %v1275_v48 }
 0x815   : > { %v1268_v49 = vpop.xlane.xlu0 %1267 }
 0x816   : > { %v1278_v53 = vadd.f32 1e-05, %v1268_v49 }
 0x819   : > { %v1271_v50 = vpop.xlane.xlu0 %1270 }
 0x81a   : > { %v1279_v52 = vadd.f32 1e-05, %v1271_v50 }
 0x81c   : > { %7327 = vrcp.f32 %v1279_v52 }
 0x81d   : > { %v1274_v51 = vpop.xlane.xlu0 %1273  ;;  %7329 = vrcp.f32 %v1278_v53 }
 0x81e   : > { %v1280_v57 = vadd.f32 1e-05, %v1274_v51 }
 0x821   : > { %v1277_v54 = vpop.xlane.xlu0 %1276 }
 0x822   : > { %v1281_v56 = vadd.f32 1e-05, %v1277_v54 }
 0x824   : > { %7331 = vrcp.f32 %v1281_v56 }
 0x825   : > { %7333 = vrcp.f32 %v1280_v57 }
 0x826   : > { %v7328_v58 = vpop.eup %7327 }
 0x827   : > { %v7330_v60 = vpop.eup %7329 }
 0x82e   : > { %v7332_v0 = vpop.eup %7331 }
 0x82f   : > { %v7334_v5 = vpop.eup %7333 }
 0x85b   : > { %v6452_v59 = vpop.f32.mrb[10].mxu0 }
 0x85c   : > { %v1388_v61 = vmul.f32 %v7328_v58, %v6452_v59  ;;  %v1368_v62 = vpop.f32.mrb[11].mxu0 }
 0x85d   : > { %v1387_v63 = vmul.f32 %v7330_v60, %v1368_v62 }
 0x85e   : > { %v1392_v24 = vmul.f32 0.5, %v1388_v61 }
 0x85f   : > { %v1391_v1 = vmul.f32 0.5, %v1387_v63  ;;  %v6455_v2 = vpop.f32.mrb[12].mxu0  ;;  %v7941_v4 = vpack.i.bf16 %v1388_v61, %v1387_v63 }
 0x860   : > { %v1390_v7 = vmul.f32 %v7332_v0, %v6455_v2  ;;  %v1378_v12 = vpop.f32.mrb[13].mxu0 }
 0x861   : > { %v1389_v13 = vmul.f32 %v7334_v5, %v1378_v12  ;;  %6464 = vmatprep.mubr.msk.f32.mxu1 %vm472_vm2, %v1391_v1  ;;  %7144 = vrot.lane.b32.xlu0 %v7941_v4, %s7622_s24 }
 0x862   : > { %v1394_v27 = vmul.f32 0.5, %v1390_v7 }
 0x863   : > { %v7148_v14 = vpack.i.bf16 %v1390_v7, %v1389_v13  ;;  %v1393_v26 = vmul.f32 0.5, %v1389_v13 }
 0x865   : > { %7149 = vrot.lane.b32.xlu1 %v7148_v14, %s7622_s24 }
 0x8d3   : > { %v7145_v15 = vpop.permute.xlu0 %7144 }
 0x8d4   : > { %v7147_v16 = vunpack.i.h.bf16 %v7145_v15  ;;  %v7146_v17 = vunpack.i.l.bf16 %v7145_v15 }
 0x8d6   : > { %v6874_v19 = vpack.c.bf16 %v7147_v16, %v7146_v17 }
 0x8d7   : > { %v7150_v20 = vpop.permute.xlu1 %7149 }
 0x8d8   : > { %v7152_v21 = vunpack.i.h.bf16 %v7150_v20  ;;  %v7151_v22 = vunpack.i.l.bf16 %v7150_v20  ;;  %6876 = vmatprep.subr.msk.bf16.mxu1 %vm7846_vm4, %v6874_v19 }
 0x8d9   : > { %6879 = vmatpush3.bf16.xpose.msk.msra.mxu1 %vm7846_vm4, %v6874_v19 }
 0x8da   : > { %v6880_v23 = vpack.c.bf16 %v7152_v21, %v7151_v22 }
 0x8dc   : > { %6882 = vmatprep.subr.msk.bf16.mxu1 %vm7846_vm4, %v6880_v23 }
 0x8e1   : > { %6885 = vmatpush3.bf16.xpose.msk.msra.mxu1 %vm7846_vm4, %v6880_v23 }
 0x8e8   : > { %6465 = vmatmul.mubr.msk.f32.vlgmr.msra.gmra.mrb[16].mxu1 %vm472_vm2, %v1392_v24 }
 0x8e9   : > { %6467 = vmatprep.mubr.msk.f32.mxu1 %vm472_vm2, %v1393_v26 }
 0x8ec   : > { %6468 = vmatmul.mubr.msk.f32.gmra.mrb[18].mxu1 %vm472_vm2, %v1394_v27  ;;  %v5938_v27 = vld [vmem:[%s8638_s5 + $0x40] sm:$0xff] }
 0x9bb   : > { %v6466_v28 = vpop.f32.mrb[16].mxu1 }
 0x9bc   : > { %v1493_v29 = vpop.f32.mrb[17].mxu1  ;;  %v1515_v30 = vsel %vm313_vm1, %v6466_v28, -inf }
 0x9bd   : > { %1516 = vmax.xlane.f32.xlu1 %v1515_v30  ;;  %v1512_v31 = vsel %vm313_vm1, %v1493_v29, -inf  ;;  %v5941_v30 = vld [vmem:[%s8638_s5 + $0x58] sm:$0xff] }
 0x9be   : > { %1513 = vmax.xlane.f32.xlu0 %v1512_v31 }
 0x9bf   : > { %v6469_v32 = vpop.f32.mrb[18].mxu1 }
 0x9c0   : > { %v1503_v33 = vpop.f32.mrb[19].mxu1  ;;  %v1521_v8 = vsel %vm313_vm1, %v6469_v32, -inf }
 0x9c1   : > { %v1518_v34 = vsel %vm313_vm1, %v1503_v33, -inf }
 0x9c2   : > { %1519 = vmax.xlane.f32.xlu0 %v1518_v34 }
 0x9c6   : > { %1522 = vmax.xlane.f32.xlu0 %v1521_v8 }
 0xa4a   : > { %v1517_v10 = vpop.xlane.xlu1 %1516 }
 0xa4b   : > { %v1525_v35 = vsub.f32 %v6466_v28, %v1517_v10  ;;  %v1514_v9 = vpop.xlane.xlu0 %1513  ;;  %v5939_v28 = vld [vmem:[%s8638_s5 + $0x48] sm:$0xff] }
 0xa4c   : > { %v1524_v11 = vsub.f32 %v1493_v29, %v1514_v9  ;;  %v5940_v29 = vld [vmem:[%s8638_s5 + $0x50] sm:$0xff] }
 0xa4d   : > { %v1530_v36 = vmul.f32 1.442695, %v1525_v35 }
 0xa4e   : > { %v1528_v37 = vmul.f32 1.442695, %v1524_v11 }
 0xa4f   : > { %7335 = vpow2.f32 %v1530_v36  ;;  %v1520_v38 = vpop.xlane.xlu0 %1519 }
 0xa50   : > { %v1526_v39 = vsub.f32 %v1503_v33, %v1520_v38  ;;  %7337 = vpow2.f32 %v1528_v37 }
 0xa52   : > { %v1532_v45 = vmul.f32 1.442695, %v1526_v39 }
 0xa53   : > { %v1523_v46 = vpop.xlane.xlu0 %1522 }
 0xa54   : > { %v1527_v47 = vsub.f32 %v6469_v32, %v1523_v46  ;;  %7339 = vpow2.f32 %v1532_v45 }
 0xa56   : > { %v1534_v48 = vmul.f32 1.442695, %v1527_v47 }
 0xa58   : > { %7341 = vpow2.f32 %v1534_v48 }
 0xa59   : > { %v7336_v49 = vpop.eup %7335 }
 0xa5a   : > { %v1539_v50 = vsel %vm313_vm1, %v7336_v49, 0.0  ;;  %v7338_v51 = vpop.eup %7337 }
 0xa5b   : > { %1540 = vadd.xlane.f32.xlu0 %v1539_v50  ;;  %v1536_v52 = vsel %vm313_vm1, %v7338_v51, 0.0 }
 0xa5e   : > { %v7340_v53 = vpop.eup %7339 }
 0xa5f   : > { %1537 = vadd.xlane.f32.xlu0 %v1536_v52  ;;  %v1542_v56 = vsel %vm313_vm1, %v7340_v53, 0.0 }
 0xa62   : > { %v7342_v54 = vpop.eup %7341 }
 0xa63   : > { %1543 = vadd.xlane.f32.xlu0 %v1542_v56  ;;  %v1545_v57 = vsel %vm313_vm1, %v7342_v54, 0.0 }
 0xa64   : > { %1546 = vadd.xlane.f32.xlu1 %v1545_v57 }
 0xa75   : > { %7159 = vrot.lane.b32.xlu1 %v7148_v14, %s7623_s25 }
 0xa79   : > { %7154 = vrot.lane.b32.xlu0 %v7941_v4, %s7623_s25  ;;  %1775 = vrot.lane.b32.xlu1 %v7781_v18, %s7623_s25 }
 0xa7d   : > { %1939 = vrot.lane.b32.xlu1 %v7802_v25, %s7625_s22 }
 0xa97   : > { %1665 = vxpose.xlu0.b32.start [1/4] (short) (narrow) %v7917_v40, 8 }
 0xa9b   : > { %1666 = vxpose.xlu0.b32.cont [2/4] (short) (narrow) %v7919_v41, 8 }
 0xa9f   : > { %1667 = vxpose.xlu0.b32.cont [3/4] (short) (narrow) %v7921_v42, 8 }
 0xaa3   : > { %1668 = vxpose.xlu0.b32.end [4/4] (short) (narrow) %v7923_v43, 8 }
 0xae8   : > { %v1541_v58 = vpop.xlane.xlu0 %1540 }
 0xaec   : > { %v1538_v59 = vpop.xlane.xlu0 %1537 }
 0xaed   : > { %7343 = vrcp.f32 %v1538_v59 }
 0xaee   : > { %7345 = vrcp.f32 %v1541_v58 }
 0xaf0   : > { %v1544_v60 = vpop.xlane.xlu0 %1543 }
 0xaf1   : > { %v1547_v61 = vpop.xlane.xlu1 %1546  ;;  %7347 = vrcp.f32 %v1544_v60 }
 0xaf2   : > { %7349 = vrcp.f32 %v1547_v61 }
 0xaf4   : > { %v7155_v62 = vpop.permute.xlu0 %7154 }
 0xaf5   : > { %v7157_v63 = vunpack.i.h.bf16 %v7155_v62  ;;  %v7156_v0 = vunpack.i.l.bf16 %v7155_v62  ;;  %v7160_v1 = vpop.permute.xlu1 %7159 }
 0xaf6   : > { %v7162_v2 = vunpack.i.h.bf16 %v7160_v1  ;;  %v7161_v40 = vunpack.i.l.bf16 %v7160_v1 }
 0xaf7   : > { %v7344_v4 = vpop.eup %7343  ;;  %v6886_v41 = vpack.c.bf16 %v7157_v63, %v7156_v0 }
 0xaf8   : > { %v1552_v5 = vmul.f32 %v7344_v4, %v7338_v51  ;;  %v6890_v42 = vpack.c.bf16 %v7162_v2, %v7161_v40  ;;  %v7346_v43 = vpop.eup %7345 }
 0xaf9   : > { %v1776_v7 = vpop.permute.xlu1 %1775  ;;  %6887 = vmatprep.subr.bf16.mxu0 %v6886_v41  ;;  %v1553_v14 = vmul.f32 %v7346_v43, %v7336_v49 }
 0xafa   : > { %6889 = vmatpush3.bf16.msra.mxu0 %v6886_v41  ;;  %6478 = vmatprep.mubr.msk.f32.mxu0 %vm313_vm1, %v1552_v5 }
 0xafb   : > { %6891 = vmatprep.subr.bf16.mxu0 %v6890_v42  ;;  %v7348_v12 = vpop.eup %7347 }
 0xafc   : > { %v7350_v15 = vpop.eup %7349  ;;  %v1554_v16 = vmul.f32 %v7348_v12, %v7340_v53 }
 0xafd   : > { %v1940_v13 = vpop.permute.xlu1 %1939  ;;  %v1555_v17 = vmul.f32 %v7350_v15, %v7342_v54 }
 0xafe   : > { %6893 = vmatpush3.bf16.msra.mxu0 %v6890_v42  ;;  %6503 = vmatprep.subr.mxu1 %v1940_v13 }
 0xaff   : > { %6504 = vmatpush3.msra.mxu1 %v1940_v13  ;;  %6894 = vmatprep.subr.bf16.mxu0 %v7619_v3 }
 0xb01   : > { %6479 = vmatmul.mubr.msk.f32.vlgmr.msra.gmra.mrb[14].mxu0 %vm313_vm1, %v1553_v14 }
 0xb02   : > { %6481 = vmatprep.mubr.msk.f32.mxu0 %vm313_vm1, %v1554_v16 }
 0xb05   : > { %6482 = vmatmul.mubr.msk.f32.gmra.mrb[16].mxu0 %vm313_vm1, %v1555_v17 }
 0xb06   : > { %6492 = vmatprep.mubr.msk.f32.mxu0 %vm7620_vm0, %v7621_v6 }
 0xb17   : > { %v1681_v26 = vpop.trf.xlu0 }
 0xbd4   : > { %v6480_v19 = vpop.f32.mrb[14].mxu0 }
 0xbd5   : > { %v1646_v20 = vpop.f32.mrb[15].mxu0 }
 0xbd6   : > { %v6895_v21 = vpack.c.bf16 %v6480_v19, %v1646_v20 }
 0xbd8   : > { %v6483_v22 = vpop.f32.mrb[16].mxu0  ;;  %6896 = vmatpush3.bf16.msra.mxu0 %v6895_v21 }
 0xbd9   : > { %v1656_v23 = vpop.f32.mrb[17].mxu0  ;;  %6897 = vmatprep.subr.bf16.mxu0 %v7619_v3 }
 0xbda   : > { %v6898_v24 = vpack.c.bf16 %v6483_v22, %v1656_v23 }
 0xbdc   : > { %6899 = vmatpush3.bf16.msra.mxu0 %v6898_v24 }
 0xbdd   : > { %6495 = vmatprep.subr.msk.mxu0 %vm472_vm2, %v1776_v7 }
 0xbdf   : > { %6493 = vmatmul.mubr.msk.f32.vlgmr.msra.gmra.mrb[18].mxu0 %vm313_vm1, %v1681_v26 }
 0xbe0   : > { %6497 = vmatprep.mubr.msk.f32.mxu0 %vm472_vm2, %v5938_v27 }
 0xbe5   : > { %6496 = vmatpush3.xpose.msk.msra.mxu0 %vm472_vm2, %v1776_v7 }
 0xbe8   : > { %6498 = vmatmul.mubr.msk.f32.vlgmr.msra.gmra.mrb[20].mxu0 %vm472_vm2, %v5939_v28 }
 0xbe9   : > { %6500 = vmatprep.mubr.msk.f32.mxu0 %vm472_vm2, %v5940_v29 }
 0xbec   : > { %6501 = vmatmul.mubr.msk.f32.gmra.mrb[22].mxu0 %vm472_vm2, %v5941_v30 }
 0xcb2   : > { %v8004_v31 = vpop.f32.mrb[18].mxu0 }
 0xcb3   : > { %v6494_v32 = vpop.f32.mrb[19].mxu0 }
 0xcbb   : > { %v6499_v33 = vpop.f32.mrb[20].mxu0 }
 0xcbc   : > { %v1877_v34 = vsel %vm573_vm3, %v6499_v33, -inf  ;;  %v1857_v8 = vpop.f32.mrb[21].mxu0 }
 0xcbd   : > { %v1876_v10 = vsel %vm573_vm3, %v1857_v8, -inf }
 0xcbe   : > { %v1880_v35 = vmax.f32 %v1876_v10, %v1877_v34 }
 0xcbf   : > { %v6502_v9 = vpop.f32.mrb[22].mxu0 }
 0xcc0   : > { %v1879_v11 = vsel %vm573_vm3, %v6502_v9, -inf  ;;  %v1867_v36 = vpop.f32.mrb[23].mxu0 }
 0xcc1   : > { %v1878_v37 = vsel %vm573_vm3, %v1867_v36, -inf }
 0xcc2   : > { %v1881_v38 = vmax.f32 %v1878_v37, %v1879_v11 }
 0xcc4   : > { %v1882_v39 = vmax.f32 %v1880_v35, %v1881_v38 }
 0xcc6   : > { %v1883_v45 = vrot.slane %v1882_v39, 4 }
 0xcc8   : > { %v1884_v46 = vmax.f32 %v1882_v39, %v1883_v45 }
 0xcca   : > { %v1885_v47 = vrot.slane %v1884_v46, 2 }
 0xccc   : > { %v1886_v48 = vmax.f32 %v1884_v46, %v1885_v47 }
 0xcce   : > { %v1887_v49 = vrot.slane %v1886_v48, 1 }
 0xcd0   : > { %v1888_v50 = vmax.f32 %v1886_v48, %v1887_v49 }
 0xcd2   : > { %v1889_v51 = vsub.f32 %v1857_v8, %v1888_v50  ;;  %v1890_v52 = vsub.f32 %v6499_v33, %v1888_v50  ;;  %v1891_v53 = vsub.f32 %v1867_v36, %v1888_v50  ;;  %v1892_v54 = vsub.f32 %v6502_v9, %v1888_v50 }
 0xcd4   : > { %v1893_v56 = vmul.f32 1.442695, %v1889_v51  ;;  %v1895_v57 = vmul.f32 1.442695, %v1890_v52  ;;  %v1897_v58 = vmul.f32 1.442695, %v1891_v53 }
 0xcd5   : > { %v1899_v59 = vmul.f32 1.442695, %v1892_v54 }
 0xcd6   : > { %7351 = vpow2.f32 %v1893_v56 }
 0xcd7   : > { %7353 = vpow2.f32 %v1895_v57 }
 0xcd8   : > { %7355 = vpow2.f32 %v1897_v58 }
 0xcd9   : > { %7357 = vpow2.f32 %v1899_v59 }
 0xce0   : > { %v7352_v60 = vpop.eup %7351 }
 0xce1   : > { %v7354_v61 = vpop.eup %7353  ;;  %v1901_v62 = vsel %vm573_vm3, %v7352_v60, 0.0 }
 0xce2   : > { %v7356_v63 = vpop.eup %7355  ;;  %v1902_v0 = vsel %vm573_vm3, %v7354_v61, 0.0 }
 0xce3   : > { %v7358_v1 = vpop.eup %7357  ;;  %v1903_v2 = vadd.f32 %v1902_v0, %v1901_v62  ;;  %v1904_v40 = vsel %vm573_vm3, %v7356_v63, 0.0 }
 0xce4   : > { %v1906_v41 = vsel %vm573_vm3, %v7358_v1, 0.0 }
 0xce5   : > { %v1905_v4 = vadd.f32 %v1904_v40, %v1903_v2 }
 0xce7   : > { %v1907_v5 = vadd.f32 %v1906_v41, %v1905_v4 }
 0xce9   : > { %v1908_v42 = vrot.slane %v1907_v5, 4 }
 0xceb   : > { %v1909_v7 = vadd.f32 %v1908_v42, %v1907_v5 }
 0xced   : > { %v1910_v43 = vrot.slane %v1909_v7, 2 }
 0xcef   : > { %v1911_v12 = vadd.f32 %v1910_v43, %v1909_v7 }
 0xcf1   : > { %v1912_v13 = vrot.slane %v1911_v12, 1 }
 0xcf3   : > { %v1913_v14 = vadd.f32 %v1912_v13, %v1911_v12 }
 0xcf5   : > { %7359 = vrcp.f32 %v1913_v14 }
 0xcff   : > { %v7360_v15 = vpop.eup %7359 }
 0xd00   : > { %v8014_v16 = vmul.f32 %v7360_v15, %v7352_v60  ;;  %v8016_v17 = vmul.f32 %v7360_v15, %v7356_v63  ;;  %v8018_v19 = vmul.f32 %v7360_v15, %v7354_v61  ;;  %v8020_v20 = vmul.f32 %v7360_v15, %v7358_v1 }
 0xd02   : > { %6505 = vmatprep.mubr.msk.f32.mxu1 %vm573_vm3, %v8014_v16  ;;  %v1925_v21 = vsel %vm573_vm3, %v8016_v17, 0.0  ;;  %v1919_v22 = vsel %vm573_vm3, %v8014_v16, 0.0  ;;  %v1922_v23 = vsel %vm573_vm3, %v8018_v19, 0.0  ;;  %v1928_v24 = vsel %vm573_vm3, %v8020_v20, 0.0 }
 0xd03   : > { %1926 = vadd.xlane.f32.xlu0 %v1925_v21  ;;  %6506 = vmatmul.mubr.msk.f32.vlgmr.msra.gmra.mrb[20].mxu1 %vm573_vm3, %v8018_v19 }
 0xd04   : > { %1920 = vadd.xlane.f32.xlu1 %v1919_v22  ;;  %6508 = vmatprep.mubr.msk.f32.mxu1 %vm573_vm3, %v8016_v17 }
 0xd07   : > { %6509 = vmatmul.mubr.msk.f32.gmra.mrb[22].mxu1 %vm573_vm3, %v8020_v20 }
 0xd08   : > { %1923 = vadd.xlane.f32.xlu1 %v1922_v23 }
 0xd0c   : > { %1929 = vadd.xlane.f32.xlu1 %v1928_v24 }
 0xd90   : > { %v1927_v32 = vpop.xlane.xlu0 %1926 }
 0xd91   : > { %v1921_v26 = vpop.xlane.xlu1 %1920  ;;  %v1933_v34 = vadd.f32 1e-05, %v1927_v32 }
 0xd92   : > { %v1931_v29 = vadd.f32 1e-05, %v1921_v26 }
 0xd95   : > { %v1924_v27 = vpop.xlane.xlu1 %1923 }
 0xd96   : > { %v1932_v28 = vadd.f32 1e-05, %v1924_v27 }
 0xd98   : > { %7361 = vrcp.f32 %v1932_v28 }
 0xd99   : > { %v1930_v30 = vpop.xlane.xlu1 %1929  ;;  %7363 = vrcp.f32 %v1931_v29 }
 0xd9a   : > { %v1934_v33 = vadd.f32 1e-05, %v1930_v30 }
 0xd9c   : > { %7365 = vrcp.f32 %v1934_v33 }
 0xd9d   : > { %7367 = vrcp.f32 %v1933_v34 }
 0xda2   : > { %v7362_v8 = vpop.eup %7361 }
 0xda3   : > { %v7364_v35 = vpop.eup %7363 }
 0xda6   : > { %v7366_v37 = vpop.eup %7365 }
 0xda7   : > { %v7368_v46 = vpop.eup %7367 }
 0xdd6   : > { %v6507_v10 = vpop.f32.mrb[20].mxu1 }
 0xdd7   : > { %v2040_v9 = vmul.f32 %v7362_v8, %v6507_v10  ;;  %v2020_v11 = vpop.f32.mrb[21].mxu1 }
 0xdd8   : > { %v2039_v36 = vmul.f32 %v7364_v35, %v2020_v11 }
 0xdd9   : > { %v2044_v60 = vmul.f32 0.5, %v2040_v9 }
 0xdda   : > { %v2043_v38 = vmul.f32 0.5, %v2039_v36  ;;  %v6510_v39 = vpop.f32.mrb[22].mxu1  ;;  %v8038_v45 = vpack.i.bf16 %v2040_v9, %v2039_v36 }
 0xddb   : > { %v2042_v47 = vmul.f32 %v7366_v37, %v6510_v39  ;;  %v2030_v48 = vpop.f32.mrb[23].mxu1 }
 0xddc   : > { %v2041_v49 = vmul.f32 %v7368_v46, %v2030_v48  ;;  %6519 = vmatprep.mubr.msk.f32.mxu0 %vm472_vm2, %v2043_v38  ;;  %7164 = vrot.lane.b32.xlu1 %v8038_v45, %s7622_s24 }
 0xddd   : > { %v2046_v62 = vmul.f32 0.5, %v2042_v47 }
 0xdde   : > { %v7168_v50 = vpack.i.bf16 %v2042_v47, %v2041_v49  ;;  %v2045_v61 = vmul.f32 0.5, %v2041_v49 }
 0xde0   : > { %7169 = vrot.lane.b32.xlu1 %v7168_v50, %s7622_s24 }
 0xe4e   : > { %v7165_v51 = vpop.permute.xlu1 %7164 }
 0xe4f   : > { %v7167_v52 = vunpack.i.h.bf16 %v7165_v51  ;;  %v7166_v53 = vunpack.i.l.bf16 %v7165_v51 }
 0xe51   : > { %v6900_v54 = vpack.c.bf16 %v7167_v52, %v7166_v53 }
 0xe52   : > { %v7170_v56 = vpop.permute.xlu1 %7169 }
 0xe53   : > { %v7172_v57 = vunpack.i.h.bf16 %v7170_v56  ;;  %v7171_v58 = vunpack.i.l.bf16 %v7170_v56  ;;  %6902 = vmatprep.subr.msk.bf16.mxu0 %vm7846_vm4, %v6900_v54 }
 0xe54   : > { %6905 = vmatpush3.bf16.xpose.msk.msra.mxu0 %vm7846_vm4, %v6900_v54 }
 0xe55   : > { %v6906_v59 = vpack.c.bf16 %v7172_v57, %v7171_v58 }
 0xe57   : > { %6908 = vmatprep.subr.msk.bf16.mxu0 %vm7846_vm4, %v6906_v59 }
 0xe5c   : > { %6911 = vmatpush3.bf16.xpose.msk.msra.mxu0 %vm7846_vm4, %v6906_v59 }
 0xe63   : > { %6520 = vmatmul.mubr.msk.f32.vlgmr.msra.gmra.mrb[24].mxu0 %vm472_vm2, %v2044_v60 }
 0xe64   : > { %6522 = vmatprep.mubr.msk.f32.mxu0 %vm472_vm2, %v2045_v61 }
 0xe67   : > { %6523 = vmatmul.mubr.msk.f32.gmra.mrb[26].mxu0 %vm472_vm2, %v2046_v62 }
 0xf36   : > { %v6521_v63 = vpop.f32.mrb[24].mxu0 }
 0xf37   : > { %v2145_v0 = vpop.f32.mrb[25].mxu0  ;;  %v2167_v1 = vsel %vm313_vm1, %v6521_v63, -inf }
 0xf38   : > { %2168 = vmax.xlane.f32.xlu0 %v2167_v1  ;;  %v2164_v2 = vsel %vm313_vm1, %v2145_v0, -inf  ;;  %v5966_v1 = vld [vmem:[%s8638_s5 + $0x70] sm:$0xff] }
 0xf39   : > { %2165 = vmax.xlane.f32.xlu1 %v2164_v2  ;;  %v5967_v2 = vld [vmem:[%s8638_s5 + $0x78] sm:$0xff] }
 0xf3a   : > { %v6524_v40 = vpop.f32.mrb[26].mxu0 }
 0xf3b   : > { %v2155_v4 = vpop.f32.mrb[27].mxu0  ;;  %v2173_v5 = vsel %vm313_vm1, %v6524_v40, -inf }
 0xf3c   : > { %v2170_v41 = vsel %vm313_vm1, %v2155_v4, -inf }
 0xf3d   : > { %2171 = vmax.xlane.f32.xlu0 %v2170_v41 }
 0xf41   : > { %2174 = vmax.xlane.f32.xlu0 %v2173_v5 }
 0xfc5   : > { %v2169_v42 = vpop.xlane.xlu0 %2168 }
 0xfc6   : > { %v2177_v7 = vsub.f32 %v6521_v63, %v2169_v42  ;;  %v2166_v43 = vpop.xlane.xlu1 %2165  ;;  %v5964_v63 = vld [vmem:[%s8638_s5 + $0x60] sm:$0xff] }
 0xfc7   : > { %v2176_v12 = vsub.f32 %v2145_v0, %v2166_v43  ;;  %v5965_v0 = vld [vmem:[%s8638_s5 + $0x68] sm:$0xff] }
 0xfc8   : > { %v2182_v13 = vmul.f32 1.442695, %v2177_v7 }
 0xfc9   : > { %v2180_v14 = vmul.f32 1.442695, %v2176_v12 }
 0xfca   : > { %7369 = vpow2.f32 %v2182_v13  ;;  %v2172_v15 = vpop.xlane.xlu0 %2171 }
 0xfcb   : > { %v2178_v21 = vsub.f32 %v2155_v4, %v2172_v15  ;;  %7371 = vpow2.f32 %v2180_v14 }
 0xfcd   : > { %v2184_v22 = vmul.f32 1.442695, %v2178_v21 }
 0xfce   : > { %v2175_v23 = vpop.xlane.xlu0 %2174 }
 0xfcf   : > { %7373 = vpow2.f32 %v2184_v22  ;;  %v2179_v24 = vsub.f32 %v6524_v40, %v2175_v23 }
 0xfd1   : > { %v2186_v26 = vmul.f32 1.442695, %v2179_v24 }
 0xfd3   : > { %7375 = vpow2.f32 %v2186_v26 }
 0xfd4   : > { %v7370_v27 = vpop.eup %7369 }
 0xfd5   : > { %v2191_v28 = vsel %vm313_vm1, %v7370_v27, 0.0  ;;  %v7372_v29 = vpop.eup %7371 }
 0xfd6   : > { %2192 = vadd.xlane.f32.xlu0 %v2191_v28  ;;  %v2188_v32 = vsel %vm313_vm1, %v7372_v29, 0.0 }
 0xfd9   : > { %v7374_v30 = vpop.eup %7373 }
 0xfda   : > { %2189 = vadd.xlane.f32.xlu0 %v2188_v32  ;;  %v2194_v33 = vsel %vm313_vm1, %v7374_v30, 0.0 }
 0xfdb   : > { %2195 = vadd.xlane.f32.xlu1 %v2194_v33 }
 0xfdd   : > { %v7376_v34 = vpop.eup %7375 }
 0xfde   : > { %v2197_v8 = vsel %vm313_vm1, %v7376_v34, 0.0 }
 0xfdf   : > { %2198 = vadd.xlane.f32.xlu0 %v2197_v8 }
 0xfec   : > { %7174 = vrot.lane.b32.xlu1 %v8038_v45, %s7623_s25 }
 0xff0   : > { %2427 = vrot.lane.b32.xlu1 %v7781_v18, %s7624_s26 }
 0xff5   : > { %7179 = vrot.lane.b32.xlu0 %v7168_v50, %s7623_s25 }
 0xff9   : > { %2591 = vrot.lane.b32.xlu0 %v7802_v25, %s7626_s21  ;;  %s7628_s21 = smov 80  }
0x1019   : > { %2317 = vxpose.xlu1.b32.start [1/4] (short) (narrow) %v8014_v16, 8 }
0x101d   : > { %2318 = vxpose.xlu1.b32.cont [2/4] (short) (narrow) %v8018_v19, 8 }
0x1021   : > { %2319 = vxpose.xlu1.b32.cont [3/4] (short) (narrow) %v8016_v17, 8 }
0x1025   : > { %2320 = vxpose.xlu1.b32.end [4/4] (short) (narrow) %v8020_v20, 8 }
0x1063   : > { %v2193_v10 = vpop.xlane.xlu0 %2192 }
0x1067   : > { %v2190_v35 = vpop.xlane.xlu0 %2189 }
0x1068   : > { %7377 = vrcp.f32 %v2190_v35  ;;  %v2196_v9 = vpop.xlane.xlu1 %2195 }
0x1069   : > { %7379 = vrcp.f32 %v2193_v10 }
0x106a   : > { %7381 = vrcp.f32 %v2196_v9 }
0x106c   : > { %v7175_v11 = vpop.permute.xlu1 %7174  ;;  %v2199_v36 = vpop.xlane.xlu0 %2198 }
0x106d   : > { %v7177_v37 = vunpack.i.h.bf16 %v7175_v11  ;;  %v7176_v38 = vunpack.i.l.bf16 %v7175_v11  ;;  %7383 = vrcp.f32 %v2199_v36 }
0x106f   : > { %v6912_v39 = vpack.c.bf16 %v7177_v37, %v7176_v38 }
0x1070   : > { %v7180_v45 = vpop.permute.xlu0 %7179  ;;  %v2428_v58 = vpop.permute.xlu1 %2427 }
0x1071   : > { %v7182_v16 = vunpack.i.h.bf16 %v7180_v45  ;;  %v7181_v46 = vunpack.i.l.bf16 %v7180_v45  ;;  %6913 = vmatprep.subr.bf16.mxu1 %v6912_v39 }
0x1072   : > { %v7378_v19 = vpop.eup %7377  ;;  %6915 = vmatpush3.bf16.msra.mxu1 %v6912_v39 }
0x1073   : > { %v6916_v17 = vpack.c.bf16 %v7182_v16, %v7181_v46  ;;  %v2204_v20 = vmul.f32 %v7378_v19, %v7372_v29  ;;  %v7380_v47 = vpop.eup %7379 }
0x1074   : > { %v2592_v48 = vpop.permute.xlu0 %2591  ;;  %v7382_v49 = vpop.eup %7381  ;;  %v2205_v50 = vmul.f32 %v7380_v47, %v7370_v27 }
0x1075   : > { %6917 = vmatprep.subr.bf16.mxu1 %v6916_v17  ;;  %6533 = vmatprep.mubr.msk.f32.mxu1 %vm313_vm1, %v2204_v20  ;;  %v2206_v52 = vmul.f32 %v7382_v49, %v7374_v30 }
0x1076   : > { %6558 = vmatprep.subr.mxu0 %v2592_v48  ;;  %6919 = vmatpush3.bf16.msra.mxu1 %v6916_v17 }
0x1077   : > { %6559 = vmatpush3.msra.mxu0 %v2592_v48  ;;  %6920 = vmatprep.subr.bf16.mxu1 %v7619_v3  ;;  %v7384_v51 = vpop.eup %7383 }
0x1078   : > { %v2207_v53 = vmul.f32 %v7384_v51, %v7376_v34 }
0x1079   : > { %6534 = vmatmul.mubr.msk.f32.vlgmr.msra.gmra.mrb[24].mxu1 %vm313_vm1, %v2205_v50 }
0x107a   : > { %6536 = vmatprep.mubr.msk.f32.mxu1 %vm313_vm1, %v2206_v52 }
0x107d   : > { %6537 = vmatmul.mubr.msk.f32.gmra.mrb[26].mxu1 %vm313_vm1, %v2207_v53 }
0x107e   : > { %6547 = vmatprep.mubr.msk.f32.mxu1 %vm7620_vm0, %v7621_v6 }
0x1099   : > { %v2333_v62 = vpop.trf.xlu1 }
0x114c   : > { %v6535_v54 = vpop.f32.mrb[24].mxu1 }
0x114d   : > { %v2298_v56 = vpop.f32.mrb[25].mxu1 }
0x114e   : > { %v6921_v57 = vpack.c.bf16 %v6535_v54, %v2298_v56 }
0x1150   : > { %v6538_v59 = vpop.f32.mrb[26].mxu1  ;;  %6922 = vmatpush3.bf16.msra.mxu1 %v6921_v57 }
0x1151   : > { %v2308_v60 = vpop.f32.mrb[27].mxu1  ;;  %6923 = vmatprep.subr.bf16.mxu1 %v7619_v3 }
0x1152   : > { %v6924_v61 = vpack.c.bf16 %v6538_v59, %v2308_v60 }
0x1154   : > { %6925 = vmatpush3.bf16.msra.mxu1 %v6924_v61 }
0x1155   : > { %6550 = vmatprep.subr.msk.mxu1 %vm472_vm2, %v2428_v58 }
0x1157   : > { %6548 = vmatmul.mubr.msk.f32.vlgmr.msra.gmra.mrb[28].mxu1 %vm313_vm1, %v2333_v62 }
0x1158   : > { %6552 = vmatprep.mubr.msk.f32.mxu1 %vm472_vm2, %v5964_v63 }
0x115d   : > { %6551 = vmatpush3.xpose.msk.msra.mxu1 %vm472_vm2, %v2428_v58 }
0x1160   : > { %6553 = vmatmul.mubr.msk.f32.vlgmr.msra.gmra.mrb[30].mxu1 %vm472_vm2, %v5965_v0 }
0x1161   : > { %6555 = vmatprep.mubr.msk.f32.mxu1 %vm472_vm2, %v5966_v1 }
0x1164   : > { %6556 = vmatmul.mubr.msk.f32.gmra.mrb[32].mxu1 %vm472_vm2, %v5967_v2 }
0x122a   : > { %v8100_v40 = vpop.f32.mrb[28].mxu1 }
0x122b   : > { %v6549_v4 = vpop.f32.mrb[29].mxu1 }
0x1233   : > { %v6554_v41 = vpop.f32.mrb[30].mxu1 }
0x1234   : > { %v2529_v5 = vsel %vm573_vm3, %v6554_v41, -inf  ;;  %v2509_v42 = vpop.f32.mrb[31].mxu1 }
0x1235   : > { %v2528_v7 = vsel %vm573_vm3, %v2509_v42, -inf }
0x1236   : > { %v2532_v43 = vmax.f32 %v2528_v7, %v2529_v5 }
0x1237   : > { %v6557_v12 = vpop.f32.mrb[32].mxu1 }
0x1238   : > { %v2531_v13 = vsel %vm573_vm3, %v6557_v12, -inf  ;;  %v2519_v14 = vpop.f32.mrb[33].mxu1 }
0x1239   : > { %v2530_v15 = vsel %vm573_vm3, %v2519_v14, -inf }
0x123a   : > { %v2533_v21 = vmax.f32 %v2530_v15, %v2531_v13 }
0x123c   : > { %v2534_v22 = vmax.f32 %v2532_v43, %v2533_v21 }
0x123e   : > { %v2535_v23 = vrot.slane %v2534_v22, 4 }
0x1240   : > { %v2536_v24 = vmax.f32 %v2534_v22, %v2535_v23 }
0x1242   : > { %v2537_v26 = vrot.slane %v2536_v24, 2 }
0x1244   : > { %v2538_v27 = vmax.f32 %v2536_v24, %v2537_v26 }
0x1246   : > { %v2539_v28 = vrot.slane %v2538_v27, 1 }
0x1248   : > { %v2540_v29 = vmax.f32 %v2538_v27, %v2539_v28 }
0x124a   : > { %v2541_v30 = vsub.f32 %v2509_v42, %v2540_v29  ;;  %v2542_v32 = vsub.f32 %v6554_v41, %v2540_v29  ;;  %v2543_v33 = vsub.f32 %v2519_v14, %v2540_v29  ;;  %v2544_v34 = vsub.f32 %v6557_v12, %v2540_v29 }
0x124c   : > { %v2545_v8 = vmul.f32 1.442695, %v2541_v30  ;;  %v2547_v10 = vmul.f32 1.442695, %v2542_v32  ;;  %v2549_v35 = vmul.f32 1.442695, %v2543_v33 }
0x124d   : > { %v2551_v9 = vmul.f32 1.442695, %v2544_v34 }
0x124e   : > { %7385 = vpow2.f32 %v2545_v8 }
0x124f   : > { %7387 = vpow2.f32 %v2547_v10 }
0x1250   : > { %7389 = vpow2.f32 %v2549_v35 }
0x1251   : > { %7391 = vpow2.f32 %v2551_v9 }
0x1258   : > { %v7386_v11 = vpop.eup %7385 }
0x1259   : > { %v7388_v36 = vpop.eup %7387  ;;  %v2553_v37 = vsel %vm573_vm3, %v7386_v11, 0.0 }
0x125a   : > { %v7390_v38 = vpop.eup %7389  ;;  %v2554_v39 = vsel %vm573_vm3, %v7388_v36, 0.0 }
0x125b   : > { %v7392_v45 = vpop.eup %7391  ;;  %v2555_v16 = vadd.f32 %v2554_v39, %v2553_v37  ;;  %v2556_v46 = vsel %vm573_vm3, %v7390_v38, 0.0 }
0x125c   : > { %v2558_v17 = vsel %vm573_vm3, %v7392_v45, 0.0 }
0x125d   : > { %v2557_v19 = vadd.f32 %v2556_v46, %v2555_v16 }
0x125f   : > { %v2559_v20 = vadd.f32 %v2558_v17, %v2557_v19 }
0x1261   : > { %v2560_v47 = vrot.slane %v2559_v20, 4 }
0x1263   : > { %v2561_v48 = vadd.f32 %v2560_v47, %v2559_v20 }
0x1265   : > { %v2562_v49 = vrot.slane %v2561_v48, 2 }
0x1267   : > { %v2563_v50 = vadd.f32 %v2562_v49, %v2561_v48 }
0x1269   : > { %v2564_v51 = vrot.slane %v2563_v50, 1 }
0x126b   : > { %v2565_v52 = vadd.f32 %v2564_v51, %v2563_v50 }
0x126d   : > { %7393 = vrcp.f32 %v2565_v52 }
0x1277   : > { %v7394_v53 = vpop.eup %7393 }
0x1278   : > { %v8110_v54 = vmul.f32 %v7394_v53, %v7386_v11  ;;  %v8112_v56 = vmul.f32 %v7394_v53, %v7388_v36  ;;  %v8114_v57 = vmul.f32 %v7394_v53, %v7390_v38  ;;  %v8116_v58 = vmul.f32 %v7394_v53, %v7392_v45 }
0x127a   : > { %6560 = vmatprep.mubr.msk.f32.mxu0 %vm573_vm3, %v8110_v54  ;;  %v2571_v59 = vsel %vm573_vm3, %v8110_v54, 0.0  ;;  %v2574_v60 = vsel %vm573_vm3, %v8112_v56, 0.0  ;;  %v2577_v61 = vsel %vm573_vm3, %v8114_v57, 0.0  ;;  %v2580_v62 = vsel %vm573_vm3, %v8116_v58, 0.0 }
0x127b   : > { %6561 = vmatmul.mubr.msk.f32.vlgmr.msra.gmra.mrb[28].mxu0 %vm573_vm3, %v8112_v56  ;;  %2572 = vadd.xlane.f32.xlu0 %v2571_v59 }
0x127c   : > { %6563 = vmatprep.mubr.msk.f32.mxu0 %vm573_vm3, %v8114_v57 }
0x127f   : > { %6564 = vmatmul.mubr.msk.f32.gmra.mrb[30].mxu0 %vm573_vm3, %v8116_v58  ;;  %2575 = vadd.xlane.f32.xlu0 %v2574_v60 }
0x1283   : > { %2578 = vadd.xlane.f32.xlu0 %v2577_v61 }
0x1287   : > { %2581 = vadd.xlane.f32.xlu0 %v2580_v62 }
0x1308   : > { %v2573_v63 = vpop.xlane.xlu0 %2572 }
0x1309   : > { %v2583_v4 = vadd.f32 1e-05, %v2573_v63 }
0x130c   : > { %v2576_v0 = vpop.xlane.xlu0 %2575 }
0x130d   : > { %v2584_v2 = vadd.f32 1e-05, %v2576_v0 }
0x130f   : > { %7395 = vrcp.f32 %v2584_v2 }
0x1310   : > { %v2579_v1 = vpop.xlane.xlu0 %2578  ;;  %7397 = vrcp.f32 %v2583_v4 }
0x1311   : > { %v2585_v42 = vadd.f32 1e-05, %v2579_v1 }
0x1314   : > { %v2582_v41 = vpop.xlane.xlu0 %2581 }
0x1315   : > { %v2586_v5 = vadd.f32 1e-05, %v2582_v41 }
0x1317   : > { %7399 = vrcp.f32 %v2586_v5 }
0x1318   : > { %7401 = vrcp.f32 %v2585_v42 }
0x1319   : > { %v7396_v7 = vpop.eup %7395 }
0x131a   : > { %v7398_v12 = vpop.eup %7397 }
0x1321   : > { %v7400_v21 = vpop.eup %7399 }
0x1322   : > { %v7402_v26 = vpop.eup %7401 }
0x134e   : > { %v6562_v43 = vpop.f32.mrb[28].mxu0 }
0x134f   : > { %v2692_v13 = vmul.f32 %v7396_v7, %v6562_v43  ;;  %v2672_v14 = vpop.f32.mrb[29].mxu0 }
0x1350   : > { %v2691_v15 = vmul.f32 %v7398_v12, %v2672_v14 }
0x1351   : > { %v2696_v36 = vmul.f32 0.5, %v2692_v13 }
0x1352   : > { %v2695_v22 = vmul.f32 0.5, %v2691_v15  ;;  %v6565_v23 = vpop.f32.mrb[30].mxu0  ;;  %v8134_v24 = vpack.i.bf16 %v2692_v13, %v2691_v15 }
0x1353   : > { %v2694_v27 = vmul.f32 %v7400_v21, %v6565_v23  ;;  %v2682_v28 = vpop.f32.mrb[31].mxu0 }
0x1354   : > { %v2693_v29 = vmul.f32 %v7402_v26, %v2682_v28  ;;  %6574 = vmatprep.mubr.msk.f32.mxu1 %vm472_vm2, %v2695_v22  ;;  %7184 = vrot.lane.b32.xlu0 %v8134_v24, %s7622_s24 }
0x1355   : > { %v2698_v38 = vmul.f32 0.5, %v2694_v27 }
0x1356   : > { %v7188_v30 = vpack.i.bf16 %v2694_v27, %v2693_v29  ;;  %v2697_v37 = vmul.f32 0.5, %v2693_v29 }
0x1358   : > { %7189 = vrot.lane.b32.xlu1 %v7188_v30, %s7622_s24 }
0x13c6   : > { %v7185_v32 = vpop.permute.xlu0 %7184 }
0x13c7   : > { %v7187_v33 = vunpack.i.h.bf16 %v7185_v32  ;;  %v7186_v34 = vunpack.i.l.bf16 %v7185_v32 }
0x13c9   : > { %v6926_v8 = vpack.c.bf16 %v7187_v33, %v7186_v34 }
0x13ca   : > { %v7190_v10 = vpop.permute.xlu1 %7189 }
0x13cb   : > { %v7192_v35 = vunpack.i.h.bf16 %v7190_v10  ;;  %v7191_v9 = vunpack.i.l.bf16 %v7190_v10  ;;  %6928 = vmatprep.subr.msk.bf16.mxu1 %vm7846_vm4, %v6926_v8 }
0x13cc   : > { %6931 = vmatpush3.bf16.xpose.msk.msra.mxu1 %vm7846_vm4, %v6926_v8 }
0x13cd   : > { %v6932_v11 = vpack.c.bf16 %v7192_v35, %v7191_v9 }
0x13cf   : > { %6934 = vmatprep.subr.msk.bf16.mxu1 %vm7846_vm4, %v6932_v11 }
0x13d4   : > { %6937 = vmatpush3.bf16.xpose.msk.msra.mxu1 %vm7846_vm4, %v6932_v11 }
0x13db   : > { %6575 = vmatmul.mubr.msk.f32.vlgmr.msra.gmra.mrb[34].mxu1 %vm472_vm2, %v2696_v36 }
0x13dc   : > { %6577 = vmatprep.mubr.msk.f32.mxu1 %vm472_vm2, %v2697_v37 }
0x13df   : > { %6578 = vmatmul.mubr.msk.f32.gmra.mrb[36].mxu1 %vm472_vm2, %v2698_v38 }
0x14ae   : > { %v6576_v39 = vpop.f32.mrb[34].mxu1 }
0x14af   : > { %v2797_v45 = vpop.f32.mrb[35].mxu1  ;;  %v2819_v16 = vsel %vm313_vm1, %v6576_v39, -inf }
0x14b0   : > { %2820 = vmax.xlane.f32.xlu1 %v2819_v16  ;;  %v2816_v46 = vsel %vm313_vm1, %v2797_v45, -inf  ;;  %v5991_v16 = vld [vmem:[%s8638_s5 + $0x88] sm:$0xff] }
0x14b1   : > { %2817 = vmax.xlane.f32.xlu0 %v2816_v46  ;;  %v5992_v46 = vld [vmem:[%s8638_s5 + $0x90] sm:$0xff] }
0x14b2   : > { %v6579_v19 = vpop.f32.mrb[36].mxu1 }
0x14b3   : > { %v2807_v17 = vpop.f32.mrb[37].mxu1  ;;  %v2825_v47 = vsel %vm313_vm1, %v6579_v19, -inf }
0x14b4   : > { %v2822_v20 = vsel %vm313_vm1, %v2807_v17, -inf }
0x14b5   : > { %2823 = vmax.xlane.f32.xlu0 %v2822_v20 }
0x14b9   : > { %2826 = vmax.xlane.f32.xlu0 %v2825_v47 }
0x153d   : > { %v2821_v48 = vpop.xlane.xlu1 %2820 }
0x153e   : > { %v2829_v49 = vsub.f32 %v6576_v39, %v2821_v48  ;;  %v2818_v50 = vpop.xlane.xlu0 %2817 }
0x153f   : > { %v2828_v51 = vsub.f32 %v2797_v45, %v2818_v50  ;;  %v5990_v45 = vld [vmem:[%s8638_s5 + $0x80] sm:$0xff] }
0x1540   : > { %v2834_v52 = vmul.f32 1.442695, %v2829_v49 }
0x1541   : > { %v2832_v53 = vmul.f32 1.442695, %v2828_v51 }
0x1542   : > { %7403 = vpow2.f32 %v2834_v52  ;;  %v2824_v59 = vpop.xlane.xlu0 %2823 }
0x1543   : > { %v2830_v60 = vsub.f32 %v2807_v17, %v2824_v59  ;;  %7405 = vpow2.f32 %v2832_v53 }
0x1545   : > { %v2836_v61 = vmul.f32 1.442695, %v2830_v60 }
0x1546   : > { %v2827_v62 = vpop.xlane.xlu0 %2826 }
0x1547   : > { %v2831_v63 = vsub.f32 %v6579_v19, %v2827_v62  ;;  %7407 = vpow2.f32 %v2836_v61  ;;  %v5993_v19 = vld [vmem:[%s8638_s5 + $0x98] sm:$0xff] }
0x1549   : > { %v2838_v0 = vmul.f32 1.442695, %v2831_v63 }
0x154b   : > { %7409 = vpow2.f32 %v2838_v0 }
0x154c   : > { %v7404_v1 = vpop.eup %7403 }
0x154d   : > { %v2843_v2 = vsel %vm313_vm1, %v7404_v1, 0.0  ;;  %v7406_v4 = vpop.eup %7405 }
0x154e   : > { %2844 = vadd.xlane.f32.xlu0 %v2843_v2  ;;  %v2840_v41 = vsel %vm313_vm1, %v7406_v4, 0.0 }
0x1551   : > { %v7408_v5 = vpop.eup %7407 }
0x1552   : > { %2841 = vadd.xlane.f32.xlu0 %v2840_v41  ;;  %v2846_v7 = vsel %vm313_vm1, %v7408_v5, 0.0 }
0x1555   : > { %v7410_v42 = vpop.eup %7409 }
0x1556   : > { %2847 = vadd.xlane.f32.xlu0 %v2846_v7  ;;  %v2849_v43 = vsel %vm313_vm1, %v7410_v42, 0.0 }
0x1557   : > { %2850 = vadd.xlane.f32.xlu1 %v2849_v43 }
0x1568   : > { %7199 = vrot.lane.b32.xlu1 %v7188_v30, %s7623_s25 }
0x156c   : > { %7194 = vrot.lane.b32.xlu0 %v8134_v24, %s7623_s25  ;;  %3079 = vrot.lane.b32.xlu1 %v7781_v18, %s7627_s20  ;;  %s7629_s20 = smov 108  }
0x1570   : > { %3243 = vrot.lane.b32.xlu1 %v7802_v25, %s7628_s21  ;;  %s7630_s21 = smov 68  }
0x158a   : > { %2969 = vxpose.xlu0.b32.start [1/4] (short) (narrow) %v8110_v54, 8 }
0x158e   : > { %2970 = vxpose.xlu0.b32.cont [2/4] (short) (narrow) %v8112_v56, 8 }
0x1592   : > { %2971 = vxpose.xlu0.b32.cont [3/4] (short) (narrow) %v8114_v57, 8 }
0x1596   : > { %2972 = vxpose.xlu0.b32.end [4/4] (short) (narrow) %v8116_v58, 8 }
0x15db   : > { %v2845_v12 = vpop.xlane.xlu0 %2844 }
0x15df   : > { %v2842_v13 = vpop.xlane.xlu0 %2841 }
0x15e0   : > { %7411 = vrcp.f32 %v2842_v13 }
0x15e1   : > { %7413 = vrcp.f32 %v2845_v12 }
0x15e3   : > { %v2848_v14 = vpop.xlane.xlu0 %2847 }
0x15e4   : > { %v2851_v15 = vpop.xlane.xlu1 %2850  ;;  %7415 = vrcp.f32 %v2848_v14 }
0x15e5   : > { %7417 = vrcp.f32 %v2851_v15 }
0x15e7   : > { %v7195_v21 = vpop.permute.xlu0 %7194 }
0x15e8   : > { %v7197_v22 = vunpack.i.h.bf16 %v7195_v21  ;;  %v7196_v23 = vunpack.i.l.bf16 %v7195_v21  ;;  %v7200_v24 = vpop.permute.xlu1 %7199 }
0x15e9   : > { %v7202_v26 = vunpack.i.h.bf16 %v7200_v24  ;;  %v7201_v54 = vunpack.i.l.bf16 %v7200_v24 }
0x15ea   : > { %v7412_v27 = vpop.eup %7411  ;;  %v6938_v56 = vpack.c.bf16 %v7197_v22, %v7196_v23 }
0x15eb   : > { %v6942_v28 = vpack.c.bf16 %v7202_v26, %v7201_v54  ;;  %v2856_v57 = vmul.f32 %v7412_v27, %v7406_v4  ;;  %v7414_v58 = vpop.eup %7413 }
0x15ec   : > { %v3080_v29 = vpop.permute.xlu1 %3079  ;;  %6939 = vmatprep.subr.bf16.mxu0 %v6938_v56  ;;  %v2857_v33 = vmul.f32 %v7414_v58, %v7404_v1 }
0x15ed   : > { %6941 = vmatpush3.bf16.msra.mxu0 %v6938_v56  ;;  %6588 = vmatprep.mubr.msk.f32.mxu0 %vm313_vm1, %v2856_v57 }
0x15ee   : > { %6943 = vmatprep.subr.bf16.mxu0 %v6942_v28  ;;  %v7416_v30 = vpop.eup %7415 }
0x15ef   : > { %v7418_v34 = vpop.eup %7417  ;;  %v2858_v8 = vmul.f32 %v7416_v30, %v7408_v5 }
0x15f0   : > { %v3244_v32 = vpop.permute.xlu1 %3243  ;;  %v2859_v10 = vmul.f32 %v7418_v34, %v7410_v42 }
0x15f1   : > { %6945 = vmatpush3.bf16.msra.mxu0 %v6942_v28  ;;  %6613 = vmatprep.subr.mxu1 %v3244_v32 }
0x15f2   : > { %6614 = vmatpush3.msra.mxu1 %v3244_v32  ;;  %6946 = vmatprep.subr.bf16.mxu0 %v7619_v3 }
0x15f4   : > { %6589 = vmatmul.mubr.msk.f32.vlgmr.msra.gmra.mrb[32].mxu0 %vm313_vm1, %v2857_v33 }
0x15f5   : > { %6591 = vmatprep.mubr.msk.f32.mxu0 %vm313_vm1, %v2858_v8 }
0x15f8   : > { %6592 = vmatmul.mubr.msk.f32.gmra.mrb[34].mxu0 %vm313_vm1, %v2859_v10 }
0x15f9   : > { %6602 = vmatprep.mubr.msk.f32.mxu0 %vm7620_vm0, %v7621_v6 }
0x160a   : > { %v2985_v39 = vpop.trf.xlu0 }
0x16c7   : > { %v6590_v35 = vpop.f32.mrb[32].mxu0 }
0x16c8   : > { %v2950_v9 = vpop.f32.mrb[33].mxu0 }
0x16c9   : > { %v6947_v11 = vpack.c.bf16 %v6590_v35, %v2950_v9 }
0x16cb   : > { %v6593_v36 = vpop.f32.mrb[34].mxu0  ;;  %6948 = vmatpush3.bf16.msra.mxu0 %v6947_v11 }
0x16cc   : > { %v2960_v37 = vpop.f32.mrb[35].mxu0  ;;  %6949 = vmatprep.subr.bf16.mxu0 %v7619_v3 }
0x16cd   : > { %v6950_v38 = vpack.c.bf16 %v6593_v36, %v2960_v37 }
0x16cf   : > { %6951 = vmatpush3.bf16.msra.mxu0 %v6950_v38 }
0x16d0   : > { %6605 = vmatprep.subr.msk.mxu0 %vm472_vm2, %v3080_v29 }
0x16d2   : > { %6603 = vmatmul.mubr.msk.f32.vlgmr.msra.gmra.mrb[36].mxu0 %vm313_vm1, %v2985_v39 }
0x16d3   : > { %6607 = vmatprep.mubr.msk.f32.mxu0 %vm472_vm2, %v5990_v45 }
0x16d8   : > { %6606 = vmatpush3.xpose.msk.msra.mxu0 %vm472_vm2, %v3080_v29 }
0x16db   : > { %6608 = vmatmul.mubr.msk.f32.vlgmr.msra.gmra.mrb[38].mxu0 %vm472_vm2, %v5991_v16 }
0x16dc   : > { %6610 = vmatprep.mubr.msk.f32.mxu0 %vm472_vm2, %v5992_v46 }
0x16df   : > { %6611 = vmatmul.mubr.msk.f32.gmra.mrb[40].mxu0 %vm472_vm2, %v5993_v19 }
0x17a5   : > { %v8195_v17 = vpop.f32.mrb[36].mxu0 }
0x17a6   : > { %v6604_v20 = vpop.f32.mrb[37].mxu0 }
0x17ae   : > { %v6609_v47 = vpop.f32.mrb[38].mxu0 }
0x17af   : > { %v3181_v48 = vsel %vm573_vm3, %v6609_v47, -inf  ;;  %v3161_v49 = vpop.f32.mrb[39].mxu0 }
0x17b0   : > { %v3180_v50 = vsel %vm573_vm3, %v3161_v49, -inf }
0x17b1   : > { %v3184_v51 = vmax.f32 %v3180_v50, %v3181_v48 }
0x17b2   : > { %v6612_v52 = vpop.f32.mrb[40].mxu0 }
0x17b3   : > { %v3183_v53 = vsel %vm573_vm3, %v6612_v52, -inf  ;;  %v3171_v59 = vpop.f32.mrb[41].mxu0 }
0x17b4   : > { %v3182_v60 = vsel %vm573_vm3, %v3171_v59, -inf }
0x17b5   : > { %v3185_v61 = vmax.f32 %v3182_v60, %v3183_v53 }
0x17b7   : > { %v3186_v62 = vmax.f32 %v3184_v51, %v3185_v61 }
0x17b9   : > { %v3187_v63 = vrot.slane %v3186_v62, 4 }
0x17bb   : > { %v3188_v0 = vmax.f32 %v3186_v62, %v3187_v63 }
0x17bd   : > { %v3189_v1 = vrot.slane %v3188_v0, 2 }
0x17bf   : > { %v3190_v2 = vmax.f32 %v3188_v0, %v3189_v1 }
0x17c1   : > { %v3191_v4 = vrot.slane %v3190_v2, 1 }
0x17c3   : > { %v3192_v41 = vmax.f32 %v3190_v2, %v3191_v4 }
0x17c5   : > { %v3193_v5 = vsub.f32 %v3161_v49, %v3192_v41  ;;  %v3194_v42 = vsub.f32 %v6609_v47, %v3192_v41  ;;  %v3195_v7 = vsub.f32 %v3171_v59, %v3192_v41  ;;  %v3196_v43 = vsub.f32 %v6612_v52, %v3192_v41 }
0x17c7   : > { %v3197_v12 = vmul.f32 1.442695, %v3193_v5  ;;  %v3199_v13 = vmul.f32 1.442695, %v3194_v42  ;;  %v3201_v14 = vmul.f32 1.442695, %v3195_v7 }
0x17c8   : > { %v3203_v15 = vmul.f32 1.442695, %v3196_v43 }
0x17c9   : > { %7419 = vpow2.f32 %v3197_v12 }
0x17ca   : > { %7421 = vpow2.f32 %v3199_v13 }
0x17cb   : > { %7423 = vpow2.f32 %v3201_v14 }
0x17cc   : > { %7425 = vpow2.f32 %v3203_v15 }
0x17d3   : > { %v7420_v21 = vpop.eup %7419 }
0x17d4   : > { %v7422_v22 = vpop.eup %7421  ;;  %v3205_v23 = vsel %vm573_vm3, %v7420_v21, 0.0 }
0x17d5   : > { %v7424_v24 = vpop.eup %7423  ;;  %v3206_v26 = vsel %vm573_vm3, %v7422_v22, 0.0 }
0x17d6   : > { %v7426_v54 = vpop.eup %7425  ;;  %v3207_v27 = vadd.f32 %v3206_v26, %v3205_v23  ;;  %v3208_v56 = vsel %vm573_vm3, %v7424_v24, 0.0 }
0x17d7   : > { %v3210_v57 = vsel %vm573_vm3, %v7426_v54, 0.0 }
0x17d8   : > { %v3209_v28 = vadd.f32 %v3208_v56, %v3207_v27 }
0x17da   : > { %v3211_v29 = vadd.f32 %v3210_v57, %v3209_v28 }
0x17dc   : > { %v3212_v58 = vrot.slane %v3211_v29, 4 }
0x17de   : > { %v3213_v30 = vadd.f32 %v3212_v58, %v3211_v29 }
0x17e0   : > { %v3214_v32 = vrot.slane %v3213_v30, 2 }
0x17e2   : > { %v3215_v33 = vadd.f32 %v3214_v32, %v3213_v30 }
0x17e4   : > { %v3216_v34 = vrot.slane %v3215_v33, 1 }
0x17e6   : > { %v3217_v8 = vadd.f32 %v3216_v34, %v3215_v33 }
0x17e8   : > { %7427 = vrcp.f32 %v3217_v8 }
0x17f2   : > { %v7428_v10 = vpop.eup %7427 }
0x17f3   : > { %v8205_v35 = vmul.f32 %v7428_v10, %v7420_v21  ;;  %v8207_v9 = vmul.f32 %v7428_v10, %v7424_v24  ;;  %v8209_v11 = vmul.f32 %v7428_v10, %v7422_v22  ;;  %v8211_v36 = vmul.f32 %v7428_v10, %v7426_v54 }
0x17f5   : > { %6615 = vmatprep.mubr.msk.f32.mxu1 %vm573_vm3, %v8205_v35  ;;  %v3229_v37 = vsel %vm573_vm3, %v8207_v9, 0.0  ;;  %v3223_v38 = vsel %vm573_vm3, %v8205_v35, 0.0  ;;  %v3226_v39 = vsel %vm573_vm3, %v8209_v11, 0.0  ;;  %v3232_v45 = vsel %vm573_vm3, %v8211_v36, 0.0 }
0x17f6   : > { %3230 = vadd.xlane.f32.xlu0 %v3229_v37  ;;  %6616 = vmatmul.mubr.msk.f32.vlgmr.msra.gmra.mrb[38].mxu1 %vm573_vm3, %v8209_v11 }
0x17f7   : > { %3224 = vadd.xlane.f32.xlu1 %v3223_v38  ;;  %6618 = vmatprep.mubr.msk.f32.mxu1 %vm573_vm3, %v8207_v9 }
0x17fa   : > { %6619 = vmatmul.mubr.msk.f32.gmra.mrb[40].mxu1 %vm573_vm3, %v8211_v36 }
0x17fb   : > { %3227 = vadd.xlane.f32.xlu1 %v3226_v39 }
0x17ff   : > { %3233 = vadd.xlane.f32.xlu1 %v3232_v45 }
0x1883   : > { %v3231_v48 = vpop.xlane.xlu0 %3230 }
0x1884   : > { %v3225_v16 = vpop.xlane.xlu1 %3224  ;;  %v3237_v50 = vadd.f32 1e-05, %v3231_v48 }
0x1885   : > { %v3235_v20 = vadd.f32 1e-05, %v3225_v16 }
0x1888   : > { %v3228_v46 = vpop.xlane.xlu1 %3227 }
0x1889   : > { %v3236_v19 = vadd.f32 1e-05, %v3228_v46 }
0x188b   : > { %7429 = vrcp.f32 %v3236_v19 }
0x188c   : > { %v3234_v47 = vpop.xlane.xlu1 %3233  ;;  %7431 = vrcp.f32 %v3235_v20 }
0x188d   : > { %v3238_v49 = vadd.f32 1e-05, %v3234_v47 }
0x188f   : > { %7433 = vrcp.f32 %v3238_v49 }
0x1890   : > { %7435 = vrcp.f32 %v3237_v50 }
0x1895   : > { %v7430_v51 = vpop.eup %7429 }
0x1896   : > { %v7432_v53 = vpop.eup %7431 }
0x1899   : > { %v7434_v62 = vpop.eup %7433 }
0x189a   : > { %v7436_v2 = vpop.eup %7435 }
0x18c9   : > { %v6617_v52 = vpop.f32.mrb[38].mxu1 }
0x18ca   : > { %v3344_v59 = vmul.f32 %v7430_v51, %v6617_v52  ;;  %v3324_v60 = vpop.f32.mrb[39].mxu1 }
0x18cb   : > { %v3343_v61 = vmul.f32 %v7432_v53, %v3324_v60 }
0x18cc   : > { %v3348_v23 = vmul.f32 0.5, %v3344_v59 }
0x18cd   : > { %v3347_v63 = vmul.f32 0.5, %v3343_v61  ;;  %v6620_v0 = vpop.f32.mrb[40].mxu1  ;;  %v8229_v1 = vpack.i.bf16 %v3344_v59, %v3343_v61 }
0x18ce   : > { %v3346_v4 = vmul.f32 %v7434_v62, %v6620_v0  ;;  %v3334_v41 = vpop.f32.mrb[41].mxu1 }
0x18cf   : > { %v3345_v5 = vmul.f32 %v7436_v2, %v3334_v41  ;;  %6629 = vmatprep.mubr.msk.f32.mxu0 %vm472_vm2, %v3347_v63  ;;  %7204 = vrot.lane.b32.xlu1 %v8229_v1, %s7622_s24 }
0x18d0   : > { %v3350_v26 = vmul.f32 0.5, %v3346_v4 }
0x18d1   : > { %v7218_v42 = vpack.i.bf16 %v3346_v4, %v3345_v5  ;;  %v3349_v24 = vmul.f32 0.5, %v3345_v5 }
0x18d3   : > { %7209 = vrot.lane.b32.xlu1 %v7218_v42, %s7622_s24 }
0x1941   : > { %v7205_v7 = vpop.permute.xlu1 %7204 }
0x1942   : > { %v7207_v43 = vunpack.i.h.bf16 %v7205_v7  ;;  %v7206_v12 = vunpack.i.l.bf16 %v7205_v7 }
0x1944   : > { %v6952_v13 = vpack.c.bf16 %v7207_v43, %v7206_v12 }
0x1945   : > { %v7210_v14 = vpop.permute.xlu1 %7209 }
0x1946   : > { %v7212_v15 = vunpack.i.h.bf16 %v7210_v14  ;;  %v7211_v21 = vunpack.i.l.bf16 %v7210_v14  ;;  %6954 = vmatprep.subr.msk.bf16.mxu0 %vm7846_vm4, %v6952_v13 }
0x1947   : > { %6957 = vmatpush3.bf16.xpose.msk.msra.mxu0 %vm7846_vm4, %v6952_v13 }
0x1948   : > { %v6958_v22 = vpack.c.bf16 %v7212_v15, %v7211_v21 }
0x194a   : > { %6960 = vmatprep.subr.msk.bf16.mxu0 %vm7846_vm4, %v6958_v22 }
0x194f   : > { %6963 = vmatpush3.bf16.xpose.msk.msra.mxu0 %vm7846_vm4, %v6958_v22 }
0x1956   : > { %6630 = vmatmul.mubr.msk.f32.vlgmr.msra.gmra.mrb[42].mxu0 %vm472_vm2, %v3348_v23 }
0x1957   : > { %6632 = vmatprep.mubr.msk.f32.mxu0 %vm472_vm2, %v3349_v24 }
0x195a   : > { %6633 = vmatmul.mubr.msk.f32.gmra.mrb[44].mxu0 %vm472_vm2, %v3350_v26 }
0x1a29   : > { %v6631_v54 = vpop.f32.mrb[42].mxu0 }
0x1a2a   : > { %v3449_v27 = vpop.f32.mrb[43].mxu0  ;;  %v3471_v56 = vsel %vm313_vm1, %v6631_v54, -inf }
0x1a2b   : > { %3472 = vmax.xlane.f32.xlu0 %v3471_v56  ;;  %v3468_v28 = vsel %vm313_vm1, %v3449_v27, -inf  ;;  %v6016_v56 = vld [vmem:[%s8638_s5 + $0xa0] sm:$0xff] }
0x1a2c   : > { %3469 = vmax.xlane.f32.xlu1 %v3468_v28  ;;  %v6017_v28 = vld [vmem:[%s8638_s5 + $0xa8] sm:$0xff] }
0x1a2d   : > { %v6634_v57 = vpop.f32.mrb[44].mxu0 }
0x1a2e   : > { %v3459_v29 = vpop.f32.mrb[45].mxu0  ;;  %v3477_v30 = vsel %vm313_vm1, %v6634_v57, -inf }
0x1a2f   : > { %v3474_v58 = vsel %vm313_vm1, %v3459_v29, -inf }
0x1a30   : > { %3475 = vmax.xlane.f32.xlu0 %v3474_v58 }
0x1a34   : > { %3478 = vmax.xlane.f32.xlu0 %v3477_v30 }
0x1ab8   : > { %v3473_v32 = vpop.xlane.xlu0 %3472 }
0x1ab9   : > { %v3481_v33 = vsub.f32 %v6631_v54, %v3473_v32  ;;  %v3470_v34 = vpop.xlane.xlu1 %3469 }
0x1aba   : > { %v3480_v8 = vsub.f32 %v3449_v27, %v3470_v34 }
0x1abb   : > { %v3486_v10 = vmul.f32 1.442695, %v3481_v33 }
0x1abc   : > { %v3484_v37 = vmul.f32 1.442695, %v3480_v8 }
0x1abd   : > { %7437 = vpow2.f32 %v3486_v10  ;;  %v3476_v38 = vpop.xlane.xlu0 %3475 }
0x1abe   : > { %v3482_v39 = vsub.f32 %v3459_v29, %v3476_v38  ;;  %7439 = vpow2.f32 %v3484_v37  ;;  %v6019_v29 = vld [vmem:[%s8638_s5 + $0xb8] sm:$0xff] }
0x1ac0   : > { %v3488_v45 = vmul.f32 1.442695, %v3482_v39 }
0x1ac1   : > { %v3479_v16 = vpop.xlane.xlu0 %3478 }
0x1ac2   : > { %7441 = vpow2.f32 %v3488_v45  ;;  %v3483_v46 = vsub.f32 %v6634_v57, %v3479_v16  ;;  %v6018_v57 = vld [vmem:[%s8638_s5 + $0xb0] sm:$0xff] }
0x1ac4   : > { %v3490_v19 = vmul.f32 1.442695, %v3483_v46 }
0x1ac6   : > { %7443 = vpow2.f32 %v3490_v19 }
0x1ac7   : > { %v7438_v20 = vpop.eup %7437 }
0x1ac8   : > { %v3495_v47 = vsel %vm313_vm1, %v7438_v20, 0.0  ;;  %v7440_v48 = vpop.eup %7439 }
0x1ac9   : > { %3496 = vadd.xlane.f32.xlu0 %v3495_v47  ;;  %v3492_v50 = vsel %vm313_vm1, %v7440_v48, 0.0 }
0x1acc   : > { %v7442_v49 = vpop.eup %7441 }
0x1acd   : > { %3493 = vadd.xlane.f32.xlu0 %v3492_v50  ;;  %v3498_v51 = vsel %vm313_vm1, %v7442_v49, 0.0 }
0x1ace   : > { %3499 = vadd.xlane.f32.xlu1 %v3498_v51 }
0x1ad0   : > { %v7444_v52 = vpop.eup %7443 }
0x1ad1   : > { %v3501_v53 = vsel %vm313_vm1, %v7444_v52, 0.0 }
0x1ad2   : > { %3502 = vadd.xlane.f32.xlu0 %v3501_v53 }
0x1adf   : > { %7214 = vrot.lane.b32.xlu1 %v8229_v1, %s7623_s25 }
0x1ae3   : > { %3731 = vrot.lane.b32.xlu1 %v7781_v18, %s7629_s20  ;;  %s7631_s20 = smov 56  }
0x1ae8   : > { %7219 = vrot.lane.b32.xlu0 %v7218_v42, %s7623_s25 }
0x1aec   : > { %3895 = vrot.lane.b32.xlu0 %v7802_v25, %s7630_s21 }
0x1b0c   : > { %3621 = vxpose.xlu1.b32.start [1/4] (short) (narrow) %v8205_v35, 8 }
0x1b10   : > { %3622 = vxpose.xlu1.b32.cont [2/4] (short) (narrow) %v8209_v11, 8 }
0x1b14   : > { %3623 = vxpose.xlu1.b32.cont [3/4] (short) (narrow) %v8207_v9, 8 }
0x1b18   : > { %3624 = vxpose.xlu1.b32.end [4/4] (short) (narrow) %v8211_v36, 8 }
0x1b56   : > { %v3497_v59 = vpop.xlane.xlu0 %3496 }
0x1b5a   : > { %v3494_v60 = vpop.xlane.xlu0 %3493 }
0x1b5b   : > { %7445 = vrcp.f32 %v3494_v60  ;;  %v3500_v61 = vpop.xlane.xlu1 %3499 }
0x1b5c   : > { %7447 = vrcp.f32 %v3497_v59 }
0x1b5d   : > { %7449 = vrcp.f32 %v3500_v61 }
0x1b5f   : > { %v7215_v62 = vpop.permute.xlu1 %7214  ;;  %v3503_v63 = vpop.xlane.xlu0 %3502 }
0x1b60   : > { %v7217_v0 = vunpack.i.h.bf16 %v7215_v62  ;;  %v7216_v1 = vunpack.i.l.bf16 %v7215_v62  ;;  %7451 = vrcp.f32 %v3503_v63 }
0x1b62   : > { %v6964_v2 = vpack.c.bf16 %v7217_v0, %v7216_v1 }
0x1b63   : > { %v7220_v4 = vpop.permute.xlu0 %7219  ;;  %v3732_v23 = vpop.permute.xlu1 %3731 }
0x1b64   : > { %v7222_v35 = vunpack.i.h.bf16 %v7220_v4  ;;  %v7221_v41 = vunpack.i.l.bf16 %v7220_v4  ;;  %6965 = vmatprep.subr.bf16.mxu1 %v6964_v2 }
0x1b65   : > { %v7446_v11 = vpop.eup %7445  ;;  %6967 = vmatpush3.bf16.msra.mxu1 %v6964_v2 }
0x1b66   : > { %v6968_v9 = vpack.c.bf16 %v7222_v35, %v7221_v41  ;;  %v3508_v36 = vmul.f32 %v7446_v11, %v7440_v48  ;;  %v7448_v5 = vpop.eup %7447 }
0x1b67   : > { %v3896_v42 = vpop.permute.xlu0 %3895  ;;  %v7450_v7 = vpop.eup %7449  ;;  %v3509_v43 = vmul.f32 %v7448_v5, %v7438_v20 }
0x1b68   : > { %6969 = vmatprep.subr.bf16.mxu1 %v6968_v9  ;;  %6643 = vmatprep.mubr.msk.f32.mxu1 %vm313_vm1, %v3508_v36  ;;  %v3510_v13 = vmul.f32 %v7450_v7, %v7442_v49 }
0x1b69   : > { %6668 = vmatprep.subr.mxu0 %v3896_v42  ;;  %6971 = vmatpush3.bf16.msra.mxu1 %v6968_v9 }
0x1b6a   : > { %6669 = vmatpush3.msra.mxu0 %v3896_v42  ;;  %6972 = vmatprep.subr.bf16.mxu1 %v7619_v3  ;;  %v7452_v12 = vpop.eup %7451 }
0x1b6b   : > { %v3511_v14 = vmul.f32 %v7452_v12, %v7444_v52 }
0x1b6c   : > { %6644 = vmatmul.mubr.msk.f32.vlgmr.msra.gmra.mrb[42].mxu1 %vm313_vm1, %v3509_v43 }
0x1b6d   : > { %6646 = vmatprep.mubr.msk.f32.mxu1 %vm313_vm1, %v3510_v13 }
0x1b70   : > { %6647 = vmatmul.mubr.msk.f32.gmra.mrb[44].mxu1 %vm313_vm1, %v3511_v14 }
0x1b71   : > { %6657 = vmatprep.mubr.msk.f32.mxu1 %vm7620_vm0, %v7621_v6 }
0x1b8c   : > { %v3637_v27 = vpop.trf.xlu1 }
0x1c3f   : > { %v6645_v15 = vpop.f32.mrb[42].mxu1 }
0x1c40   : > { %v3602_v21 = vpop.f32.mrb[43].mxu1 }
0x1c41   : > { %v6973_v22 = vpack.c.bf16 %v6645_v15, %v3602_v21 }
0x1c43   : > { %v6648_v24 = vpop.f32.mrb[44].mxu1  ;;  %6974 = vmatpush3.bf16.msra.mxu1 %v6973_v22 }
0x1c44   : > { %v3612_v26 = vpop.f32.mrb[45].mxu1  ;;  %6975 = vmatprep.subr.bf16.mxu1 %v7619_v3 }
0x1c45   : > { %v6976_v54 = vpack.c.bf16 %v6648_v24, %v3612_v26 }
0x1c47   : > { %6977 = vmatpush3.bf16.msra.mxu1 %v6976_v54 }
0x1c48   : > { %6660 = vmatprep.subr.msk.mxu1 %vm472_vm2, %v3732_v23 }
0x1c4a   : > { %6658 = vmatmul.mubr.msk.f32.vlgmr.msra.gmra.mrb[46].mxu1 %vm313_vm1, %v3637_v27 }
0x1c4b   : > { %6662 = vmatprep.mubr.msk.f32.mxu1 %vm472_vm2, %v6016_v56 }
0x1c50   : > { %6661 = vmatpush3.xpose.msk.msra.mxu1 %vm472_vm2, %v3732_v23 }
0x1c53   : > { %6663 = vmatmul.mubr.msk.f32.vlgmr.msra.gmra.mrb[48].mxu1 %vm472_vm2, %v6017_v28 }
0x1c54   : > { %6665 = vmatprep.mubr.msk.f32.mxu1 %vm472_vm2, %v6018_v57 }
0x1c57   : > { %6666 = vmatmul.mubr.msk.f32.gmra.mrb[50].mxu1 %vm472_vm2, %v6019_v29 }
0x1d1d   : > { %v8290_v58 = vpop.f32.mrb[46].mxu1 }
0x1d1e   : > { %v6659_v30 = vpop.f32.mrb[47].mxu1 }
0x1d26   : > { %v6664_v32 = vpop.f32.mrb[48].mxu1 }
0x1d27   : > { %v3833_v33 = vsel %vm573_vm3, %v6664_v32, -inf  ;;  %v3813_v34 = vpop.f32.mrb[49].mxu1 }
0x1d28   : > { %v3832_v8 = vsel %vm573_vm3, %v3813_v34, -inf }
0x1d29   : > { %v3836_v10 = vmax.f32 %v3832_v8, %v3833_v33 }
0x1d2a   : > { %v6667_v37 = vpop.f32.mrb[50].mxu1 }
0x1d2b   : > { %v3835_v38 = vsel %vm573_vm3, %v6667_v37, -inf  ;;  %v3823_v39 = vpop.f32.mrb[51].mxu1 }
0x1d2c   : > { %v3834_v45 = vsel %vm573_vm3, %v3823_v39, -inf }
0x1d2d   : > { %v3837_v16 = vmax.f32 %v3834_v45, %v3835_v38 }
0x1d2f   : > { %v3838_v46 = vmax.f32 %v3836_v10, %v3837_v16 }
0x1d31   : > { %v3839_v19 = vrot.slane %v3838_v46, 4 }
0x1d33   : > { %v3840_v20 = vmax.f32 %v3838_v46, %v3839_v19 }
0x1d35   : > { %v3841_v47 = vrot.slane %v3840_v20, 2 }
0x1d37   : > { %v3842_v48 = vmax.f32 %v3840_v20, %v3841_v47 }
0x1d39   : > { %v3843_v49 = vrot.slane %v3842_v48, 1 }
0x1d3b   : > { %v3844_v50 = vmax.f32 %v3842_v48, %v3843_v49 }
0x1d3d   : > { %v3845_v51 = vsub.f32 %v3813_v34, %v3844_v50  ;;  %v3846_v52 = vsub.f32 %v6664_v32, %v3844_v50  ;;  %v3847_v53 = vsub.f32 %v3823_v39, %v3844_v50  ;;  %v3848_v59 = vsub.f32 %v6667_v37, %v3844_v50 }
0x1d3f   : > { %v3849_v60 = vmul.f32 1.442695, %v3845_v51  ;;  %v3851_v61 = vmul.f32 1.442695, %v3846_v52  ;;  %v3853_v62 = vmul.f32 1.442695, %v3847_v53 }
0x1d40   : > { %v3855_v63 = vmul.f32 1.442695, %v3848_v59 }
0x1d41   : > { %7453 = vpow2.f32 %v3849_v60 }
0x1d42   : > { %7455 = vpow2.f32 %v3851_v61 }
0x1d43   : > { %7457 = vpow2.f32 %v3853_v62 }
0x1d44   : > { %7459 = vpow2.f32 %v3855_v63 }
0x1d4b   : > { %v7454_v0 = vpop.eup %7453 }
0x1d4c   : > { %v7456_v1 = vpop.eup %7455  ;;  %v3857_v2 = vsel %vm573_vm3, %v7454_v0, 0.0 }
0x1d4d   : > { %v7458_v4 = vpop.eup %7457  ;;  %v3858_v35 = vsel %vm573_vm3, %v7456_v1, 0.0 }
0x1d4e   : > { %v7460_v41 = vpop.eup %7459  ;;  %v3859_v11 = vadd.f32 %v3858_v35, %v3857_v2  ;;  %v3860_v9 = vsel %vm573_vm3, %v7458_v4, 0.0 }
0x1d4f   : > { %v3862_v5 = vsel %vm573_vm3, %v7460_v41, 0.0 }
0x1d50   : > { %v3861_v36 = vadd.f32 %v3860_v9, %v3859_v11 }
0x1d52   : > { %v3863_v42 = vadd.f32 %v3862_v5, %v3861_v36 }
0x1d54   : > { %v3864_v7 = vrot.slane %v3863_v42, 4 }
0x1d56   : > { %v3865_v43 = vadd.f32 %v3864_v7, %v3863_v42 }
0x1d58   : > { %v3866_v12 = vrot.slane %v3865_v43, 2 }
0x1d5a   : > { %v3867_v13 = vadd.f32 %v3866_v12, %v3865_v43 }
0x1d5c   : > { %v3868_v14 = vrot.slane %v3867_v13, 1 }
0x1d5e   : > { %v3869_v15 = vadd.f32 %v3868_v14, %v3867_v13 }
0x1d60   : > { %7461 = vrcp.f32 %v3869_v15 }
0x1d6a   : > { %v7462_v21 = vpop.eup %7461 }
0x1d6b   : > { %v8300_v22 = vmul.f32 %v7462_v21, %v7454_v0  ;;  %v8302_v23 = vmul.f32 %v7462_v21, %v7456_v1  ;;  %v8304_v24 = vmul.f32 %v7462_v21, %v7458_v4  ;;  %v8306_v26 = vmul.f32 %v7462_v21, %v7460_v41 }
0x1d6d   : > { %6670 = vmatprep.mubr.msk.f32.mxu0 %vm573_vm3, %v8300_v22  ;;  %v3875_v54 = vsel %vm573_vm3, %v8300_v22, 0.0  ;;  %v3878_v27 = vsel %vm573_vm3, %v8302_v23, 0.0  ;;  %v3881_v56 = vsel %vm573_vm3, %v8304_v24, 0.0  ;;  %v3884_v28 = vsel %vm573_vm3, %v8306_v26, 0.0 }
0x1d6e   : > { %6671 = vmatmul.mubr.msk.f32.vlgmr.msra.gmra.mrb[46].mxu0 %vm573_vm3, %v8302_v23  ;;  %3876 = vadd.xlane.f32.xlu0 %v3875_v54 }
0x1d6f   : > { %6673 = vmatprep.mubr.msk.f32.mxu0 %vm573_vm3, %v8304_v24 }
0x1d72   : > { %6674 = vmatmul.mubr.msk.f32.gmra.mrb[48].mxu0 %vm573_vm3, %v8306_v26  ;;  %3879 = vadd.xlane.f32.xlu0 %v3878_v27 }
0x1d76   : > { %3882 = vadd.xlane.f32.xlu0 %v3881_v56 }
0x1d7a   : > { %3885 = vadd.xlane.f32.xlu0 %v3884_v28 }
0x1dfb   : > { %v3877_v57 = vpop.xlane.xlu0 %3876 }
0x1dfc   : > { %v3887_v33 = vadd.f32 1e-05, %v3877_v57 }
0x1dff   : > { %v3880_v29 = vpop.xlane.xlu0 %3879 }
0x1e00   : > { %v3888_v32 = vadd.f32 1e-05, %v3880_v29 }
0x1e02   : > { %7463 = vrcp.f32 %v3888_v32 }
0x1e03   : > { %v3883_v30 = vpop.xlane.xlu0 %3882  ;;  %7465 = vrcp.f32 %v3887_v33 }
0x1e04   : > { %v3889_v10 = vadd.f32 1e-05, %v3883_v30 }
0x1e07   : > { %v3886_v34 = vpop.xlane.xlu0 %3885 }
0x1e08   : > { %v3890_v8 = vadd.f32 1e-05, %v3886_v34 }
0x1e0a   : > { %7467 = vrcp.f32 %v3890_v8 }
0x1e0b   : > { %7469 = vrcp.f32 %v3889_v10 }
0x1e0c   : > { %v7464_v37 = vpop.eup %7463 }
0x1e0d   : > { %v7466_v39 = vpop.eup %7465 }
0x1e14   : > { %v7468_v19 = vpop.eup %7467 }
0x1e15   : > { %v7470_v49 = vpop.eup %7469 }
0x1e41   : > { %v6672_v38 = vpop.f32.mrb[46].mxu0 }
0x1e42   : > { %v3996_v45 = vmul.f32 %v7464_v37, %v6672_v38  ;;  %v3976_v16 = vpop.f32.mrb[47].mxu0 }
0x1e43   : > { %v3995_v46 = vmul.f32 %v7466_v39, %v3976_v16 }
0x1e44   : > { %v4000_v4 = vmul.f32 0.5, %v3996_v45 }
0x1e45   : > { %v3999_v20 = vmul.f32 0.5, %v3995_v46  ;;  %v8324_v47 = vpack.i.bf16 %v3996_v45, %v3995_v46  ;;  %v6675_v48 = vpop.f32.mrb[48].mxu0 }
0x1e46   : > { %v3998_v50 = vmul.f32 %v7468_v19, %v6675_v48  ;;  %v3986_v51 = vpop.f32.mrb[49].mxu0 }
0x1e47   : > { %v3997_v52 = vmul.f32 %v7470_v49, %v3986_v51  ;;  %6684 = vmatprep.mubr.msk.f32.mxu1 %vm472_vm2, %v3999_v20  ;;  %7224 = vrot.lane.b32.xlu0 %v8324_v47, %s7622_s24 }
0x1e48   : > { %v4002_v41 = vmul.f32 0.5, %v3998_v50 }
0x1e49   : > { %v7228_v53 = vpack.i.bf16 %v3998_v50, %v3997_v52  ;;  %v4001_v35 = vmul.f32 0.5, %v3997_v52 }
0x1e4b   : > { %7229 = vrot.lane.b32.xlu1 %v7228_v53, %s7622_s24 }
0x1eb9   : > { %v7225_v59 = vpop.permute.xlu0 %7224 }
0x1eba   : > { %v7227_v60 = vunpack.i.h.bf16 %v7225_v59  ;;  %v7226_v61 = vunpack.i.l.bf16 %v7225_v59 }
0x1ebc   : > { %v6978_v62 = vpack.c.bf16 %v7227_v60, %v7226_v61 }
0x1ebd   : > { %v7230_v63 = vpop.permute.xlu1 %7229 }
0x1ebe   : > { %v7232_v0 = vunpack.i.h.bf16 %v7230_v63  ;;  %v7231_v1 = vunpack.i.l.bf16 %v7230_v63  ;;  %6980 = vmatprep.subr.msk.bf16.mxu1 %vm7846_vm4, %v6978_v62 }
0x1ebf   : > { %6983 = vmatpush3.bf16.xpose.msk.msra.mxu1 %vm7846_vm4, %v6978_v62 }
0x1ec0   : > { %v6984_v2 = vpack.c.bf16 %v7232_v0, %v7231_v1 }
0x1ec2   : > { %6986 = vmatprep.subr.msk.bf16.mxu1 %vm7846_vm4, %v6984_v2 }
0x1ec7   : > { %6989 = vmatpush3.bf16.xpose.msk.msra.mxu1 %vm7846_vm4, %v6984_v2 }
0x1ece   : > { %6685 = vmatmul.mubr.msk.f32.vlgmr.msra.gmra.mrb[52].mxu1 %vm472_vm2, %v4000_v4 }
0x1ecf   : > { %6687 = vmatprep.mubr.msk.f32.mxu1 %vm472_vm2, %v4001_v35 }
0x1ed2   : > { %6688 = vmatmul.mubr.msk.f32.gmra.mrb[54].mxu1 %vm472_vm2, %v4002_v41 }
0x1fa1   : > { %v6686_v11 = vpop.f32.mrb[52].mxu1 }
0x1fa2   : > { %v4101_v9 = vpop.f32.mrb[53].mxu1  ;;  %v4123_v36 = vsel %vm313_vm1, %v6686_v11, -inf }
0x1fa3   : > { %4124 = vmax.xlane.f32.xlu1 %v4123_v36  ;;  %v4120_v5 = vsel %vm313_vm1, %v4101_v9, -inf }
0x1fa4   : > { %4121 = vmax.xlane.f32.xlu0 %v4120_v5  ;;  %v6042_v5 = vld [vmem:[%s8638_s5 + $0xc0] sm:$0xff] }
0x1fa5   : > { %v6689_v42 = vpop.f32.mrb[54].mxu1 }
0x1fa6   : > { %v4111_v7 = vpop.f32.mrb[55].mxu1  ;;  %v4129_v12 = vsel %vm313_vm1, %v6689_v42, -inf }
0x1fa7   : > { %v4126_v43 = vsel %vm313_vm1, %v4111_v7, -inf }
0x1fa8   : > { %4127 = vmax.xlane.f32.xlu0 %v4126_v43  ;;  %v6045_v43 = vld [vmem:[%s8638_s5 + $0xd8] sm:$0xff] }
0x1fac   : > { %4130 = vmax.xlane.f32.xlu0 %v4129_v12 }
0x2030   : > { %v4125_v13 = vpop.xlane.xlu1 %4124 }
0x2031   : > { %v4133_v14 = vsub.f32 %v6686_v11, %v4125_v13  ;;  %v4122_v15 = vpop.xlane.xlu0 %4121 }
0x2032   : > { %v4132_v21 = vsub.f32 %v4101_v9, %v4122_v15 }
0x2033   : > { %v4138_v54 = vmul.f32 1.442695, %v4133_v14 }
0x2034   : > { %v4136_v27 = vmul.f32 1.442695, %v4132_v21 }
0x2035   : > { %7471 = vpow2.f32 %v4138_v54  ;;  %v4128_v56 = vpop.xlane.xlu0 %4127 }
0x2036   : > { %v4134_v28 = vsub.f32 %v4111_v7, %v4128_v56  ;;  %7473 = vpow2.f32 %v4136_v27  ;;  %v6044_v7 = vld [vmem:[%s8638_s5 + $0xd0] sm:$0xff] }
0x2038   : > { %v4140_v57 = vmul.f32 1.442695, %v4134_v28 }
0x2039   : > { %v4131_v29 = vpop.xlane.xlu0 %4130 }
0x203a   : > { %v4135_v30 = vsub.f32 %v6689_v42, %v4131_v29  ;;  %7475 = vpow2.f32 %v4140_v57  ;;  %v6043_v42 = vld [vmem:[%s8638_s5 + $0xc8] sm:$0xff] }
0x203c   : > { %v4142_v32 = vmul.f32 1.442695, %v4135_v30 }
0x203e   : > { %7477 = vpow2.f32 %v4142_v32 }
0x203f   : > { %v7472_v33 = vpop.eup %7471 }
0x2040   : > { %v4147_v34 = vsel %vm313_vm1, %v7472_v33, 0.0  ;;  %v7474_v8 = vpop.eup %7473 }
0x2041   : > { %4148 = vadd.xlane.f32.xlu0 %v4147_v34  ;;  %v4144_v10 = vsel %vm313_vm1, %v7474_v8, 0.0 }
0x2044   : > { %v7476_v37 = vpop.eup %7475 }
0x2045   : > { %4145 = vadd.xlane.f32.xlu0 %v4144_v10  ;;  %v4150_v39 = vsel %vm313_vm1, %v7476_v37, 0.0 }
0x2048   : > { %v7478_v38 = vpop.eup %7477 }
0x2049   : > { %4151 = vadd.xlane.f32.xlu0 %v4150_v39  ;;  %v4153_v45 = vsel %vm313_vm1, %v7478_v38, 0.0 }
0x204a   : > { %4154 = vadd.xlane.f32.xlu1 %v4153_v45 }
0x205b   : > { %7239 = vrot.lane.b32.xlu1 %v7228_v53, %s7623_s25 }
0x205f   : > { %7234 = vrot.lane.b32.xlu0 %v8324_v47, %s7623_s25  ;;  %4383 = vrot.lane.b32.xlu1 %v7781_v18, %s7625_s22  ;;  %s7639_s22 = smov 24  }
0x2063   : > { %4547 = vrot.lane.b32.xlu0 %v7802_v25, %s7631_s20  ;;  %s7638_s20 = smov 20  }
0x2088   : > { %4273 = vxpose.xlu1.b32.start [1/4] (short) (narrow) %v8300_v22, 8 }
0x208c   : > { %4274 = vxpose.xlu1.b32.cont [2/4] (short) (narrow) %v8302_v23, 8 }
0x2090   : > { %4275 = vxpose.xlu1.b32.cont [3/4] (short) (narrow) %v8304_v24, 8 }
0x2094   : > { %4276 = vxpose.xlu1.b32.end [4/4] (short) (narrow) %v8306_v26, 8 }
0x20ce   : > { %v4149_v16 = vpop.xlane.xlu0 %4148 }
0x20d2   : > { %v4146_v46 = vpop.xlane.xlu0 %4145 }
0x20d3   : > { %7479 = vrcp.f32 %v4146_v46 }
0x20d4   : > { %7481 = vrcp.f32 %v4149_v16 }
0x20d6   : > { %v4152_v19 = vpop.xlane.xlu0 %4151 }
0x20d7   : > { %v4155_v20 = vpop.xlane.xlu1 %4154  ;;  %7483 = vrcp.f32 %v4152_v19 }
0x20d8   : > { %7485 = vrcp.f32 %v4155_v20 }
0x20da   : > { %v7235_v47 = vpop.permute.xlu0 %7234 }
0x20db   : > { %v7237_v48 = vunpack.i.h.bf16 %v7235_v47  ;;  %v7236_v49 = vunpack.i.l.bf16 %v7235_v47  ;;  %v7240_v50 = vpop.permute.xlu1 %7239 }
0x20dc   : > { %v7242_v51 = vunpack.i.h.bf16 %v7240_v50  ;;  %v7241_v22 = vunpack.i.l.bf16 %v7240_v50 }
0x20dd   : > { %v7480_v52 = vpop.eup %7479  ;;  %v6990_v23 = vpack.c.bf16 %v7237_v48, %v7236_v49 }
0x20de   : > { %v6994_v53 = vpack.c.bf16 %v7242_v51, %v7241_v22  ;;  %v4548_v24 = vpop.permute.xlu0 %4547  ;;  %v4160_v59 = vmul.f32 %v7480_v52, %v7474_v8  ;;  %v7482_v26 = vpop.eup %7481 }
0x20df   : > { %6991 = vmatprep.subr.bf16.mxu0 %v6990_v23  ;;  %6723 = vmatprep.subr.mxu1 %v4548_v24  ;;  %v4161_v61 = vmul.f32 %v7482_v26, %v7472_v33  ;;  %v4384_v35 = vpop.permute.xlu1 %4383 }
0x20e0   : > { %6993 = vmatpush3.bf16.msra.mxu0 %v6990_v23  ;;  %6698 = vmatprep.mubr.msk.f32.mxu0 %vm313_vm1, %v4160_v59 }
0x20e1   : > { %6724 = vmatpush3.msra.mxu1 %v4548_v24  ;;  %6995 = vmatprep.subr.bf16.mxu0 %v6994_v53  ;;  %v7484_v60 = vpop.eup %7483 }
0x20e2   : > { %v7486_v62 = vpop.eup %7485  ;;  %v4162_v63 = vmul.f32 %v7484_v60, %v7476_v37 }
0x20e3   : > { %v4163_v0 = vmul.f32 %v7486_v62, %v7478_v38 }
0x20e4   : > { %6997 = vmatpush3.bf16.msra.mxu0 %v6994_v53 }
0x20e5   : > { %6998 = vmatprep.subr.bf16.mxu0 %v7619_v3 }
0x20e7   : > { %6699 = vmatmul.mubr.msk.f32.vlgmr.msra.gmra.mrb[50].mxu0 %vm313_vm1, %v4161_v61 }
0x20e8   : > { %6701 = vmatprep.mubr.msk.f32.mxu0 %vm313_vm1, %v4162_v63 }
0x20eb   : > { %6702 = vmatmul.mubr.msk.f32.gmra.mrb[52].mxu0 %vm313_vm1, %v4163_v0 }
0x20ec   : > { %6712 = vmatprep.mubr.msk.f32.mxu0 %vm7620_vm0, %v7621_v6 }
0x2108   : > { %v4289_v36 = vpop.trf.xlu1 }
0x21ba   : > { %v6700_v1 = vpop.f32.mrb[50].mxu0 }
0x21bb   : > { %v4254_v2 = vpop.f32.mrb[51].mxu0 }
0x21bc   : > { %v6999_v4 = vpack.c.bf16 %v6700_v1, %v4254_v2 }
0x21be   : > { %v6703_v41 = vpop.f32.mrb[52].mxu0  ;;  %7000 = vmatpush3.bf16.msra.mxu0 %v6999_v4 }
0x21bf   : > { %v4264_v11 = vpop.f32.mrb[53].mxu0  ;;  %7001 = vmatprep.subr.bf16.mxu0 %v7619_v3 }
0x21c0   : > { %v7002_v9 = vpack.c.bf16 %v6703_v41, %v4264_v11 }
0x21c2   : > { %7003 = vmatpush3.bf16.msra.mxu0 %v7002_v9 }
0x21c3   : > { %6715 = vmatprep.subr.msk.mxu0 %vm472_vm2, %v4384_v35 }
0x21c5   : > { %6713 = vmatmul.mubr.msk.f32.vlgmr.msra.gmra.mrb[54].mxu0 %vm313_vm1, %v4289_v36 }
0x21c6   : > { %6717 = vmatprep.mubr.msk.f32.mxu0 %vm472_vm2, %v6042_v5 }
0x21cb   : > { %6716 = vmatpush3.xpose.msk.msra.mxu0 %vm472_vm2, %v4384_v35 }
0x21ce   : > { %6718 = vmatmul.mubr.msk.f32.vlgmr.msra.gmra.mrb[56].mxu0 %vm472_vm2, %v6043_v42 }
0x21cf   : > { %6720 = vmatprep.mubr.msk.f32.mxu0 %vm472_vm2, %v6044_v7 }
0x21d2   : > { %6721 = vmatmul.mubr.msk.f32.gmra.mrb[58].mxu0 %vm472_vm2, %v6045_v43 }
0x2298   : > { %v8386_v12 = vpop.f32.mrb[54].mxu0 }
0x2299   : > { %v6714_v13 = vpop.f32.mrb[55].mxu0 }
0x22a1   : > { %v6719_v14 = vpop.f32.mrb[56].mxu0 }
0x22a2   : > { %v4485_v15 = vsel %vm573_vm3, %v6719_v14, -inf  ;;  %v4465_v21 = vpop.f32.mrb[57].mxu0 }
0x22a3   : > { %v4484_v54 = vsel %vm573_vm3, %v4465_v21, -inf }
0x22a4   : > { %v4488_v27 = vmax.f32 %v4484_v54, %v4485_v15 }
0x22a5   : > { %v6722_v56 = vpop.f32.mrb[58].mxu0 }
0x22a6   : > { %v4487_v28 = vsel %vm573_vm3, %v6722_v56, -inf  ;;  %v4475_v57 = vpop.f32.mrb[59].mxu0 }
0x22a7   : > { %v4486_v29 = vsel %vm573_vm3, %v4475_v57, -inf }
0x22a8   : > { %v4489_v30 = vmax.f32 %v4486_v29, %v4487_v28 }
0x22aa   : > { %v4490_v32 = vmax.f32 %v4488_v27, %v4489_v30 }
0x22ac   : > { %v4491_v33 = vrot.slane %v4490_v32, 4 }
0x22ae   : > { %v4492_v34 = vmax.f32 %v4490_v32, %v4491_v33 }
0x22b0   : > { %v4493_v8 = vrot.slane %v4492_v34, 2 }
0x22b2   : > { %v4494_v10 = vmax.f32 %v4492_v34, %v4493_v8 }
0x22b4   : > { %v4495_v37 = vrot.slane %v4494_v10, 1 }
0x22b6   : > { %v4496_v38 = vmax.f32 %v4494_v10, %v4495_v37 }
0x22b8   : > { %v4497_v39 = vsub.f32 %v4465_v21, %v4496_v38  ;;  %v4498_v45 = vsub.f32 %v6719_v14, %v4496_v38  ;;  %v4499_v16 = vsub.f32 %v4475_v57, %v4496_v38  ;;  %v4500_v46 = vsub.f32 %v6722_v56, %v4496_v38 }
0x22ba   : > { %v4501_v19 = vmul.f32 1.442695, %v4497_v39  ;;  %v4503_v20 = vmul.f32 1.442695, %v4498_v45  ;;  %v4505_v47 = vmul.f32 1.442695, %v4499_v16 }
0x22bb   : > { %v4507_v48 = vmul.f32 1.442695, %v4500_v46 }
0x22bc   : > { %7487 = vpow2.f32 %v4501_v19 }
0x22bd   : > { %7489 = vpow2.f32 %v4503_v20 }
0x22be   : > { %7491 = vpow2.f32 %v4505_v47 }
0x22bf   : > { %7493 = vpow2.f32 %v4507_v48 }
0x22c6   : > { %v7488_v49 = vpop.eup %7487 }
0x22c7   : > { %v7490_v50 = vpop.eup %7489  ;;  %v4509_v51 = vsel %vm573_vm3, %v7488_v49, 0.0 }
0x22c8   : > { %v7492_v22 = vpop.eup %7491  ;;  %v4510_v52 = vsel %vm573_vm3, %v7490_v50, 0.0 }
0x22c9   : > { %v7494_v23 = vpop.eup %7493  ;;  %v4511_v53 = vadd.f32 %v4510_v52, %v4509_v51  ;;  %v4512_v24 = vsel %vm573_vm3, %v7492_v22, 0.0 }
0x22ca   : > { %v4514_v26 = vsel %vm573_vm3, %v7494_v23, 0.0 }
0x22cb   : > { %v4513_v59 = vadd.f32 %v4512_v24, %v4511_v53 }
0x22cd   : > { %v4515_v60 = vadd.f32 %v4514_v26, %v4513_v59 }
0x22cf   : > { %v4516_v61 = vrot.slane %v4515_v60, 4 }
0x22d1   : > { %v4517_v62 = vadd.f32 %v4516_v61, %v4515_v60 }
0x22d3   : > { %v4518_v63 = vrot.slane %v4517_v62, 2 }
0x22d5   : > { %v4519_v0 = vadd.f32 %v4518_v63, %v4517_v62 }
0x22d7   : > { %v4520_v1 = vrot.slane %v4519_v0, 1 }
0x22d9   : > { %v4521_v2 = vadd.f32 %v4520_v1, %v4519_v0 }
0x22db   : > { %7495 = vrcp.f32 %v4521_v2 }
0x22e5   : > { %v7496_v4 = vpop.eup %7495 }
0x22e6   : > { %v8396_v35 = vmul.f32 %v7496_v4, %v7488_v49  ;;  %v8398_v41 = vmul.f32 %v7496_v4, %v7490_v50  ;;  %v8400_v11 = vmul.f32 %v7496_v4, %v7492_v22  ;;  %v8402_v9 = vmul.f32 %v7496_v4, %v7494_v23 }
0x22e8   : > { %6725 = vmatprep.mubr.msk.f32.mxu1 %vm573_vm3, %v8396_v35  ;;  %v4527_v36 = vsel %vm573_vm3, %v8396_v35, 0.0  ;;  %v4530_v5 = vsel %vm573_vm3, %v8398_v41, 0.0  ;;  %v4533_v42 = vsel %vm573_vm3, %v8400_v11, 0.0  ;;  %v4536_v7 = vsel %vm573_vm3, %v8402_v9, 0.0 }
0x22e9   : > { %6726 = vmatmul.mubr.msk.f32.vlgmr.msra.gmra.mrb[56].mxu1 %vm573_vm3, %v8398_v41  ;;  %4528 = vadd.xlane.f32.xlu0 %v4527_v36 }
0x22ea   : > { %6728 = vmatprep.mubr.msk.f32.mxu1 %vm573_vm3, %v8400_v11 }
0x22ed   : > { %6729 = vmatmul.mubr.msk.f32.gmra.mrb[58].mxu1 %vm573_vm3, %v8402_v9  ;;  %4531 = vadd.xlane.f32.xlu0 %v4530_v5 }
0x22f1   : > { %4534 = vadd.xlane.f32.xlu0 %v4533_v42 }
0x22f5   : > { %4537 = vadd.xlane.f32.xlu0 %v4536_v7 }
0x2376   : > { %v4529_v43 = vpop.xlane.xlu0 %4528 }
0x2377   : > { %v4539_v21 = vadd.f32 1e-05, %v4529_v43 }
0x237a   : > { %v4532_v13 = vpop.xlane.xlu0 %4531 }
0x237b   : > { %v4540_v15 = vadd.f32 1e-05, %v4532_v13 }
0x237d   : > { %7497 = vrcp.f32 %v4540_v15 }
0x237e   : > { %v4535_v14 = vpop.xlane.xlu0 %4534  ;;  %7499 = vrcp.f32 %v4539_v21 }
0x237f   : > { %v4541_v56 = vadd.f32 1e-05, %v4535_v14 }
0x2382   : > { %v4538_v54 = vpop.xlane.xlu0 %4537 }
0x2383   : > { %v4542_v27 = vadd.f32 1e-05, %v4538_v54 }
0x2385   : > { %7501 = vrcp.f32 %v4542_v27 }
0x2386   : > { %7503 = vrcp.f32 %v4541_v56 }
0x2387   : > { %v7498_v28 = vpop.eup %7497 }
0x2388   : > { %v7500_v29 = vpop.eup %7499 }
0x238f   : > { %v7502_v34 = vpop.eup %7501 }
0x2390   : > { %v7504_v38 = vpop.eup %7503 }
0x23bc   : > { %v6727_v57 = vpop.f32.mrb[56].mxu1 }
0x23bd   : > { %v4648_v30 = vmul.f32 %v7498_v28, %v6727_v57  ;;  %v4628_v32 = vpop.f32.mrb[57].mxu1 }
0x23be   : > { %v4647_v33 = vmul.f32 %v7500_v29, %v4628_v32 }
0x23bf   : > { %v4652_v52 = vmul.f32 0.5, %v4648_v30 }
0x23c0   : > { %v4651_v8 = vmul.f32 0.5, %v4647_v33  ;;  %v8420_v10 = vpack.i.bf16 %v4648_v30, %v4647_v33  ;;  %v6730_v37 = vpop.f32.mrb[58].mxu1 }
0x23c1   : > { %v4650_v39 = vmul.f32 %v7502_v34, %v6730_v37  ;;  %v4638_v45 = vpop.f32.mrb[59].mxu1 }
0x23c2   : > { %v4649_v16 = vmul.f32 %v7504_v38, %v4638_v45  ;;  %6739 = vmatprep.mubr.msk.f32.mxu0 %vm472_vm2, %v4651_v8  ;;  %7244 = vrot.lane.b32.xlu0 %v8420_v10, %s7622_s24 }
0x23c3   : > { %v4654_v53 = vmul.f32 0.5, %v4650_v39 }
0x23c4   : > { %v7258_v46 = vpack.i.bf16 %v4650_v39, %v4649_v16  ;;  %v4653_v23 = vmul.f32 0.5, %v4649_v16 }
0x23c6   : > { %7249 = vrot.lane.b32.xlu1 %v7258_v46, %s7622_s24 }
0x2434   : > { %v7245_v19 = vpop.permute.xlu0 %7244 }
0x2435   : > { %v7247_v20 = vunpack.i.h.bf16 %v7245_v19  ;;  %v7246_v47 = vunpack.i.l.bf16 %v7245_v19 }
0x2437   : > { %v7004_v48 = vpack.c.bf16 %v7247_v20, %v7246_v47 }
0x2438   : > { %v7250_v49 = vpop.permute.xlu1 %7249 }
0x2439   : > { %v7252_v50 = vunpack.i.h.bf16 %v7250_v49  ;;  %v7251_v51 = vunpack.i.l.bf16 %v7250_v49  ;;  %7006 = vmatprep.subr.msk.bf16.mxu0 %vm7846_vm4, %v7004_v48 }
0x243a   : > { %7009 = vmatpush3.bf16.xpose.msk.msra.mxu0 %vm7846_vm4, %v7004_v48 }
0x243b   : > { %v7010_v22 = vpack.c.bf16 %v7252_v50, %v7251_v51 }
0x243d   : > { %7012 = vmatprep.subr.msk.bf16.mxu0 %vm7846_vm4, %v7010_v22 }
0x2442   : > { %7015 = vmatpush3.bf16.xpose.msk.msra.mxu0 %vm7846_vm4, %v7010_v22 }
0x2449   : > { %6740 = vmatmul.mubr.msk.f32.vlgmr.msra.gmra.mrb[60].mxu0 %vm472_vm2, %v4652_v52 }
0x244a   : > { %6742 = vmatprep.mubr.msk.f32.mxu0 %vm472_vm2, %v4653_v23 }
0x244d   : > { %6743 = vmatmul.mubr.msk.f32.gmra.mrb[62].mxu0 %vm472_vm2, %v4654_v53 }
0x251c   : > { %v6741_v24 = vpop.f32.mrb[60].mxu0 }
0x251d   : > { %v4753_v59 = vpop.f32.mrb[61].mxu0  ;;  %v4775_v26 = vsel %vm313_vm1, %v6741_v24, -inf }
0x251e   : > { %4776 = vmax.xlane.f32.xlu1 %v4775_v26  ;;  %v4772_v60 = vsel %vm313_vm1, %v4753_v59, -inf  ;;  %v6068_v26 = vld [vmem:[%s8638_s5 + $0xe0] sm:$0xff] }
0x251f   : > { %4773 = vmax.xlane.f32.xlu0 %v4772_v60  ;;  %v6069_v60 = vld [vmem:[%s8638_s5 + $0xe8] sm:$0xff] }
0x2520   : > { %v6744_v61 = vpop.f32.mrb[62].mxu0 }
0x2521   : > { %v4763_v62 = vpop.f32.mrb[63].mxu0  ;;  %v4781_v0 = vsel %vm313_vm1, %v6744_v61, -inf }
0x2522   : > { %v4778_v63 = vsel %vm313_vm1, %v4763_v62, -inf }
0x2523   : > { %4779 = vmax.xlane.f32.xlu0 %v4778_v63 }
0x2527   : > { %4782 = vmax.xlane.f32.xlu0 %v4781_v0 }
0x25ab   : > { %v4777_v1 = vpop.xlane.xlu1 %4776 }
0x25ac   : > { %v4785_v2 = vsub.f32 %v6741_v24, %v4777_v1  ;;  %v4774_v4 = vpop.xlane.xlu0 %4773 }
0x25ad   : > { %v4784_v36 = vsub.f32 %v4753_v59, %v4774_v4 }
0x25ae   : > { %v4790_v5 = vmul.f32 1.442695, %v4785_v2 }
0x25af   : > { %v4788_v42 = vmul.f32 1.442695, %v4784_v36 }
0x25b0   : > { %7505 = vpow2.f32 %v4790_v5  ;;  %v4780_v7 = vpop.xlane.xlu0 %4779 }
0x25b1   : > { %v4786_v43 = vsub.f32 %v4763_v62, %v4780_v7  ;;  %7507 = vpow2.f32 %v4788_v42  ;;  %v6071_v62 = vld [vmem:[%s8638_s5 + $0xf8] sm:$0xff] }
0x25b3   : > { %v4792_v13 = vmul.f32 1.442695, %v4786_v43 }
0x25b4   : > { %v4783_v14 = vpop.xlane.xlu0 %4782 }
0x25b5   : > { %v4787_v15 = vsub.f32 %v6744_v61, %v4783_v14  ;;  %7509 = vpow2.f32 %v4792_v13  ;;  %v6070_v61 = vld [vmem:[%s8638_s5 + $0xf0] sm:$0xff] }
0x25b7   : > { %v4794_v21 = vmul.f32 1.442695, %v4787_v15 }
0x25b9   : > { %7511 = vpow2.f32 %v4794_v21 }
0x25ba   : > { %v7506_v54 = vpop.eup %7505 }
0x25bb   : > { %v4799_v27 = vsel %vm313_vm1, %v7506_v54, 0.0  ;;  %v7508_v56 = vpop.eup %7507 }
0x25bc   : > { %4800 = vadd.xlane.f32.xlu0 %v4799_v27  ;;  %v4796_v28 = vsel %vm313_vm1, %v7508_v56, 0.0 }
0x25bf   : > { %v7510_v57 = vpop.eup %7509 }
0x25c0   : > { %4797 = vadd.xlane.f32.xlu0 %v4796_v28  ;;  %v4802_v30 = vsel %vm313_vm1, %v7510_v57, 0.0 }
0x25c3   : > { %v7512_v29 = vpop.eup %7511 }
0x25c4   : > { %4803 = vadd.xlane.f32.xlu0 %v4802_v30  ;;  %v4805_v32 = vsel %vm313_vm1, %v7512_v29, 0.0 }
0x25c5   : > { %4806 = vadd.xlane.f32.xlu1 %v4805_v32 }
0x25d6   : > { %7259 = vrot.lane.b32.xlu1 %v7258_v46, %s7623_s25 }
0x25da   : > { %7254 = vrot.lane.b32.xlu0 %v8420_v10, %s7623_s25  ;;  %5035 = vrot.lane.b32.xlu1 %v7781_v18, %s7632_s18  ;;  %s7636_s18 = smov 12  }
0x25de   : > { %5199 = vrot.lane.b32.xlu1 %v7802_v25, %s7633_s19  ;;  %s7637_s19 = smov 16  }
0x25f8   : > { %4925 = vxpose.xlu0.b32.start [1/4] (short) (narrow) %v8396_v35, 8 }
0x25fc   : > { %4926 = vxpose.xlu0.b32.cont [2/4] (short) (narrow) %v8398_v41, 8 }
0x2600   : > { %4927 = vxpose.xlu0.b32.cont [3/4] (short) (narrow) %v8400_v11, 8 }
0x2604   : > { %4928 = vxpose.xlu0.b32.end [4/4] (short) (narrow) %v8402_v9, 8 }
0x2649   : > { %v4801_v33 = vpop.xlane.xlu0 %4800 }
0x264d   : > { %v4798_v34 = vpop.xlane.xlu0 %4797 }
0x264e   : > { %7513 = vrcp.f32 %v4798_v34 }
0x264f   : > { %7515 = vrcp.f32 %v4801_v33 }
0x2651   : > { %v4804_v8 = vpop.xlane.xlu0 %4803 }
0x2652   : > { %v4807_v37 = vpop.xlane.xlu1 %4806  ;;  %7517 = vrcp.f32 %v4804_v8 }
0x2653   : > { %7519 = vrcp.f32 %v4807_v37 }
0x2655   : > { %v7255_v10 = vpop.permute.xlu0 %7254 }
0x2656   : > { %v7257_v18 = vunpack.i.h.bf16 %v7255_v10  ;;  %v7256_v38 = vunpack.i.l.bf16 %v7255_v10  ;;  %v7260_v39 = vpop.permute.xlu1 %7259 }
0x2657   : > { %v7262_v25 = vunpack.i.h.bf16 %v7260_v39  ;;  %v7261_v35 = vunpack.i.l.bf16 %v7260_v39 }
0x2658   : > { %v7514_v45 = vpop.eup %7513  ;;  %v7016_v41 = vpack.c.bf16 %v7257_v18, %v7256_v38 }
0x2659   : > { %v7020_v16 = vpack.c.bf16 %v7262_v25, %v7261_v35  ;;  %v4812_v11 = vmul.f32 %v7514_v45, %v7508_v56  ;;  %v7516_v9 = vpop.eup %7515 }
0x265a   : > { %v5036_v46 = vpop.permute.xlu1 %5035  ;;  %7017 = vmatprep.subr.bf16.mxu1 %v7016_v41  ;;  %v4813_v47 = vmul.f32 %v7516_v9, %v7506_v54 }
0x265b   : > { %7019 = vmatpush3.bf16.msra.mxu1 %v7016_v41  ;;  %6753 = vmatprep.mubr.msk.f32.mxu1 %vm313_vm1, %v4812_v11 }
0x265c   : > { %7021 = vmatprep.subr.bf16.mxu1 %v7020_v16  ;;  %v7518_v19 = vpop.eup %7517 }
0x265d   : > { %v7520_v48 = vpop.eup %7519  ;;  %v4814_v49 = vmul.f32 %v7518_v19, %v7510_v57 }
0x265e   : > { %v5200_v20 = vpop.permute.xlu1 %5199  ;;  %v4815_v50 = vmul.f32 %v7520_v48, %v7512_v29 }
0x265f   : > { %7023 = vmatpush3.bf16.msra.mxu1 %v7020_v16  ;;  %6778 = vmatprep.subr.mxu0 %v5200_v20 }
0x2660   : > { %6779 = vmatpush3.msra.mxu0 %v5200_v20  ;;  %7024 = vmatprep.subr.bf16.mxu1 %v7619_v3 }
0x2662   : > { %6754 = vmatmul.mubr.msk.f32.vlgmr.msra.gmra.mrb[60].mxu1 %vm313_vm1, %v4813_v47 }
0x2663   : > { %6756 = vmatprep.mubr.msk.f32.mxu1 %vm313_vm1, %v4814_v49 }
0x2666   : > { %6757 = vmatmul.mubr.msk.f32.gmra.mrb[62].mxu1 %vm313_vm1, %v4815_v50 }
0x2667   : > { %6767 = vmatprep.mubr.msk.f32.mxu1 %vm7620_vm0, %v7621_v6 }
0x2678   : > { %v4941_v59 = vpop.trf.xlu0 }
0x2735   : > { %v6755_v51 = vpop.f32.mrb[60].mxu1 }
0x2736   : > { %v4906_v22 = vpop.f32.mrb[61].mxu1 }
0x2737   : > { %v7025_v52 = vpack.c.bf16 %v6755_v51, %v4906_v22 }
0x2739   : > { %v6758_v23 = vpop.f32.mrb[62].mxu1  ;;  %7026 = vmatpush3.bf16.msra.mxu1 %v7025_v52 }
0x273a   : > { %v4916_v53 = vpop.f32.mrb[63].mxu1  ;;  %7027 = vmatprep.subr.bf16.mxu1 %v7619_v3 }
0x273b   : > { %v7028_v24 = vpack.c.bf16 %v6758_v23, %v4916_v53 }
0x273d   : > { %7029 = vmatpush3.bf16.msra.mxu1 %v7028_v24 }
0x273e   : > { %6770 = vmatprep.subr.msk.mxu1 %vm472_vm2, %v5036_v46 }
0x2740   : > { %6768 = vmatmul.mubr.msk.f32.vlgmr.msra.gmra.mrb[64].mxu1 %vm313_vm1, %v4941_v59 }
0x2741   : > { %6772 = vmatprep.mubr.msk.f32.mxu1 %vm472_vm2, %v6068_v26 }
0x2746   : > { %6771 = vmatpush3.xpose.msk.msra.mxu1 %vm472_vm2, %v5036_v46 }
0x2749   : > { %6773 = vmatmul.mubr.msk.f32.vlgmr.msra.gmra.mrb[66].mxu1 %vm472_vm2, %v6069_v60 }
0x274a   : > { %6775 = vmatprep.mubr.msk.f32.mxu1 %vm472_vm2, %v6070_v61 }
0x274d   : > { %6776 = vmatmul.mubr.msk.f32.gmra.mrb[68].mxu1 %vm472_vm2, %v6071_v62 }
0x2813   : > { %v8481_v63 = vpop.f32.mrb[64].mxu1 }
0x2814   : > { %v6769_v0 = vpop.f32.mrb[65].mxu1 }
0x281c   : > { %v6774_v1 = vpop.f32.mrb[66].mxu1 }
0x281d   : > { %v5137_v2 = vsel %vm573_vm3, %v6774_v1, -inf  ;;  %v5117_v4 = vpop.f32.mrb[67].mxu1 }
0x281e   : > { %v5136_v36 = vsel %vm573_vm3, %v5117_v4, -inf }
0x281f   : > { %v5140_v5 = vmax.f32 %v5136_v36, %v5137_v2 }
0x2820   : > { %v6777_v42 = vpop.f32.mrb[68].mxu1 }
0x2821   : > { %v5139_v7 = vsel %vm573_vm3, %v6777_v42, -inf  ;;  %v5127_v43 = vpop.f32.mrb[69].mxu1 }
0x2822   : > { %v5138_v13 = vsel %vm573_vm3, %v5127_v43, -inf }
0x2823   : > { %v5141_v14 = vmax.f32 %v5138_v13, %v5139_v7 }
0x2825   : > { %v5142_v15 = vmax.f32 %v5140_v5, %v5141_v14 }
0x2827   : > { %v5143_v21 = vrot.slane %v5142_v15, 4 }
0x2829   : > { %v5144_v54 = vmax.f32 %v5142_v15, %v5143_v21 }
0x282b   : > { %v5145_v27 = vrot.slane %v5144_v54, 2 }
0x282d   : > { %v5146_v56 = vmax.f32 %v5144_v54, %v5145_v27 }
0x282f   : > { %v5147_v28 = vrot.slane %v5146_v56, 1 }
0x2831   : > { %v5148_v57 = vmax.f32 %v5146_v56, %v5147_v28 }
0x2833   : > { %v5149_v29 = vsub.f32 %v5117_v4, %v5148_v57  ;;  %v5150_v30 = vsub.f32 %v6774_v1, %v5148_v57  ;;  %v5151_v32 = vsub.f32 %v5127_v43, %v5148_v57  ;;  %v5152_v33 = vsub.f32 %v6777_v42, %v5148_v57 }
0x2835   : > { %v5153_v34 = vmul.f32 1.442695, %v5149_v29  ;;  %v5155_v8 = vmul.f32 1.442695, %v5150_v30  ;;  %v5157_v37 = vmul.f32 1.442695, %v5151_v32 }
0x2836   : > { %v5159_v10 = vmul.f32 1.442695, %v5152_v33 }
0x2837   : > { %7521 = vpow2.f32 %v5153_v34 }
0x2838   : > { %7523 = vpow2.f32 %v5155_v8 }
0x2839   : > { %7525 = vpow2.f32 %v5157_v37 }
0x283a   : > { %7527 = vpow2.f32 %v5159_v10 }
0x2841   : > { %v7522_v18 = vpop.eup %7521 }
0x2842   : > { %v7524_v38 = vpop.eup %7523  ;;  %v5161_v39 = vsel %vm573_vm3, %v7522_v18, 0.0 }
0x2843   : > { %v7526_v25 = vpop.eup %7525  ;;  %v5162_v35 = vsel %vm573_vm3, %v7524_v38, 0.0 }
0x2844   : > { %v7528_v45 = vpop.eup %7527  ;;  %v5163_v41 = vadd.f32 %v5162_v35, %v5161_v39  ;;  %v5164_v16 = vsel %vm573_vm3, %v7526_v25, 0.0 }
0x2845   : > { %v5166_v46 = vsel %vm573_vm3, %v7528_v45, 0.0 }
0x2846   : > { %v5165_v11 = vadd.f32 %v5164_v16, %v5163_v41 }
0x2848   : > { %v5167_v9 = vadd.f32 %v5166_v46, %v5165_v11 }
0x284a   : > { %v5168_v19 = vrot.slane %v5167_v9, 4 }
0x284c   : > { %v5169_v20 = vadd.f32 %v5168_v19, %v5167_v9 }
0x284e   : > { %v5170_v47 = vrot.slane %v5169_v20, 2 }
0x2850   : > { %v5171_v48 = vadd.f32 %v5170_v47, %v5169_v20 }
0x2852   : > { %v5172_v49 = vrot.slane %v5171_v48, 1 }
0x2854   : > { %v5173_v50 = vadd.f32 %v5172_v49, %v5171_v48 }
0x2856   : > { %7529 = vrcp.f32 %v5173_v50 }
0x2860   : > { %v7530_v51 = vpop.eup %7529 }
0x2861   : > { %v8491_v22 = vmul.f32 %v7530_v51, %v7522_v18  ;;  %v8493_v52 = vmul.f32 %v7530_v51, %v7526_v25  ;;  %v8495_v23 = vmul.f32 %v7530_v51, %v7524_v38  ;;  %v8497_v53 = vmul.f32 %v7530_v51, %v7528_v45 }
0x2863   : > { %6780 = vmatprep.mubr.msk.f32.mxu0 %vm573_vm3, %v8491_v22  ;;  %v5185_v24 = vsel %vm573_vm3, %v8493_v52, 0.0  ;;  %v5179_v59 = vsel %vm573_vm3, %v8491_v22, 0.0  ;;  %v5182_v26 = vsel %vm573_vm3, %v8495_v23, 0.0  ;;  %v5188_v60 = vsel %vm573_vm3, %v8497_v53, 0.0 }
0x2864   : > { %5186 = vadd.xlane.f32.xlu0 %v5185_v24  ;;  %6781 = vmatmul.mubr.msk.f32.vlgmr.msra.gmra.mrb[64].mxu0 %vm573_vm3, %v8495_v23 }
0x2865   : > { %5180 = vadd.xlane.f32.xlu1 %v5179_v59  ;;  %6783 = vmatprep.mubr.msk.f32.mxu0 %vm573_vm3, %v8493_v52 }
0x2868   : > { %6784 = vmatmul.mubr.msk.f32.gmra.mrb[66].mxu0 %vm573_vm3, %v8497_v53 }
0x2869   : > { %5183 = vadd.xlane.f32.xlu1 %v5182_v26 }
0x286d   : > { %5189 = vadd.xlane.f32.xlu1 %v5188_v60 }
0x28f1   : > { %v5187_v4 = vpop.xlane.xlu0 %5186 }
0x28f2   : > { %v5181_v61 = vpop.xlane.xlu1 %5180  ;;  %v5193_v5 = vadd.f32 1e-05, %v5187_v4 }
0x28f3   : > { %v5191_v1 = vadd.f32 1e-05, %v5181_v61 }
0x28f6   : > { %v5184_v62 = vpop.xlane.xlu1 %5183 }
0x28f7   : > { %v5192_v0 = vadd.f32 1e-05, %v5184_v62 }
0x28f9   : > { %7531 = vrcp.f32 %v5192_v0 }
0x28fa   : > { %v5190_v2 = vpop.xlane.xlu1 %5189  ;;  %7533 = vrcp.f32 %v5191_v1 }
0x28fb   : > { %v5194_v36 = vadd.f32 1e-05, %v5190_v2 }
0x28fd   : > { %7535 = vrcp.f32 %v5194_v36 }
0x28fe   : > { %7537 = vrcp.f32 %v5193_v5 }
0x2903   : > { %v7532_v42 = vpop.eup %7531 }
0x2904   : > { %v7534_v43 = vpop.eup %7533 }
0x2907   : > { %v7536_v21 = vpop.eup %7535 }
0x2908   : > { %v7538_v28 = vpop.eup %7537 }
0x2937   : > { %v6782_v7 = vpop.f32.mrb[64].mxu0 }
0x2938   : > { %v5300_v13 = vmul.f32 %v7532_v42, %v6782_v7  ;;  %v5280_v14 = vpop.f32.mrb[65].mxu0 }
0x2939   : > { %v5299_v15 = vmul.f32 %v7534_v43, %v5280_v14 }
0x293a   : > { %v5304_v25 = vmul.f32 0.5, %v5300_v13 }
0x293b   : > { %v5303_v54 = vmul.f32 0.5, %v5299_v15  ;;  %v8515_v27 = vpack.i.bf16 %v5300_v13, %v5299_v15  ;;  %v6785_v56 = vpop.f32.mrb[66].mxu0 }
0x293c   : > { %v5302_v57 = vmul.f32 %v7536_v21, %v6785_v56  ;;  %v5290_v29 = vpop.f32.mrb[67].mxu0 }
0x293d   : > { %v5301_v30 = vmul.f32 %v7538_v28, %v5290_v29  ;;  %6794 = vmatprep.mubr.msk.f32.mxu1 %vm472_vm2, %v5303_v54  ;;  %7264 = vrot.lane.b32.xlu1 %v8515_v27, %s7622_s24 }
0x293e   : > { %v5306_v45 = vmul.f32 0.5, %v5302_v57 }
0x293f   : > { %v7278_v32 = vpack.i.bf16 %v5302_v57, %v5301_v30  ;;  %v5305_v35 = vmul.f32 0.5, %v5301_v30 }
0x2941   : > { %7269 = vrot.lane.b32.xlu1 %v7278_v32, %s7622_s24  ;;  %s7634_s24 = smov 4  }
0x29af   : > { %v7265_v33 = vpop.permute.xlu1 %7264 }
0x29b0   : > { %v7267_v34 = vunpack.i.h.bf16 %v7265_v33  ;;  %v7266_v8 = vunpack.i.l.bf16 %v7265_v33 }
0x29b2   : > { %v7030_v37 = vpack.c.bf16 %v7267_v34, %v7266_v8 }
0x29b3   : > { %v7270_v10 = vpop.permute.xlu1 %7269 }
0x29b4   : > { %v7272_v18 = vunpack.i.h.bf16 %v7270_v10  ;;  %v7271_v38 = vunpack.i.l.bf16 %v7270_v10  ;;  %7032 = vmatprep.subr.msk.bf16.mxu1 %vm7846_vm4, %v7030_v37 }
0x29b5   : > { %7035 = vmatpush3.bf16.xpose.msk.msra.mxu1 %vm7846_vm4, %v7030_v37 }
0x29b6   : > { %v7036_v39 = vpack.c.bf16 %v7272_v18, %v7271_v38  ;;  %v5722_v18 = vld [vmem:[%s8639_s6] sm:$0xff]  ;;  %v5724_v38 = vld [vmem:[%s8639_s6 + $0x10] sm:$0xff] }
0x29b8   : > { %7038 = vmatprep.subr.msk.bf16.mxu1 %vm7846_vm4, %v7036_v39 }
0x29bd   : > { %7041 = vmatpush3.bf16.xpose.msk.msra.mxu1 %vm7846_vm4, %v7036_v39 }
0x29be   : > { %7056 = vmatprep.subr.bf16.mxu1 %v7619_v3 }
0x29c4   : > { %6795 = vmatmul.mubr.msk.f32.vlgmr.msra.gmra.mrb[70].mxu1 %vm472_vm2, %v5304_v25  ;;  %v5725_v25 = vld [vmem:[%s8639_s6 + $0x18] sm:$0xff] }
0x29c5   : > { %6797 = vmatprep.mubr.msk.f32.mxu1 %vm472_vm2, %v5305_v35  ;;  %v7060_v35 = vpack.c.bf16 %v5725_v25, %v5724_v38 }
0x29c8   : > { %6798 = vmatmul.mubr.msk.f32.gmra.mrb[72].mxu1 %vm472_vm2, %v5306_v45 }
0x29c9   : > { %6833 = vmatprep.mubr.msk.f32.mxu1 %vm7620_vm0, %v7621_v6 }
0x2a97   : > { %v6796_v41 = vpop.f32.mrb[70].mxu1 }
0x2a98   : > { %v5405_v16 = vpop.f32.mrb[71].mxu1  ;;  %v5427_v11 = vsel %vm313_vm1, %v6796_v41, -inf }
0x2a99   : > { %5428 = vmax.xlane.f32.xlu0 %v5427_v11  ;;  %v5424_v44 = vsel %vm313_vm1, %v5405_v16, -inf }
0x2a9a   : > { %5425 = vmax.xlane.f32.xlu1 %v5424_v44 }
0x2a9b   : > { %v6799_v46 = vpop.f32.mrb[72].mxu1 }
0x2a9c   : > { %v5415_v9 = vpop.f32.mrb[73].mxu1  ;;  %v5433_v20 = vsel %vm313_vm1, %v6799_v46, -inf }
0x2a9d   : > { %v5430_v19 = vsel %vm313_vm1, %v5415_v9, -inf }
0x2a9e   : > { %5431 = vmax.xlane.f32.xlu0 %v5430_v19 }
0x2aa2   : > { %5434 = vmax.xlane.f32.xlu0 %v5433_v20 }
0x2b26   : > { %v5429_v47 = vpop.xlane.xlu0 %5428 }
0x2b27   : > { %v5437_v48 = vsub.f32 %v6796_v41, %v5429_v47  ;;  %v5426_v49 = vpop.xlane.xlu1 %5425 }
0x2b28   : > { %v5436_v50 = vsub.f32 %v5405_v16, %v5426_v49 }
0x2b29   : > { %v5442_v51 = vmul.f32 1.442695, %v5437_v48 }
0x2b2a   : > { %v5440_v24 = vmul.f32 1.442695, %v5436_v50 }
0x2b2b   : > { %7539 = vpow2.f32 %v5442_v51  ;;  %v5432_v59 = vpop.xlane.xlu0 %5431 }
0x2b2c   : > { %v5438_v26 = vsub.f32 %v5415_v9, %v5432_v59  ;;  %7541 = vpow2.f32 %v5440_v24 }
0x2b2e   : > { %v5444_v60 = vmul.f32 1.442695, %v5438_v26 }
0x2b2f   : > { %v5435_v61 = vpop.xlane.xlu0 %5434 }
0x2b30   : > { %7543 = vpow2.f32 %v5444_v60  ;;  %v5439_v62 = vsub.f32 %v6799_v46, %v5435_v61 }
0x2b32   : > { %v5446_v0 = vmul.f32 1.442695, %v5439_v62 }
0x2b34   : > { %7545 = vpow2.f32 %v5446_v0 }
0x2b35   : > { %v7540_v1 = vpop.eup %7539 }
0x2b36   : > { %v5451_v2 = vsel %vm313_vm1, %v7540_v1, 0.0  ;;  %v7542_v4 = vpop.eup %7541 }
0x2b37   : > { %5452 = vadd.xlane.f32.xlu0 %v5451_v2  ;;  %v5448_v5 = vsel %vm313_vm1, %v7542_v4, 0.0 }
0x2b3a   : > { %v7544_v36 = vpop.eup %7543 }
0x2b3b   : > { %5449 = vadd.xlane.f32.xlu0 %v5448_v5  ;;  %v5454_v42 = vsel %vm313_vm1, %v7544_v36, 0.0 }
0x2b3c   : > { %5455 = vadd.xlane.f32.xlu1 %v5454_v42 }
0x2b3e   : > { %v7546_v7 = vpop.eup %7545 }
0x2b3f   : > { %v5457_v43 = vsel %vm313_vm1, %v7546_v7, 0.0 }
0x2b40   : > { %5458 = vadd.xlane.f32.xlu0 %v5457_v43 }
0x2b4d   : > { %7274 = vrot.lane.b32.xlu1 %v8515_v27, %s7623_s25 }
0x2b56   : > { %7279 = vrot.lane.b32.xlu0 %v7278_v32, %s7623_s25  ;;  %s6097_s25 = sshll.u32 %s7708_s9, 7  ;;  %s7641_s9 = smov [#allocation2]  }
0x2b57   : > { %s8590_s12 = scalar_lea.hbm %s8641_s8, %s6097_s25 }
0x2b5a   : > { %5683 = vrot.lane.b32.xlu0 %v8004_v31, %s7634_s24 }
0x2b5e   : > { %5687 = vrot.lane.b32.xlu0 %v8100_v40, %s7635_s17  ;;  %s7640_s17 = smov 28  }
0x2b62   : > { %5691 = vrot.lane.b32.xlu0 %v8195_v17, %s7636_s18  ;;  %s294_s18 = sand.u32 1, %s7609_s28  }
0x2b63   : > { %s5808_s13 = scalar_lea.sflag [#allocation3], %s294_s18 }
0x2b66   : > { %5695 = vrot.lane.b32.xlu0 %v8290_v58, %s7637_s19  ;;  %s5884_s19 = sshll.u32 %s294_s18, 3 }
0x2b67   : > { %s296_s21 = scalar_lea.vmem [#allocation2], %s5884_s19 }
0x2b68   : > { %s5821_s26 = sshll.u32 %s296_s21, 4  ;;  %s8592_s26 = int_to_ptr.vmem [resolvable:$true] %s5821_s26 }
0x2b69   : > { %s7555_s24 = scalar_lea.vmem %s8592_s26, 128 }
0x2b6a   : > { %5699 = vrot.lane.b32.xlu0 %v8386_v12, %s7638_s20  ;;  %p7556_p11 = scmp.ne.s32.totalorder %s8592_s26, %s7555_s24 }
0x2b6c   : > { %p7557_p12 = pnand %p7556_p11, %p7725_p5 }
0x2b6e   : > { %5703 = vrot.lane.b32.xlu0 %v8481_v63, %s7639_s22  ;;  %p7558_p13 = pneg %p7557_p12 }
0x2b76   : > { %5577 = vxpose.xlu1.b32.start [1/4] (short) (narrow) %v8491_v22, 8 }
0x2b7a   : > { %5578 = vxpose.xlu1.b32.cont [2/4] (short) (narrow) %v8495_v23, 8 }
0x2b7e   : > { %5579 = vxpose.xlu1.b32.cont [3/4] (short) (narrow) %v8493_v52, 8 }
0x2b82   : > { %5580 = vxpose.xlu1.b32.end [4/4] (short) (narrow) %v8497_v53, 8 }
0x2bc4   : > { %v5453_v31 = vpop.xlane.xlu0 %5452 }
0x2bc8   : > { %v5450_v40 = vpop.xlane.xlu0 %5449 }
0x2bc9   : > { %7547 = vrcp.f32 %v5450_v40  ;;  %v5456_v17 = vpop.xlane.xlu1 %5455 }
0x2bca   : > { %7549 = vrcp.f32 %v5453_v31 }
0x2bcb   : > { %7551 = vrcp.f32 %v5456_v17 }
0x2bcd   : > { %v7275_v58 = vpop.permute.xlu1 %7274  ;;  %v5459_v13 = vpop.xlane.xlu0 %5458 }
0x2bce   : > { %v7277_v12 = vunpack.i.h.bf16 %v7275_v58  ;;  %v7276_v14 = vunpack.i.l.bf16 %v7275_v58  ;;  %7553 = vrcp.f32 %v5459_v13 }
0x2bd0   : > { %v7042_v63 = vpack.c.bf16 %v7277_v12, %v7276_v14 }
0x2bd1   : > { %v7280_v15 = vpop.permute.xlu0 %7279 }
0x2bd2   : > { %v7282_v22 = vunpack.i.h.bf16 %v7280_v15  ;;  %v7281_v21 = vunpack.i.l.bf16 %v7280_v15  ;;  %7043 = vmatprep.subr.bf16.mxu0 %v7042_v63 }
0x2bd3   : > { %v7548_v23 = vpop.eup %7547  ;;  %7045 = vmatpush3.bf16.msra.mxu0 %v7042_v63 }
0x2bd4   : > { %v7046_v52 = vpack.c.bf16 %v7282_v22, %v7281_v21  ;;  %v5464_v53 = vmul.f32 %v7548_v23, %v7542_v4  ;;  %v7550_v54 = vpop.eup %7549 }
0x2bd5   : > { %v7552_v27 = vpop.eup %7551  ;;  %v5465_v56 = vmul.f32 %v7550_v54, %v7540_v1  ;;  %v5684_v16 = vpop.permute.xlu0 %5683 }
0x2bd6   : > { %7047 = vmatprep.subr.bf16.mxu0 %v7046_v52  ;;  %6808 = vmatprep.mubr.msk.f32.mxu0 %vm313_vm1, %v5464_v53  ;;  %v5466_v57 = vmul.f32 %v7552_v27, %v7544_v36  ;;  %v5710_v19 = vsel %vm472_vm2, %v7907_v55, %v5684_v16  ;;  %v6094_v55 = vld [vmem:[%s8640_s7] ss:$0 sm:$0xff] }
0x2bd7   : > { %7049 = vmatpush3.bf16.msra.mxu0 %v7046_v52 }
0x2bd8   : > { %7050 = vmatprep.subr.bf16.mxu0 %v7619_v3  ;;  %v7554_v28 = vpop.eup %7553 }
0x2bd9   : > { %v5467_v29 = vmul.f32 %v7554_v28, %v7546_v7  ;;  %v5688_v11 = vpop.permute.xlu0 %5687 }
0x2bda   : > { %6809 = vmatmul.mubr.msk.f32.vlgmr.msra.gmra.mrb[68].mxu0 %vm313_vm1, %v5465_v56  ;;  %v5711_v20 = vsel %vm573_vm3, %v5710_v19, %v5688_v11 }
0x2bdb   : > { %6811 = vmatprep.mubr.msk.f32.mxu0 %vm313_vm1, %v5466_v57 }
0x2bdd   : > { %v5692_v44 = vpop.permute.xlu0 %5691 }
0x2bde   : > { %6812 = vmatmul.mubr.msk.f32.gmra.mrb[70].mxu0 %vm313_vm1, %v5467_v29  ;;  %v5713_v47 = vsel %vm5712_vm5, %v5711_v20, %v5692_v44 }
0x2bdf   : > { %6822 = vmatprep.mubr.msk.f32.mxu0 %vm7620_vm0, %v7621_v6  ;;  %v5723_v6 = vld [vmem:[%s8639_s6 + $0x8] sm:$0xff] }
0x2be0   : > { %v7057_v39 = vpack.c.bf16 %v5723_v6, %v5722_v18 }
0x2be1   : > { %v5696_v46 = vpop.permute.xlu0 %5695 }
0x2be2   : > { %7058 = vmatpush3.bf16.msra.mxu1 %v7057_v39  ;;  %v5715_v48 = vsel %vm5714_vm6, %v5713_v47, %v5696_v46 }
0x2be3   : > { %7059 = vmatprep.subr.bf16.mxu1 %v7619_v3 }
0x2be5   : > { %v5700_v9 = vpop.permute.xlu0 %5699 }
0x2be6   : > { %7061 = vmatpush3.bf16.msra.mxu1 %v7060_v35  ;;  %v5717_v49 = vsel %vm5716_vm7, %v5715_v48, %v5700_v9 }
0x2bf6   : > { %v5593_v10 = vpop.trf.xlu1 }
0x2cad   : > { %v6810_v30 = vpop.f32.mrb[68].mxu0 }
0x2cae   : > { %v5558_v32 = vpop.f32.mrb[69].mxu0 }
0x2caf   : > { %v7051_v33 = vpack.c.bf16 %v6810_v30, %v5558_v32 }
0x2cb1   : > { %v6813_v34 = vpop.f32.mrb[70].mxu0  ;;  %7052 = vmatpush3.bf16.msra.mxu0 %v7051_v33 }
0x2cb2   : > { %v5568_v8 = vpop.f32.mrb[71].mxu0  ;;  %7053 = vmatprep.subr.bf16.mxu0 %v7619_v3  ;;  %v5704_v3 = vpop.permute.xlu0 %5703 }
0x2cb3   : > { %v7054_v37 = vpack.c.bf16 %v6813_v34, %v5568_v8  ;;  %v5719_v50 = vsel %vm5718_vm8, %v5717_v49, %v5704_v3 }
0x2cb5   : > { %7055 = vmatpush3.bf16.msra.mxu0 %v7054_v37 }
0x2cb8   : > { %6823 = vmatmul.mubr.msk.f32.vlgmr.msra.gmra.mrb[72].mxu0 %vm313_vm1, %v5593_v10 }
0x2d8b   : > { %v5678_v45 = vpop.f32.mrb[72].mxu0 }
0x2d8c   : > { %5707 = vrot.lane.b32.xlu0 %v5678_v45, %s7640_s17  ;;  %v6824_v41 = vpop.f32.mrb[73].mxu0  ;;  %s7559_s17 = sshll.u32 %s7641_s9, 4  ;;  %s7560_s17 = int_to_ptr.vmem [resolvable:$false] %s7559_s17 }
0x2d8d   : > { %s7561_s19 = scalar_lea.vmem %s7560_s17, 256  ;;  %p7562_p0 = scmp.lt.s32.totalorder %s8592_s26, %s7560_s17 }
0x2d8e   : > { %p7563_p1 = scmp.lt.s32.totalorder %s7561_s19, %s7555_s24 }
0x2d90   : > { %p7564_p2 = por %p7563_p1, %p7562_p0 }
0x2d92   : > { %p7565_p3 = pnand %p7564_p2, %p7558_p13 }
0x2dfe   : > { %v5708_v51 = vpop.permute.xlu0 %5707 }
0x2dff   : > { %v5721_v24 = vsel %vm5720_vm9, %v5719_v50, %v5708_v51 }
0x2e00   : > { %6834 = vmatmul.mubr.msk.f32.vlgmr.msra.gmra.mrb[74].mxu1 %vm313_vm1, %v5721_v24 }
0x2ed3   : > { %v5802_v59 = vpop.f32.mrb[74].mxu1 }
0x2ed4   : > { %v5803_v26 = vadd.f32 %v6094_v55, %v5802_v59  ;;  %v6835_v60 = vpop.f32.mrb[75].mxu1 }
0x2ed6   : > { %5806 = vst.msk [vmem:[%s296_s21] sm:$0xff] %vm313_vm1, %v5803_v26 }
0x2ed7   : > { %7568 = shalt.err (!%p7565_p3)
}
0x2ed8   : > { %s7569_s18 = scalar_lea.hbm %s8590_s12, 128  ;;  %s7573_s25 = scalar_lea.hbm %s8641_s8, 256 }
0x2ed9   : > { %p7570_p4 = scmp.ne.s32.totalorder %s8590_s12, %s7569_s18  ;;  %p7574_p9 = scmp.lt.u32.totalorder %s8590_s12, %s8641_s8 }
0x2eda   : > { %p7575_p10 = scmp.lt.u32.totalorder %s7573_s25, %s7569_s18  ;;  %p7577_p12 = scmp.lt.u32.totalorder %s7569_s18, %s8590_s12 }
0x2edb   : > { %p7571_p7 = pnand %p7570_p4, %p7725_p5 }
0x2edc   : > { %p7576_p11 = por %p7575_p10, %p7574_p9 }
0x2edd   : > { %p7572_p8 = pneg %p7571_p7 }
0x2ede   : > { %p7578_p13 = por %p7577_p12, %p7576_p11 }
0x2ee0   : > { %p7579_p0 = pnand %p7578_p13, %p7572_p8 }
0x2ee2   : > { %7582 = shalt.err (!%p7579_p0)
}
0x2ee3   : > { %7062 = dma.vmem_to_hbm [thread:$0]  (%p7725_p5), %s8592_s26, 128, %s8590_s12, %s5808_s13  }
0x2ee4 PF: > { %p7068_p1 = scmp.ge.s32.totalorder %s7617_s30, 2  ;;  %s5833_s10 = sand.u32 1, %s7605_s27  }
0x2ee5   : > { %s5834_s24 = scalar_lea.sflag [#allocation3], %s5833_s10 }
0x2ee6   : > { %p7065_p2 = pnand %p7068_p1, %p7729_p6 }
0x2ee8   : > { %7600 = dma.done.wait (!%p7065_p2), %s5834_s24, 128  }
0x2ee9   : > { %7602 = vsyncadd (!%p7065_p2), %s5834_s24, 4294967168  ;;  %p18_p3 = scmp.ge.s32.totalorder %s7712_s11, 4   ;;  %s8646_s27 = smov %s7609_s28 }
0x2eea   : > { %s8647_s28 = smov %s7613_s29  ;;  %s8648_s29 = smov %s7723_s14 }
0x2eeb   : > { %s8649_s30 = smov %s7712_s11  ;;  %20 = sbr.rel (!%p18_p3) target bundleno = 3 (0x3), region = 94 }
0x2ef2   :  { %5839 = vsyncpa [#allocation3], 1 }
0x2ef3   :  { %5841 = vsyncpa [#allocation3 + $0x1], 1 }

</bundles_post_ra>
